<compile_context>
chip_gen: v6e
topology: v6e:2x2x1
jax: 0.10.0
libtpu: 0.0.40
codegen_flags: <defaults>
</compile_context>

<pallas_src>
import jax
import jax.numpy as jnp
from jax.experimental import pallas as pl
from jax.experimental.pallas import tpu as pltpu

NUM_CLASSES = 10000
EMB_DIM = 100
HIDDEN = 128

EMB_PAD = 128                                     # E padded to lane width
HEAD_TILE_N = 2560                                # 20 x 128 lanes per head weight tile
NUM_HEAD_TILES = -(-NUM_CLASSES // HEAD_TILE_N)   # 4
N_PAD = NUM_HEAD_TILES * HEAD_TILE_N              # 10240


# ----------------------------- LSTM recurrence kernel -----------------------------
def lstm_kernel(x_ref, wih_ref, whh_ref, h_out_ref, xg_sc):
    T, B, E = x_ref.shape
    H = whh_ref.shape[0]

    # Hoisted input projection: one big MXU pass for all timesteps.
    x_all = x_ref[...].reshape(T * B, E)
    xg_sc[...] = jnp.dot(
        x_all, wih_ref[...], preferred_element_type=jnp.float32
    ).reshape(T, B, 4 * H)

    w_hh = whh_ref[...]

    def step(t, carry):
        h, c = carry
        gates = xg_sc[t] + jnp.dot(h, w_hh, preferred_element_type=jnp.float32)
        i_g = jax.nn.sigmoid(gates[:, 0 * H:1 * H])
        f_g = jax.nn.sigmoid(gates[:, 1 * H:2 * H])
        g_g = jnp.tanh(gates[:, 2 * H:3 * H])
        o_g = jax.nn.sigmoid(gates[:, 3 * H:4 * H])
        c_new = f_g * c + i_g * g_g
        h_new = o_g * jnp.tanh(c_new)
        return h_new, c_new

    h0 = jnp.zeros((B, H), jnp.float32)
    c0 = jnp.zeros((B, H), jnp.float32)
    h_last, _ = jax.lax.fori_loop(0, T, step, (h0, c0), unroll=True)
    h_out_ref[...] = h_last


def lstm_last_hidden(x_emb_tm, w_ih_t, w_hh_t):
    """x_emb_tm: (T, B_pad, E_pad). Returns last hidden state (B_pad, H)."""
    T, B, E = x_emb_tm.shape
    H = w_hh_t.shape[0]
    # TODO(synk): for long sequences, chunk T (~128 steps per grid iteration) instead
    # of pulling the whole (T, B, E) slab into VMEM at once.
    return pl.pallas_call(
        lstm_kernel,
        out_shape=jax.ShapeDtypeStruct((B, H), jnp.float32),
        grid=(1,),
        in_specs=[
            pl.BlockSpec((T, B, E), lambda i: (0, 0, 0)),     # whole activation slab
            pl.BlockSpec((E, 4 * H), lambda i: (0, 0)),       # W_ih^T resident
            pl.BlockSpec((H, 4 * H), lambda i: (0, 0)),       # W_hh^T resident
        ],
        out_specs=pl.BlockSpec((B, H), lambda i: (0, 0)),
        scratch_shapes=[pltpu.VMEM((T, B, 4 * H), jnp.float32)],   # hoisted X@W_ih
        compiler_params=pltpu.CompilerParams(
            dimension_semantics=("arbitrary",)),
    )(x_emb_tm, w_ih_t, w_hh_t)


# ----------------------------- Linear + softmax head kernel -----------------------------
def head_kernel(h_ref, w_ref, b_ref, out_ref):
    j = pl.program_id(0)

    # bf16 weight tile x bf16 activations -> f32 accumulation on the MXU.
    logits = jnp.dot(h_ref[...].astype(jnp.bfloat16), w_ref[...],
                     preferred_element_type=jnp.float32) + b_ref[...]
    out_ref[j] = logits                                   # resident (nt, B, tn) buffer

    @pl.when(j == pl.num_programs(0) - 1)
    def _():
        x = out_ref[...]                                  # all logits, VMEM-resident
        m = jnp.max(jnp.max(x, axis=2, keepdims=True), axis=0, keepdims=True)
        e = jnp.exp(x - m)
        denom = jnp.sum(jnp.sum(e, axis=2, keepdims=True), axis=0, keepdims=True)
        inv = 1.0 / denom                                 # tiny (1,B,1) exact reciprocal
        out_ref[...] = e * inv


def linear_softmax(h_pad, w_out_t, b_out):
    """h_pad: (B_pad, H); w_out_t: (H, N_PAD) bf16; b_out: (1, N_PAD) f32.
    Returns softmax probs (B_pad, N_PAD)."""
    B, H = h_pad.shape
    tn = HEAD_TILE_N
    nt = NUM_HEAD_TILES
    probs3 = pl.pallas_call(
        head_kernel,
        out_shape=jax.ShapeDtypeStruct((nt, B, tn), jnp.float32),
        grid=(nt,),
        in_specs=[
            pl.BlockSpec((B, H), lambda j: (0, 0)),           # h resident
            pl.BlockSpec((H, tn), lambda j: (0, j)),          # streamed weight tile
            pl.BlockSpec((1, tn), lambda j: (0, j)),          # streamed bias tile
        ],
        out_specs=pl.BlockSpec((nt, B, tn), lambda j: (0, 0, 0)),   # resident logits
        compiler_params=pltpu.CompilerParams(
            dimension_semantics=("arbitrary",)),
    )(h_pad, w_out_t, b_out)
    # (nt, B, tn) -> (B, nt*tn): tile j holds classes [j*tn, (j+1)*tn).
    return jnp.transpose(probs3, (1, 0, 2)).reshape(B, nt * tn)


# ----------------------------- Full model forward -----------------------------
def lstm_model_forward(x_tokens, params):
    emb_table, w_ih_t, w_hh_t, w_out_t, b_out = params
    B, T = x_tokens.shape
    B_pad = -(-B // 8) * 8

    # Embedding lookup (gather) kept in plain JAX glue; columns are already E_PAD wide.
    x_emb = jnp.take(emb_table, x_tokens.astype(jnp.int32), axis=0)   # (B, T, E_PAD)
    x_emb_tm = jnp.transpose(x_emb, (1, 0, 2))                        # (T, B, E_PAD)
    if B_pad != B:
        x_emb_tm = jnp.pad(x_emb_tm, ((0, 0), (0, B_pad - B), (0, 0)))

    h_last = lstm_last_hidden(x_emb_tm, w_ih_t, w_hh_t)               # (B_pad, H)
    probs = linear_softmax(h_last, w_out_t, b_out)                    # (B_pad, N_PAD)
    return probs[:B, :NUM_CLASSES]


def init_params(key):
    k_emb, k_ih, k_hh, k_w, k_b = jax.random.split(key, 5)
    bound = 1.0 / jnp.sqrt(jnp.float32(HIDDEN))

    # Embedding table pre-padded to E_PAD lanes (pad columns are zero).
    emb = jax.random.normal(k_emb, (NUM_CLASSES, EMB_DIM), jnp.float32)
    emb_table = jnp.pad(emb, ((0, 0), (0, EMB_PAD - EMB_DIM)))

    # LSTM weights stored transposed: (E_PAD, 4H) and (H, 4H); gate order i, f, g, o.
    # Pad rows of W_ih^T are zero so padded E columns do not change the gates.
    w_ih = jax.random.uniform(k_ih, (EMB_DIM, 4 * HIDDEN), jnp.float32, -bound, bound)
    w_ih_t = jnp.pad(w_ih, ((0, EMB_PAD - EMB_DIM), (0, 0)))
    w_hh_t = jax.random.uniform(k_hh, (HIDDEN, 4 * HIDDEN), jnp.float32, -bound, bound)

    # Output head pre-padded once at init; weights in bf16 (memory-bound stream),
    # bias/logits/softmax stay f32. Padded classes get a -1e30 bias -> softmax prob 0.
    w_out = jax.random.uniform(k_w, (HIDDEN, NUM_CLASSES), jnp.float32, -bound, bound)
    w_out_t = jnp.pad(w_out, ((0, 0), (0, N_PAD - NUM_CLASSES))).astype(jnp.bfloat16)
    b = jax.random.uniform(k_b, (NUM_CLASSES,), jnp.float32, -bound, bound)
    b_out = jnp.pad(b, (0, N_PAD - NUM_CLASSES),
                    constant_values=-1e30).reshape(1, N_PAD)

    return emb_table, w_ih_t, w_hh_t, w_out_t, b_out


if __name__ == "__main__":
    key = jax.random.PRNGKey(0)
    k_params, k_x = jax.random.split(key)
    params = init_params(k_params)

    B, T = 2, 8
    x_tokens = jax.random.randint(k_x, (B, T), 0, NUM_CLASSES, dtype=jnp.int32)

    fwd = jax.jit(lstm_model_forward)
    probs = jax.block_until_ready(fwd(x_tokens, params))

    assert probs.shape == (B, NUM_CLASSES)
    assert bool(jnp.all(jnp.isfinite(probs)))
    row_sums = jnp.sum(probs, axis=-1)
    assert bool(jnp.all(jnp.abs(row_sums - 1.0) < 1e-3))

    print("KERNEL_OK")
</pallas_src>

<mosaic_0001>
module attributes {stable_mosaic.version = 11 : i64} {
  func.func @lstm_kernel(%arg0: i32, %arg1: memref<8x8x128xf32, #tpu.memory_space<vmem>>, %arg2: memref<128x512xf32, #tpu.memory_space<vmem>>, %arg3: memref<128x512xf32, #tpu.memory_space<vmem>>, %arg4: memref<8x128xf32, #tpu.memory_space<vmem>>, %arg5: memref<8x8x512xf32, #tpu.memory_space<vmem>>) attributes {dimension_semantics = [#tpu.dimension_semantics<arbitrary>], iteration_bounds = array<i64: 1>, scalar_prefetch = 0 : i64, scratch_operands = 1 : i64, tpu.core_type = #tpu.core_type<tc>, window_params = [{pipeline_mode = #tpu.pipeline_mode<synchronous>, transform_indices = @transform_0, window_bounds = array<i64: 8, 8, 128>}, {pipeline_mode = #tpu.pipeline_mode<synchronous>, transform_indices = @transform_1, window_bounds = array<i64: 128, 512>}, {pipeline_mode = #tpu.pipeline_mode<synchronous>, transform_indices = @transform_2, window_bounds = array<i64: 128, 512>}, {pipeline_mode = #tpu.pipeline_mode<synchronous>, transform_indices = @transform_3, window_bounds = array<i64: 8, 128>}]} {
    %c0 = arith.constant 0 : index
    %c0_0 = arith.constant 0 : index
    %c0_1 = arith.constant 0 : index
    %0 = vector.load %arg1[%c0, %c0_0, %c0_1] : memref<8x8x128xf32, #tpu.memory_space<vmem>>, vector<8x8x128xf32>
    %1 = vector.shape_cast %0 : vector<8x8x128xf32> to vector<64x128xf32>
    %c0_2 = arith.constant 0 : index
    %c0_3 = arith.constant 0 : index
    %2 = vector.load %arg2[%c0_2, %c0_3] : memref<128x512xf32, #tpu.memory_space<vmem>>, vector<128x512xf32>
    %cst = arith.constant dense<0.000000e+00> : vector<64x512xf32>
    %3 = tpu.matmul %1, %2, %cst {dimension_numbers = #tpu.dot_dimension_numbers<[1], [0], [0], [1], [0, 0, 1, 1], [], []>} : vector<64x128xf32>, vector<128x512xf32>, vector<64x512xf32> -> vector<64x512xf32>
    %4 = vector.shape_cast %3 : vector<64x512xf32> to vector<8x8x512xf32>
    %c0_4 = arith.constant 0 : index
    %c0_5 = arith.constant 0 : index
    %c0_6 = arith.constant 0 : index
    %5 = vector.load %arg5[%c0_4, %c0_5, %c0_6] : memref<8x8x512xf32, #tpu.memory_space<vmem>>, vector<8x8x512xf32>
    tpu.vector_store %arg5[%c0_4, %c0_5, %c0_6], %4 {strides = array<i32>} : memref<8x8x512xf32, #tpu.memory_space<vmem>>, vector<8x8x512xf32>,
    %c0_7 = arith.constant 0 : index
    %c0_8 = arith.constant 0 : index
    %6 = vector.load %arg3[%c0_7, %c0_8] : memref<128x512xf32, #tpu.memory_space<vmem>>, vector<128x512xf32>
    %cst_9 = arith.constant 0.000000e+00 : f32
    %7 = vector.broadcast %cst_9 : f32 to vector<8x128xf32>
    %cst_10 = arith.constant 0.000000e+00 : f32
    %8 = vector.broadcast %cst_10 : f32 to vector<8x128xf32>
    %c0_i32 = arith.constant 0 : i32
    %9 = arith.index_cast %c0_i32 : i32 to index
    %c0_11 = arith.constant 0 : index
    %c0_12 = arith.constant 0 : index
    %10 = vector.load %arg5[%9, %c0_11, %c0_12] : memref<8x8x512xf32, #tpu.memory_space<vmem>>, vector<1x8x512xf32>
    %11 = vector.shape_cast %10 : vector<1x8x512xf32> to vector<8x512xf32>
    %cst_13 = arith.constant dense<0.000000e+00> : vector<8x512xf32>
    %12 = tpu.matmul %7, %6, %cst_13 {dimension_numbers = #tpu.dot_dimension_numbers<[1], [0], [0], [1], [0, 0, 1, 1], [], []>} : vector<8x128xf32>, vector<128x512xf32>, vector<8x512xf32> -> vector<8x512xf32>
    %13 = arith.addf %11, %12 : vector<8x512xf32>
    %14 = vector.extract_strided_slice %13 {offsets = [0, 0], sizes = [8, 128], strides = [1, 1]} : vector<8x512xf32> to vector<8x128xf32>
    %15 = arith.negf %14 : vector<8x128xf32>
    %16 = math.exp %15 : vector<8x128xf32>
    %cst_14 = arith.constant 1.000000e+00 : f32
    %17 = vector.broadcast %cst_14 : f32 to vector<8x128xf32>
    %18 = arith.addf %17, %16 : vector<8x128xf32>
    %19 = arith.divf %17, %18 : vector<8x128xf32>
    %20 = vector.extract_strided_slice %13 {offsets = [0, 128], sizes = [8, 128], strides = [1, 1]} : vector<8x512xf32> to vector<8x128xf32>
    %21 = arith.negf %20 : vector<8x128xf32>
    %22 = math.exp %21 : vector<8x128xf32>
    %cst_15 = arith.constant 1.000000e+00 : f32
    %23 = vector.broadcast %cst_15 : f32 to vector<8x128xf32>
    %24 = arith.addf %23, %22 : vector<8x128xf32>
    %25 = arith.divf %23, %24 : vector<8x128xf32>
    %26 = vector.extract_strided_slice %13 {offsets = [0, 256], sizes = [8, 128], strides = [1, 1]} : vector<8x512xf32> to vector<8x128xf32>
    %27 = math.tanh %26 : vector<8x128xf32>
    %28 = vector.extract_strided_slice %13 {offsets = [0, 384], sizes = [8, 128], strides = [1, 1]} : vector<8x512xf32> to vector<8x128xf32>
    %29 = arith.negf %28 : vector<8x128xf32>
    %30 = math.exp %29 : vector<8x128xf32>
    %cst_16 = arith.constant 1.000000e+00 : f32
    %31 = vector.broadcast %cst_16 : f32 to vector<8x128xf32>
    %32 = arith.addf %31, %30 : vector<8x128xf32>
    %33 = arith.divf %31, %32 : vector<8x128xf32>
    %34 = arith.mulf %25, %8 : vector<8x128xf32>
    %35 = arith.mulf %19, %27 : vector<8x128xf32>
    %36 = arith.addf %34, %35 : vector<8x128xf32>
    %37 = math.tanh %36 : vector<8x128xf32>
    %38 = arith.mulf %33, %37 : vector<8x128xf32>
    %c1_i32 = arith.constant 1 : i32
    %39 = arith.index_cast %c1_i32 : i32 to index
    %c0_17 = arith.constant 0 : index
    %c0_18 = arith.constant 0 : index
    %40 = vector.load %arg5[%39, %c0_17, %c0_18] : memref<8x8x512xf32, #tpu.memory_space<vmem>>, vector<1x8x512xf32>
    %41 = vector.shape_cast %40 : vector<1x8x512xf32> to vector<8x512xf32>
    %cst_19 = arith.constant dense<0.000000e+00> : vector<8x512xf32>
    %42 = tpu.matmul %38, %6, %cst_19 {dimension_numbers = #tpu.dot_dimension_numbers<[1], [0], [0], [1], [0, 0, 1, 1], [], []>} : vector<8x128xf32>, vector<128x512xf32>, vector<8x512xf32> -> vector<8x512xf32>
    %43 = arith.addf %41, %42 : vector<8x512xf32>
    %44 = vector.extract_strided_slice %43 {offsets = [0, 0], sizes = [8, 128], strides = [1, 1]} : vector<8x512xf32> to vector<8x128xf32>
    %45 = arith.negf %44 : vector<8x128xf32>
    %46 = math.exp %45 : vector<8x128xf32>
    %cst_20 = arith.constant 1.000000e+00 : f32
    %47 = vector.broadcast %cst_20 : f32 to vector<8x128xf32>
    %48 = arith.addf %47, %46 : vector<8x128xf32>
    %49 = arith.divf %47, %48 : vector<8x128xf32>
    %50 = vector.extract_strided_slice %43 {offsets = [0, 128], sizes = [8, 128], strides = [1, 1]} : vector<8x512xf32> to vector<8x128xf32>
    %51 = arith.negf %50 : vector<8x128xf32>
    %52 = math.exp %51 : vector<8x128xf32>
    %cst_21 = arith.constant 1.000000e+00 : f32
    %53 = vector.broadcast %cst_21 : f32 to vector<8x128xf32>
    %54 = arith.addf %53, %52 : vector<8x128xf32>
    %55 = arith.divf %53, %54 : vector<8x128xf32>
    %56 = vector.extract_strided_slice %43 {offsets = [0, 256], sizes = [8, 128], strides = [1, 1]} : vector<8x512xf32> to vector<8x128xf32>
    %57 = math.tanh %56 : vector<8x128xf32>
    %58 = vector.extract_strided_slice %43 {offsets = [0, 384], sizes = [8, 128], strides = [1, 1]} : vector<8x512xf32> to vector<8x128xf32>
    %59 = arith.negf %58 : vector<8x128xf32>
    %60 = math.exp %59 : vector<8x128xf32>
    %cst_22 = arith.constant 1.000000e+00 : f32
    %61 = vector.broadcast %cst_22 : f32 to vector<8x128xf32>
    %62 = arith.addf %61, %60 : vector<8x128xf32>
    %63 = arith.divf %61, %62 : vector<8x128xf32>
    %64 = arith.mulf %55, %36 : vector<8x128xf32>
    %65 = arith.mulf %49, %57 : vector<8x128xf32>
    %66 = arith.addf %64, %65 : vector<8x128xf32>
    %67 = math.tanh %66 : vector<8x128xf32>
    %68 = arith.mulf %63, %67 : vector<8x128xf32>
    %c2_i32 = arith.constant 2 : i32
    %69 = arith.index_cast %c2_i32 : i32 to index
    %c0_23 = arith.constant 0 : index
    %c0_24 = arith.constant 0 : index
    %70 = vector.load %arg5[%69, %c0_23, %c0_24] : memref<8x8x512xf32, #tpu.memory_space<vmem>>, vector<1x8x512xf32>
    %71 = vector.shape_cast %70 : vector<1x8x512xf32> to vector<8x512xf32>
    %cst_25 = arith.constant dense<0.000000e+00> : vector<8x512xf32>
    %72 = tpu.matmul %68, %6, %cst_25 {dimension_numbers = #tpu.dot_dimension_numbers<[1], [0], [0], [1], [0, 0, 1, 1], [], []>} : vector<8x128xf32>, vector<128x512xf32>, vector<8x512xf32> -> vector<8x512xf32>
    %73 = arith.addf %71, %72 : vector<8x512xf32>
    %74 = vector.extract_strided_slice %73 {offsets = [0, 0], sizes = [8, 128], strides = [1, 1]} : vector<8x512xf32> to vector<8x128xf32>
    %75 = arith.negf %74 : vector<8x128xf32>
    %76 = math.exp %75 : vector<8x128xf32>
    %cst_26 = arith.constant 1.000000e+00 : f32
    %77 = vector.broadcast %cst_26 : f32 to vector<8x128xf32>
    %78 = arith.addf %77, %76 : vector<8x128xf32>
    %79 = arith.divf %77, %78 : vector<8x128xf32>
    %80 = vector.extract_strided_slice %73 {offsets = [0, 128], sizes = [8, 128], strides = [1, 1]} : vector<8x512xf32> to vector<8x128xf32>
    %81 = arith.negf %80 : vector<8x128xf32>
    %82 = math.exp %81 : vector<8x128xf32>
    %cst_27 = arith.constant 1.000000e+00 : f32
    %83 = vector.broadcast %cst_27 : f32 to vector<8x128xf32>
    %84 = arith.addf %83, %82 : vector<8x128xf32>
    %85 = arith.divf %83, %84 : vector<8x128xf32>
    %86 = vector.extract_strided_slice %73 {offsets = [0, 256], sizes = [8, 128], strides = [1, 1]} : vector<8x512xf32> to vector<8x128xf32>
    %87 = math.tanh %86 : vector<8x128xf32>
    %88 = vector.extract_strided_slice %73 {offsets = [0, 384], sizes = [8, 128], strides = [1, 1]} : vector<8x512xf32> to vector<8x128xf32>
    %89 = arith.negf %88 : vector<8x128xf32>
    %90 = math.exp %89 : vector<8x128xf32>
    %cst_28 = arith.constant 1.000000e+00 : f32
    %91 = vector.broadcast %cst_28 : f32 to vector<8x128xf32>
    %92 = arith.addf %91, %90 : vector<8x128xf32>
    %93 = arith.divf %91, %92 : vector<8x128xf32>
    %94 = arith.mulf %85, %66 : vector<8x128xf32>
    %95 = arith.mulf %79, %87 : vector<8x128xf32>
    %96 = arith.addf %94, %95 : vector<8x128xf32>
    %97 = math.tanh %96 : vector<8x128xf32>
    %98 = arith.mulf %93, %97 : vector<8x128xf32>
    %c3_i32 = arith.constant 3 : i32
    %99 = arith.index_cast %c3_i32 : i32 to index
    %c0_29 = arith.constant 0 : index
    %c0_30 = arith.constant 0 : index
    %100 = vector.load %arg5[%99, %c0_29, %c0_30] : memref<8x8x512xf32, #tpu.memory_space<vmem>>, vector<1x8x512xf32>
    %101 = vector.shape_cast %100 : vector<1x8x512xf32> to vector<8x512xf32>
    %cst_31 = arith.constant dense<0.000000e+00> : vector<8x512xf32>
    %102 = tpu.matmul %98, %6, %cst_31 {dimension_numbers = #tpu.dot_dimension_numbers<[1], [0], [0], [1], [0, 0, 1, 1], [], []>} : vector<8x128xf32>, vector<128x512xf32>, vector<8x512xf32> -> vector<8x512xf32>
    %103 = arith.addf %101, %102 : vector<8x512xf32>
    %104 = vector.extract_strided_slice %103 {offsets = [0, 0], sizes = [8, 128], strides = [1, 1]} : vector<8x512xf32> to vector<8x128xf32>
    %105 = arith.negf %104 : vector<8x128xf32>
    %106 = math.exp %105 : vector<8x128xf32>
    %cst_32 = arith.constant 1.000000e+00 : f32
    %107 = vector.broadcast %cst_32 : f32 to vector<8x128xf32>
    %108 = arith.addf %107, %106 : vector<8x128xf32>
    %109 = arith.divf %107, %108 : vector<8x128xf32>
    %110 = vector.extract_strided_slice %103 {offsets = [0, 128], sizes = [8, 128], strides = [1, 1]} : vector<8x512xf32> to vector<8x128xf32>
    %111 = arith.negf %110 : vector<8x128xf32>
    %112 = math.exp %111 : vector<8x128xf32>
    %cst_33 = arith.constant 1.000000e+00 : f32
    %113 = vector.broadcast %cst_33 : f32 to vector<8x128xf32>
    %114 = arith.addf %113, %112 : vector<8x128xf32>
    %115 = arith.divf %113, %114 : vector<8x128xf32>
    %116 = vector.extract_strided_slice %103 {offsets = [0, 256], sizes = [8, 128], strides = [1, 1]} : vector<8x512xf32> to vector<8x128xf32>
    %117 = math.tanh %116 : vector<8x128xf32>
    %118 = vector.extract_strided_slice %103 {offsets = [0, 384], sizes = [8, 128], strides = [1, 1]} : vector<8x512xf32> to vector<8x128xf32>
    %119 = arith.negf %118 : vector<8x128xf32>
    %120 = math.exp %119 : vector<8x128xf32>
    %cst_34 = arith.constant 1.000000e+00 : f32
    %121 = vector.broadcast %cst_34 : f32 to vector<8x128xf32>
    %122 = arith.addf %121, %120 : vector<8x128xf32>
    %123 = arith.divf %121, %122 : vector<8x128xf32>
    %124 = arith.mulf %115, %96 : vector<8x128xf32>
    %125 = arith.mulf %109, %117 : vector<8x128xf32>
    %126 = arith.addf %124, %125 : vector<8x128xf32>
    %127 = math.tanh %126 : vector<8x128xf32>
    %128 = arith.mulf %123, %127 : vector<8x128xf32>
    %c4_i32 = arith.constant 4 : i32
    %129 = arith.index_cast %c4_i32 : i32 to index
    %c0_35 = arith.constant 0 : index
    %c0_36 = arith.constant 0 : index
    %130 = vector.load %arg5[%129, %c0_35, %c0_36] : memref<8x8x512xf32, #tpu.memory_space<vmem>>, vector<1x8x512xf32>
    %131 = vector.shape_cast %130 : vector<1x8x512xf32> to vector<8x512xf32>
    %cst_37 = arith.constant dense<0.000000e+00> : vector<8x512xf32>
    %132 = tpu.matmul %128, %6, %cst_37 {dimension_numbers = #tpu.dot_dimension_numbers<[1], [0], [0], [1], [0, 0, 1, 1], [], []>} : vector<8x128xf32>, vector<128x512xf32>, vector<8x512xf32> -> vector<8x512xf32>
    %133 = arith.addf %131, %132 : vector<8x512xf32>
    %134 = vector.extract_strided_slice %133 {offsets = [0, 0], sizes = [8, 128], strides = [1, 1]} : vector<8x512xf32> to vector<8x128xf32>
    %135 = arith.negf %134 : vector<8x128xf32>
    %136 = math.exp %135 : vector<8x128xf32>
    %cst_38 = arith.constant 1.000000e+00 : f32
    %137 = vector.broadcast %cst_38 : f32 to vector<8x128xf32>
    %138 = arith.addf %137, %136 : vector<8x128xf32>
    %139 = arith.divf %137, %138 : vector<8x128xf32>
    %140 = vector.extract_strided_slice %133 {offsets = [0, 128], sizes = [8, 128], strides = [1, 1]} : vector<8x512xf32> to vector<8x128xf32>
    %141 = arith.negf %140 : vector<8x128xf32>
    %142 = math.exp %141 : vector<8x128xf32>
    %cst_39 = arith.constant 1.000000e+00 : f32
    %143 = vector.broadcast %cst_39 : f32 to vector<8x128xf32>
    %144 = arith.addf %143, %142 : vector<8x128xf32>
    %145 = arith.divf %143, %144 : vector<8x128xf32>
    %146 = vector.extract_strided_slice %133 {offsets = [0, 256], sizes = [8, 128], strides = [1, 1]} : vector<8x512xf32> to vector<8x128xf32>
    %147 = math.tanh %146 : vector<8x128xf32>
    %148 = vector.extract_strided_slice %133 {offsets = [0, 384], sizes = [8, 128], strides = [1, 1]} : vector<8x512xf32> to vector<8x128xf32>
    %149 = arith.negf %148 : vector<8x128xf32>
    %150 = math.exp %149 : vector<8x128xf32>
    %cst_40 = arith.constant 1.000000e+00 : f32
    %151 = vector.broadcast %cst_40 : f32 to vector<8x128xf32>
    %152 = arith.addf %151, %150 : vector<8x128xf32>
    %153 = arith.divf %151, %152 : vector<8x128xf32>
    %154 = arith.mulf %145, %126 : vector<8x128xf32>
    %155 = arith.mulf %139, %147 : vector<8x128xf32>
    %156 = arith.addf %154, %155 : vector<8x128xf32>
    %157 = math.tanh %156 : vector<8x128xf32>
    %158 = arith.mulf %153, %157 : vector<8x128xf32>
    %c5_i32 = arith.constant 5 : i32
    %159 = arith.index_cast %c5_i32 : i32 to index
    %c0_41 = arith.constant 0 : index
    %c0_42 = arith.constant 0 : index
    %160 = vector.load %arg5[%159, %c0_41, %c0_42] : memref<8x8x512xf32, #tpu.memory_space<vmem>>, vector<1x8x512xf32>
    %161 = vector.shape_cast %160 : vector<1x8x512xf32> to vector<8x512xf32>
    %cst_43 = arith.constant dense<0.000000e+00> : vector<8x512xf32>
    %162 = tpu.matmul %158, %6, %cst_43 {dimension_numbers = #tpu.dot_dimension_numbers<[1], [0], [0], [1], [0, 0, 1, 1], [], []>} : vector<8x128xf32>, vector<128x512xf32>, vector<8x512xf32> -> vector<8x512xf32>
    %163 = arith.addf %161, %162 : vector<8x512xf32>
    %164 = vector.extract_strided_slice %163 {offsets = [0, 0], sizes = [8, 128], strides = [1, 1]} : vector<8x512xf32> to vector<8x128xf32>
    %165 = arith.negf %164 : vector<8x128xf32>
    %166 = math.exp %165 : vector<8x128xf32>
    %cst_44 = arith.constant 1.000000e+00 : f32
    %167 = vector.broadcast %cst_44 : f32 to vector<8x128xf32>
    %168 = arith.addf %167, %166 : vector<8x128xf32>
    %169 = arith.divf %167, %168 : vector<8x128xf32>
    %170 = vector.extract_strided_slice %163 {offsets = [0, 128], sizes = [8, 128], strides = [1, 1]} : vector<8x512xf32> to vector<8x128xf32>
    %171 = arith.negf %170 : vector<8x128xf32>
    %172 = math.exp %171 : vector<8x128xf32>
    %cst_45 = arith.constant 1.000000e+00 : f32
    %173 = vector.broadcast %cst_45 : f32 to vector<8x128xf32>
    %174 = arith.addf %173, %172 : vector<8x128xf32>
    %175 = arith.divf %173, %174 : vector<8x128xf32>
    %176 = vector.extract_strided_slice %163 {offsets = [0, 256], sizes = [8, 128], strides = [1, 1]} : vector<8x512xf32> to vector<8x128xf32>
    %177 = math.tanh %176 : vector<8x128xf32>
    %178 = vector.extract_strided_slice %163 {offsets = [0, 384], sizes = [8, 128], strides = [1, 1]} : vector<8x512xf32> to vector<8x128xf32>
    %179 = arith.negf %178 : vector<8x128xf32>
    %180 = math.exp %179 : vector<8x128xf32>
    %cst_46 = arith.constant 1.000000e+00 : f32
    %181 = vector.broadcast %cst_46 : f32 to vector<8x128xf32>
    %182 = arith.addf %181, %180 : vector<8x128xf32>
    %183 = arith.divf %181, %182 : vector<8x128xf32>
    %184 = arith.mulf %175, %156 : vector<8x128xf32>
    %185 = arith.mulf %169, %177 : vector<8x128xf32>
    %186 = arith.addf %184, %185 : vector<8x128xf32>
    %187 = math.tanh %186 : vector<8x128xf32>
    %188 = arith.mulf %183, %187 : vector<8x128xf32>
    %c6_i32 = arith.constant 6 : i32
    %189 = arith.index_cast %c6_i32 : i32 to index
    %c0_47 = arith.constant 0 : index
    %c0_48 = arith.constant 0 : index
    %190 = vector.load %arg5[%189, %c0_47, %c0_48] : memref<8x8x512xf32, #tpu.memory_space<vmem>>, vector<1x8x512xf32>
    %191 = vector.shape_cast %190 : vector<1x8x512xf32> to vector<8x512xf32>
    %cst_49 = arith.constant dense<0.000000e+00> : vector<8x512xf32>
    %192 = tpu.matmul %188, %6, %cst_49 {dimension_numbers = #tpu.dot_dimension_numbers<[1], [0], [0], [1], [0, 0, 1, 1], [], []>} : vector<8x128xf32>, vector<128x512xf32>, vector<8x512xf32> -> vector<8x512xf32>
    %193 = arith.addf %191, %192 : vector<8x512xf32>
    %194 = vector.extract_strided_slice %193 {offsets = [0, 0], sizes = [8, 128], strides = [1, 1]} : vector<8x512xf32> to vector<8x128xf32>
    %195 = arith.negf %194 : vector<8x128xf32>
    %196 = math.exp %195 : vector<8x128xf32>
    %cst_50 = arith.constant 1.000000e+00 : f32
    %197 = vector.broadcast %cst_50 : f32 to vector<8x128xf32>
    %198 = arith.addf %197, %196 : vector<8x128xf32>
    %199 = arith.divf %197, %198 : vector<8x128xf32>
    %200 = vector.extract_strided_slice %193 {offsets = [0, 128], sizes = [8, 128], strides = [1, 1]} : vector<8x512xf32> to vector<8x128xf32>
    %201 = arith.negf %200 : vector<8x128xf32>
    %202 = math.exp %201 : vector<8x128xf32>
    %cst_51 = arith.constant 1.000000e+00 : f32
    %203 = vector.broadcast %cst_51 : f32 to vector<8x128xf32>
    %204 = arith.addf %203, %202 : vector<8x128xf32>
    %205 = arith.divf %203, %204 : vector<8x128xf32>
    %206 = vector.extract_strided_slice %193 {offsets = [0, 256], sizes = [8, 128], strides = [1, 1]} : vector<8x512xf32> to vector<8x128xf32>
    %207 = math.tanh %206 : vector<8x128xf32>
    %208 = vector.extract_strided_slice %193 {offsets = [0, 384], sizes = [8, 128], strides = [1, 1]} : vector<8x512xf32> to vector<8x128xf32>
    %209 = arith.negf %208 : vector<8x128xf32>
    %210 = math.exp %209 : vector<8x128xf32>
    %cst_52 = arith.constant 1.000000e+00 : f32
    %211 = vector.broadcast %cst_52 : f32 to vector<8x128xf32>
    %212 = arith.addf %211, %210 : vector<8x128xf32>
    %213 = arith.divf %211, %212 : vector<8x128xf32>
    %214 = arith.mulf %205, %186 : vector<8x128xf32>
    %215 = arith.mulf %199, %207 : vector<8x128xf32>
    %216 = arith.addf %214, %215 : vector<8x128xf32>
    %217 = math.tanh %216 : vector<8x128xf32>
    %218 = arith.mulf %213, %217 : vector<8x128xf32>
    %c7_i32 = arith.constant 7 : i32
    %219 = arith.index_cast %c7_i32 : i32 to index
    %c0_53 = arith.constant 0 : index
    %c0_54 = arith.constant 0 : index
    %220 = vector.load %arg5[%219, %c0_53, %c0_54] : memref<8x8x512xf32, #tpu.memory_space<vmem>>, vector<1x8x512xf32>
    %221 = vector.shape_cast %220 : vector<1x8x512xf32> to vector<8x512xf32>
    %cst_55 = arith.constant dense<0.000000e+00> : vector<8x512xf32>
    %222 = tpu.matmul %218, %6, %cst_55 {dimension_numbers = #tpu.dot_dimension_numbers<[1], [0], [0], [1], [0, 0, 1, 1], [], []>} : vector<8x128xf32>, vector<128x512xf32>, vector<8x512xf32> -> vector<8x512xf32>
    %223 = arith.addf %221, %222 : vector<8x512xf32>
    %224 = vector.extract_strided_slice %223 {offsets = [0, 0], sizes = [8, 128], strides = [1, 1]} : vector<8x512xf32> to vector<8x128xf32>
    %225 = arith.negf %224 : vector<8x128xf32>
    %226 = math.exp %225 : vector<8x128xf32>
    %cst_56 = arith.constant 1.000000e+00 : f32
    %227 = vector.broadcast %cst_56 : f32 to vector<8x128xf32>
    %228 = arith.addf %227, %226 : vector<8x128xf32>
    %229 = arith.divf %227, %228 : vector<8x128xf32>
    %230 = vector.extract_strided_slice %223 {offsets = [0, 128], sizes = [8, 128], strides = [1, 1]} : vector<8x512xf32> to vector<8x128xf32>
    %231 = arith.negf %230 : vector<8x128xf32>
    %232 = math.exp %231 : vector<8x128xf32>
    %cst_57 = arith.constant 1.000000e+00 : f32
    %233 = vector.broadcast %cst_57 : f32 to vector<8x128xf32>
    %234 = arith.addf %233, %232 : vector<8x128xf32>
    %235 = arith.divf %233, %234 : vector<8x128xf32>
    %236 = vector.extract_strided_slice %223 {offsets = [0, 256], sizes = [8, 128], strides = [1, 1]} : vector<8x512xf32> to vector<8x128xf32>
    %237 = math.tanh %236 : vector<8x128xf32>
    %238 = vector.extract_strided_slice %223 {offsets = [0, 384], sizes = [8, 128], strides = [1, 1]} : vector<8x512xf32> to vector<8x128xf32>
    %239 = arith.negf %238 : vector<8x128xf32>
    %240 = math.exp %239 : vector<8x128xf32>
    %cst_58 = arith.constant 1.000000e+00 : f32
    %241 = vector.broadcast %cst_58 : f32 to vector<8x128xf32>
    %242 = arith.addf %241, %240 : vector<8x128xf32>
    %243 = arith.divf %241, %242 : vector<8x128xf32>
    %244 = arith.mulf %235, %216 : vector<8x128xf32>
    %245 = arith.mulf %229, %237 : vector<8x128xf32>
    %246 = arith.addf %244, %245 : vector<8x128xf32>
    %247 = math.tanh %246 : vector<8x128xf32>
    %248 = arith.mulf %243, %247 : vector<8x128xf32>
    %c8_i32 = arith.constant 8 : i32
    %c0_59 = arith.constant 0 : index
    %c0_60 = arith.constant 0 : index
    %249 = vector.load %arg4[%c0_59, %c0_60] : memref<8x128xf32, #tpu.memory_space<vmem>>, vector<8x128xf32>
    tpu.vector_store %arg4[%c0_59, %c0_60], %248 {strides = array<i32>} : memref<8x128xf32, #tpu.memory_space<vmem>>, vector<8x128xf32>,
    return
  }
  func.func @transform_0(%arg0: i32) -> (i32, i32, i32) {
    %c0_i32 = arith.constant 0 : i32
    %c0_i32_0 = arith.constant 0 : i32
    %c0_i32_1 = arith.constant 0 : i32
    %c0_i32_2 = arith.constant 0 : i32
    return %c0_i32, %c0_i32_0, %c0_i32_1 : i32, i32, i32
  }
  func.func @transform_1(%arg0: i32) -> (i32, i32) {
    %c0_i32 = arith.constant 0 : i32
    %c0_i32_0 = arith.constant 0 : i32
    %c0_i32_1 = arith.constant 0 : i32
    return %c0_i32, %c0_i32_0 : i32, i32
  }
  func.func @transform_2(%arg0: i32) -> (i32, i32) {
    %c0_i32 = arith.constant 0 : i32
    %c0_i32_0 = arith.constant 0 : i32
    %c0_i32_1 = arith.constant 0 : i32
    return %c0_i32, %c0_i32_0 : i32, i32
  }
  func.func @transform_3(%arg0: i32) -> (i32, i32) {
    %c0_i32 = arith.constant 0 : i32
    %c0_i32_0 = arith.constant 0 : i32
    %c0_i32_1 = arith.constant 0 : i32
    return %c0_i32, %c0_i32_0 : i32, i32
  }
}

module attributes {stable_mosaic.version = 11 : i64} {
  func.func @head_kernel(%arg0: i32, %arg1: memref<8x128xf32, #tpu.memory_space<vmem>>, %arg2: memref<128x2560xbf16, #tpu.memory_space<vmem>>, %arg3: memref<1x2560xf32, #tpu.memory_space<vmem>>, %arg4: memref<4x8x2560xf32, #tpu.memory_space<vmem>>) attributes {dimension_semantics = [#tpu.dimension_semantics<arbitrary>], iteration_bounds = array<i64: 4>, scalar_prefetch = 0 : i64, scratch_operands = 0 : i64, tpu.core_type = #tpu.core_type<tc>, window_params = [{pipeline_mode = #tpu.pipeline_mode<synchronous>, transform_indices = @transform_0, window_bounds = array<i64: 8, 128>}, {transform_indices = @transform_1, window_bounds = array<i64: 128, 2560>}, {transform_indices = @transform_2, window_bounds = array<i64: 1, 2560>}, {pipeline_mode = #tpu.pipeline_mode<synchronous>, transform_indices = @transform_3, window_bounds = array<i64: 4, 8, 2560>}]} {
    %c0 = arith.constant 0 : index
    %c0_0 = arith.constant 0 : index
    %0 = vector.load %arg1[%c0, %c0_0] : memref<8x128xf32, #tpu.memory_space<vmem>>, vector<8x128xf32>
    %1 = arith.truncf %0 : vector<8x128xf32> to vector<8x128xbf16>
    %c0_1 = arith.constant 0 : index
    %c0_2 = arith.constant 0 : index
    %2 = vector.load %arg2[%c0_1, %c0_2] : memref<128x2560xbf16, #tpu.memory_space<vmem>>, vector<128x2560xbf16>
    %cst = arith.constant dense<0.000000e+00> : vector<8x2560xf32>
    %3 = tpu.matmul %1, %2, %cst {dimension_numbers = #tpu.dot_dimension_numbers<[1], [0], [0], [1], [0, 0, 1, 1], [], []>} : vector<8x128xbf16>, vector<128x2560xbf16>, vector<8x2560xf32> -> vector<8x2560xf32>
    %c0_3 = arith.constant 0 : index
    %c0_4 = arith.constant 0 : index
    %4 = vector.load %arg3[%c0_3, %c0_4] : memref<1x2560xf32, #tpu.memory_space<vmem>>, vector<1x2560xf32>
    %5 = vector.broadcast %4 : vector<1x2560xf32> to vector<8x2560xf32>
    %6 = arith.addf %3, %5 : vector<8x2560xf32>
    %7 = arith.index_cast %arg0 : i32 to index
    %c0_5 = arith.constant 0 : index
    %c0_6 = arith.constant 0 : index
    %8 = vector.load %arg4[%7, %c0_5, %c0_6] : memref<4x8x2560xf32, #tpu.memory_space<vmem>>, vector<1x8x2560xf32>
    %9 = vector.shape_cast %8 : vector<1x8x2560xf32> to vector<8x2560xf32>
    %10 = vector.shape_cast %6 : vector<8x2560xf32> to vector<1x8x2560xf32>
    tpu.vector_store %arg4[%7, %c0_5, %c0_6], %10 {strides = array<i32>} : memref<4x8x2560xf32, #tpu.memory_space<vmem>>, vector<1x8x2560xf32>,
    %c3_i32 = arith.constant 3 : i32
    %11 = arith.cmpi eq, %arg0, %c3_i32 : i32
    %12 = arith.extui %11 : i1 to i32
    %c0_i32 = arith.constant 0 : i32
    %13 = arith.cmpi ne, %12, %c0_i32 : i32
    scf.if %13 {
      %c0_7 = arith.constant 0 : index
      %c0_8 = arith.constant 0 : index
      %c0_9 = arith.constant 0 : index
      %14 = vector.load %arg4[%c0_7, %c0_8, %c0_9] : memref<4x8x2560xf32, #tpu.memory_space<vmem>>, vector<4x8x2560xf32>
      %cst_10 = arith.constant dense<0xFF800000> : vector<4x8xf32>
      %15 = vector.multi_reduction <maximumf>, %14, %cst_10 [2] : vector<4x8x2560xf32> to vector<4x8xf32>
      %16 = vector.shape_cast %15 : vector<4x8xf32> to vector<4x8x1xf32>
      %cst_11 = arith.constant dense<0xFF800000> : vector<8x1xf32>
      %17 = vector.multi_reduction <maximumf>, %16, %cst_11 [0] : vector<4x8x1xf32> to vector<8x1xf32>
      %18 = vector.shape_cast %17 : vector<8x1xf32> to vector<1x8x1xf32>
      %19 = vector.broadcast %18 : vector<1x8x1xf32> to vector<4x8x2560xf32>
      %20 = arith.subf %14, %19 : vector<4x8x2560xf32>
      %21 = math.exp %20 : vector<4x8x2560xf32>
      %cst_12 = arith.constant dense<0.000000e+00> : vector<4x8xf32>
      %22 = vector.multi_reduction <add>, %21, %cst_12 [2] : vector<4x8x2560xf32> to vector<4x8xf32>
      %23 = vector.shape_cast %22 : vector<4x8xf32> to vector<4x8x1xf32>
      %cst_13 = arith.constant dense<0.000000e+00> : vector<8x1xf32>
      %24 = vector.multi_reduction <add>, %23, %cst_13 [0] : vector<4x8x1xf32> to vector<8x1xf32>
      %25 = vector.shape_cast %24 : vector<8x1xf32> to vector<1x8x1xf32>
      %cst_14 = arith.constant 1.000000e+00 : f32
      %26 = vector.broadcast %cst_14 : f32 to vector<1x8x1xf32>
      %27 = arith.divf %26, %25 : vector<1x8x1xf32>
      %28 = vector.broadcast %27 : vector<1x8x1xf32> to vector<4x8x2560xf32>
      %29 = arith.mulf %21, %28 : vector<4x8x2560xf32>
      %c0_15 = arith.constant 0 : index
      %c0_16 = arith.constant 0 : index
      %c0_17 = arith.constant 0 : index
      %30 = vector.load %arg4[%c0_15, %c0_16, %c0_17] : memref<4x8x2560xf32, #tpu.memory_space<vmem>>, vector<4x8x2560xf32>
      tpu.vector_store %arg4[%c0_15, %c0_16, %c0_17], %29 {strides = array<i32>} : memref<4x8x2560xf32, #tpu.memory_space<vmem>>, vector<4x8x2560xf32>,
    } else {
    }
    return
  }
  func.func @transform_0(%arg0: i32) -> (i32, i32) {
    %c0_i32 = arith.constant 0 : i32
    %c0_i32_0 = arith.constant 0 : i32
    %c0_i32_1 = arith.constant 0 : i32
    return %c0_i32, %c0_i32_0 : i32, i32
  }
  func.func @transform_1(%arg0: i32) -> (i32, i32) {
    %c0_i32 = arith.constant 0 : i32
    %c0_i32_0 = arith.constant 0 : i32
    return %c0_i32, %arg0 : i32, i32
  }
  func.func @transform_2(%arg0: i32) -> (i32, i32) {
    %c0_i32 = arith.constant 0 : i32
    %c0_i32_0 = arith.constant 0 : i32
    return %c0_i32, %arg0 : i32, i32
  }
  func.func @transform_3(%arg0: i32) -> (i32, i32, i32) {
    %c0_i32 = arith.constant 0 : i32
    %c0_i32_0 = arith.constant 0 : i32
    %c0_i32_1 = arith.constant 0 : i32
    %c0_i32_2 = arith.constant 0 : i32
    return %c0_i32, %c0_i32_0, %c0_i32_1 : i32, i32, i32
  }
}

</mosaic_0001>

<bundles_post_ra>
// kernel: lstm_model_forward.2
= control target key start
LH: loop header
LB: loop body
LE: loop exit
PB: predicated region body
PF: predicated region fallthrough
CT: control target
= control target key end

     0   :  { %8 = vsyncpa [#allocation4], 0  ;;  %s3075_s0 = inlined_call_operand.vmem [shape: f32[8,8,128], index: 0, kind: input, shape index: {}]   ;;  %s3076_s1 = inlined_call_operand.hbm [shape: f32[128,512], index: 1, kind: input, shape index: {}]   ;;  %s3077_s2 = inlined_call_operand.hbm [shape: f32[128,512], index: 2, kind: input, shape index: {}]   ;;  %s3078_s3 = inlined_call_operand.vmem [shape: f32[8,128], index: 3, kind: output, shape index: {}]  }
   0x1   :  { %9 = vsyncpa [#allocation6], 0  ;;  %s2107_s12 = smov [#allocation3]  }
   0x2   :  { %s17_s13 = sshll.u32 %s2107_s12, 4  ;;  %s18_s13 = int_to_ptr.vmem [resolvable:$true] %s17_s13 }
   0x3   :  { %s2071_s14 = scalar_lea.vmem %s18_s13, 8192  ;;  %p2076_p1 = scmp.lt.s32.totalorder %s18_s13, %s18_s13 }
   0x4   :  { %p2072_p0 = scmp.ne.s32.totalorder %s18_s13, %s2071_s14  ;;  %p2077_p2 = scmp.lt.s32.totalorder %s2071_s14, %s2071_s14 }
   0x6   :  { %p2078_p3 = por %p2077_p2, %p2076_p1 }
   0x8   :  { %p2079_p4 = pnand %p2078_p3, %p2072_p0 }
   0xa   :  { %2082 = shalt.err (!%p2079_p4)
}
   0xb   :  { %s2108_s15 = smov 512   ;;  %s2109_s16 = smov 32  }
   0xc   :  { %23 = dma.hbm_to_vmem [thread:$0]  %s3076_s1, 8192, %s18_s13, [#allocation4], %s2108_s15, %s2108_s15, %s2109_s16  }
   0xd   :  { %s2110_s19 = smov [#allocation5]  }
   0xe   :  { %s29_s20 = sshll.u32 %s2110_s19, 4  ;;  %s30_s20 = int_to_ptr.vmem [resolvable:$true] %s29_s20 }
   0xf   :  { %s2091_s21 = scalar_lea.vmem %s30_s20, 8192  ;;  %p2096_p6 = scmp.lt.s32.totalorder %s30_s20, %s30_s20 }
  0x10   :  { %p2092_p5 = scmp.ne.s32.totalorder %s30_s20, %s2091_s21  ;;  %p2097_p7 = scmp.lt.s32.totalorder %s2091_s21, %s2091_s21 }
  0x12   :  { %p2098_p8 = por %p2097_p7, %p2096_p6 }
  0x14   :  { %p2099_p9 = pnand %p2098_p8, %p2092_p5 }
  0x16   :  { %2102 = shalt.err (!%p2099_p9)
}
  0x17   :  { %35 = dma.hbm_to_vmem [thread:$0]  %s3077_s2, 8192, %s30_s20, [#allocation6], %s2108_s15, %s2108_s15, %s2109_s16  }
  0x18   :  { %2103 = dma.done.wait [#allocation4], 8192  }
  0x19   :  { %2104 = vsyncadd [#allocation4], 4294959104 }
  0x1a   :  { %2105 = dma.done.wait [#allocation6], 8192  }
  0x1b   :  { %2106 = vsyncadd [#allocation6], 4294959104  ;;  %v3079_v0 = vmov 0.0   ;;  %v111_v1 = vld [vmem:[#allocation3 + $0x1e8] sm:$0xff]  ;;  %v113_v2 = vld [vmem:[#allocation3 + $0x1f8] sm:$0xff] }
  0x1c   :  { %178 = vmatprep.mubr.f32.mxu0 %v3079_v0  ;;  %291 = vmatprep.mubr.f32.mxu1 %v3079_v0  ;;  %v110_v3 = vld [vmem:[#allocation3 + $0x1e0] sm:$0xff]  ;;  %v112_v4 = vld [vmem:[#allocation3 + $0x1f0] sm:$0xff]  ;;  %v107_v5 = vld [vmem:[#allocation3 + $0x1c8] sm:$0xff] }
  0x1d   :  { %114 = vmatprep.subr.mxu0 %v111_v1  ;;  %227 = vmatprep.subr.mxu1 %v113_v2  ;;  %v109_v6 = vld [vmem:[#allocation3 + $0x1d8] sm:$0xff]  ;;  %v106_v7 = vld [vmem:[#allocation3 + $0x1c0] sm:$0xff]  ;;  %v108_v8 = vld [vmem:[#allocation3 + $0x1d0] sm:$0xff] }
  0x1e   :  { %115 = vmatpush1.msra.mxu0 %v110_v3  ;;  %228 = vmatpush1.msra.mxu1 %v112_v4  ;;  %v103_v9 = vld [vmem:[#allocation3 + $0x1a8] sm:$0xff]  ;;  %v105_v10 = vld [vmem:[#allocation3 + $0x1b8] sm:$0xff]  ;;  %v102_v11 = vld [vmem:[#allocation3 + $0x1a0] sm:$0xff] }
  0x1f   :  { %116 = vmatprep.subr.mxu0 %v107_v5  ;;  %229 = vmatprep.subr.mxu1 %v109_v6  ;;  %v104_v12 = vld [vmem:[#allocation3 + $0x1b0] sm:$0xff]  ;;  %v99_v13 = vld [vmem:[#allocation3 + $0x188] sm:$0xff]  ;;  %v101_v14 = vld [vmem:[#allocation3 + $0x198] sm:$0xff] }
  0x20   :  { %117 = vmatpush1.msra.mxu0 %v106_v7  ;;  %230 = vmatpush1.msra.mxu1 %v108_v8  ;;  %v98_v15 = vld [vmem:[#allocation3 + $0x180] sm:$0xff]  ;;  %v100_v16 = vld [vmem:[#allocation3 + $0x190] sm:$0xff]  ;;  %v95_v17 = vld [vmem:[#allocation3 + $0x168] sm:$0xff] }
  0x21   :  { %118 = vmatprep.subr.mxu0 %v103_v9  ;;  %231 = vmatprep.subr.mxu1 %v105_v10  ;;  %v97_v18 = vld [vmem:[#allocation3 + $0x178] sm:$0xff]  ;;  %v94_v19 = vld [vmem:[#allocation3 + $0x160] sm:$0xff]  ;;  %v96_v20 = vld [vmem:[#allocation3 + $0x170] sm:$0xff] }
  0x22   :  { %119 = vmatpush1.msra.mxu0 %v102_v11  ;;  %232 = vmatpush1.msra.mxu1 %v104_v12  ;;  %v91_v21 = vld [vmem:[#allocation3 + $0x148] sm:$0xff]  ;;  %v93_v22 = vld [vmem:[#allocation3 + $0x158] sm:$0xff]  ;;  %v90_v23 = vld [vmem:[#allocation3 + $0x140] sm:$0xff] }
  0x23   :  { %120 = vmatprep.subr.mxu0 %v99_v13  ;;  %233 = vmatprep.subr.mxu1 %v101_v14  ;;  %v92_v24 = vld [vmem:[#allocation3 + $0x150] sm:$0xff]  ;;  %v87_v25 = vld [vmem:[#allocation3 + $0x128] sm:$0xff]  ;;  %v89_v26 = vld [vmem:[#allocation3 + $0x138] sm:$0xff] }
  0x24   :  { %121 = vmatpush1.msra.mxu0 %v98_v15  ;;  %234 = vmatpush1.msra.mxu1 %v100_v16  ;;  %v86_v27 = vld [vmem:[#allocation3 + $0x120] sm:$0xff]  ;;  %v88_v28 = vld [vmem:[#allocation3 + $0x130] sm:$0xff]  ;;  %v83_v29 = vld [vmem:[#allocation3 + $0x108] sm:$0xff] }
  0x25   :  { %122 = vmatprep.subr.mxu0 %v95_v17  ;;  %235 = vmatprep.subr.mxu1 %v97_v18  ;;  %v85_v30 = vld [vmem:[#allocation3 + $0x118] sm:$0xff]  ;;  %v82_v31 = vld [vmem:[#allocation3 + $0x100] sm:$0xff]  ;;  %v84_v32 = vld [vmem:[#allocation3 + $0x110] sm:$0xff] }
  0x26   :  { %123 = vmatpush1.msra.mxu0 %v94_v19  ;;  %236 = vmatpush1.msra.mxu1 %v96_v20  ;;  %v79_v33 = vld [vmem:[#allocation3 + $0xe8] sm:$0xff]  ;;  %v81_v34 = vld [vmem:[#allocation3 + $0xf8] sm:$0xff]  ;;  %v78_v35 = vld [vmem:[#allocation3 + $0xe0] sm:$0xff] }
  0x27   :  { %124 = vmatprep.subr.mxu0 %v91_v21  ;;  %237 = vmatprep.subr.mxu1 %v93_v22  ;;  %v80_v36 = vld [vmem:[#allocation3 + $0xf0] sm:$0xff]  ;;  %v75_v37 = vld [vmem:[#allocation3 + $0xc8] sm:$0xff]  ;;  %v77_v38 = vld [vmem:[#allocation3 + $0xd8] sm:$0xff] }
  0x28   :  { %125 = vmatpush1.msra.mxu0 %v90_v23  ;;  %238 = vmatpush1.msra.mxu1 %v92_v24  ;;  %v74_v39 = vld [vmem:[#allocation3 + $0xc0] sm:$0xff]  ;;  %v76_v40 = vld [vmem:[#allocation3 + $0xd0] sm:$0xff]  ;;  %v71_v41 = vld [vmem:[#allocation3 + $0xa8] sm:$0xff] }
  0x29   :  { %126 = vmatprep.subr.mxu0 %v87_v25  ;;  %239 = vmatprep.subr.mxu1 %v89_v26  ;;  %v73_v42 = vld [vmem:[#allocation3 + $0xb8] sm:$0xff]  ;;  %v70_v43 = vld [vmem:[#allocation3 + $0xa0] sm:$0xff]  ;;  %v72_v44 = vld [vmem:[#allocation3 + $0xb0] sm:$0xff] }
  0x2a   :  { %127 = vmatpush1.msra.mxu0 %v86_v27  ;;  %240 = vmatpush1.msra.mxu1 %v88_v28  ;;  %v67_v45 = vld [vmem:[#allocation3 + $0x88] sm:$0xff]  ;;  %v69_v46 = vld [vmem:[#allocation3 + $0x98] sm:$0xff]  ;;  %v66_v47 = vld [vmem:[#allocation3 + $0x80] sm:$0xff] }
  0x2b   :  { %128 = vmatprep.subr.mxu0 %v83_v29  ;;  %241 = vmatprep.subr.mxu1 %v85_v30  ;;  %v68_v48 = vld [vmem:[#allocation3 + $0x90] sm:$0xff]  ;;  %v63_v49 = vld [vmem:[#allocation3 + $0x68] sm:$0xff]  ;;  %v65_v50 = vld [vmem:[#allocation3 + $0x78] sm:$0xff] }
  0x2c   :  { %129 = vmatpush1.msra.mxu0 %v82_v31  ;;  %242 = vmatpush1.msra.mxu1 %v84_v32  ;;  %v62_v51 = vld [vmem:[#allocation3 + $0x60] sm:$0xff]  ;;  %v64_v52 = vld [vmem:[#allocation3 + $0x70] sm:$0xff]  ;;  %v59_v53 = vld [vmem:[#allocation3 + $0x48] sm:$0xff] }
  0x2d   :  { %130 = vmatprep.subr.mxu0 %v79_v33  ;;  %243 = vmatprep.subr.mxu1 %v81_v34  ;;  %v61_v54 = vld [vmem:[#allocation3 + $0x58] sm:$0xff]  ;;  %v58_v55 = vld [vmem:[#allocation3 + $0x40] sm:$0xff]  ;;  %v60_v56 = vld [vmem:[#allocation3 + $0x50] sm:$0xff] }
  0x2e   :  { %131 = vmatpush1.msra.mxu0 %v78_v35  ;;  %244 = vmatpush1.msra.mxu1 %v80_v36  ;;  %v55_v57 = vld [vmem:[#allocation3 + $0x28] sm:$0xff]  ;;  %v57_v58 = vld [vmem:[#allocation3 + $0x38] sm:$0xff]  ;;  %v54_v59 = vld [vmem:[#allocation3 + $0x20] sm:$0xff] }
  0x2f   :  { %132 = vmatprep.subr.mxu0 %v75_v37  ;;  %245 = vmatprep.subr.mxu1 %v77_v38  ;;  %v56_v60 = vld [vmem:[#allocation3 + $0x30] sm:$0xff]  ;;  %v51_v61 = vld [vmem:[#allocation3 + $0x8] sm:$0xff]  ;;  %v53_v62 = vld [vmem:[#allocation3 + $0x18] sm:$0xff] }
  0x30   :  { %133 = vmatpush1.msra.mxu0 %v74_v39  ;;  %246 = vmatpush1.msra.mxu1 %v76_v40  ;;  %v50_v63 = vld [vmem:[#allocation3] sm:$0xff]  ;;  %v52_v1 = vld [vmem:[#allocation3 + $0x10] sm:$0xff]  ;;  %v2143_v3 = vld [vmem:[#allocation5 + $0x1e8] sm:$0xff] }
  0x31   :  { %134 = vmatprep.subr.mxu0 %v71_v41  ;;  %247 = vmatprep.subr.mxu1 %v73_v42  ;;  %v42_v2 = vld [vmem:[%s3075_s0] sm:$0xff]  ;;  %3162 = vst [vmem:[#allocation9_spill] sm:$0xff] %v2143_v3  ;;  %v2145_v4 = vld [vmem:[#allocation5 + $0x1f8] sm:$0xff]  ;;  %v2149_v6 = vld [vmem:[#allocation5 + $0x1f0] sm:$0xff] }
  0x32   :  { %135 = vmatpush1.msra.mxu0 %v70_v43  ;;  %248 = vmatpush1.msra.mxu1 %v72_v44  ;;  %3163 = vst [vmem:[#allocation10_spill] sm:$0xff] %v2145_v4  ;;  %v2147_v5 = vld [vmem:[#allocation5 + $0x1e0] sm:$0xff]  ;;  %v2151_v7 = vld [vmem:[#allocation5 + $0x1c8] sm:$0xff]  ;;  %v2153_v8 = vld [vmem:[#allocation5 + $0x1d8] sm:$0xff] }
  0x33   :  { %136 = vmatprep.subr.mxu0 %v67_v45  ;;  %249 = vmatprep.subr.mxu1 %v69_v46  ;;  %v2159_v9 = vld [vmem:[#allocation5 + $0x1c0] sm:$0xff]  ;;  %v2161_v10 = vld [vmem:[#allocation5 + $0x1d0] sm:$0xff]  ;;  %v43_v11 = vld [vmem:[%s3075_s0 + $0x8] sm:$0xff] }
  0x34   :  { %137 = vmatpush1.msra.mxu0 %v66_v47  ;;  %250 = vmatpush1.msra.mxu1 %v68_v48  ;;  %v2170_v12 = vld [vmem:[#allocation5 + $0x1a8] sm:$0xff]  ;;  %v2172_v13 = vld [vmem:[#allocation5 + $0x1b8] sm:$0xff]  ;;  %v2176_v14 = vld [vmem:[#allocation5 + $0x1a0] sm:$0xff] }
  0x35   :  { %138 = vmatprep.subr.mxu0 %v63_v49  ;;  %251 = vmatprep.subr.mxu1 %v65_v50  ;;  %v2178_v15 = vld [vmem:[#allocation5 + $0x1b0] sm:$0xff]  ;;  %v2180_v16 = vld [vmem:[#allocation5 + $0x188] sm:$0xff]  ;;  %v2182_v17 = vld [vmem:[#allocation5 + $0x198] sm:$0xff] }
  0x36   :  { %139 = vmatpush1.msra.mxu0 %v62_v51  ;;  %252 = vmatpush1.msra.mxu1 %v64_v52  ;;  %v2188_v18 = vld [vmem:[#allocation5 + $0x180] sm:$0xff]  ;;  %v2190_v19 = vld [vmem:[#allocation5 + $0x190] sm:$0xff]  ;;  %v2199_v21 = vld [vmem:[#allocation5 + $0x168] sm:$0xff] }
  0x37   :  { %140 = vmatprep.subr.mxu0 %v59_v53  ;;  %253 = vmatprep.subr.mxu1 %v61_v54  ;;  %v44_v20 = vld [vmem:[%s3075_s0 + $0x10] sm:$0xff]  ;;  %v2201_v22 = vld [vmem:[#allocation5 + $0x178] sm:$0xff]  ;;  %v2205_v23 = vld [vmem:[#allocation5 + $0x160] sm:$0xff] }
  0x38   :  { %141 = vmatpush1.msra.mxu0 %v58_v55  ;;  %254 = vmatpush1.msra.mxu1 %v60_v56  ;;  %v2207_v24 = vld [vmem:[#allocation5 + $0x170] sm:$0xff]  ;;  %v2209_v25 = vld [vmem:[#allocation5 + $0x148] sm:$0xff]  ;;  %v2211_v26 = vld [vmem:[#allocation5 + $0x158] sm:$0xff] }
  0x39   :  { %142 = vmatprep.subr.mxu0 %v55_v57  ;;  %255 = vmatprep.subr.mxu1 %v57_v58  ;;  %v2217_v27 = vld [vmem:[#allocation5 + $0x140] sm:$0xff]  ;;  %v2219_v28 = vld [vmem:[#allocation5 + $0x150] sm:$0xff]  ;;  %v45_v29 = vld [vmem:[%s3075_s0 + $0x18] sm:$0xff] }
  0x3a   :  { %143 = vmatpush1.msra.mxu0 %v54_v59  ;;  %256 = vmatpush1.msra.mxu1 %v56_v60  ;;  %v2228_v30 = vld [vmem:[#allocation5 + $0x128] sm:$0xff]  ;;  %v2230_v31 = vld [vmem:[#allocation5 + $0x138] sm:$0xff]  ;;  %v2234_v32 = vld [vmem:[#allocation5 + $0x120] sm:$0xff] }
  0x3b   :  { %144 = vmatprep.subr.mxu0 %v51_v61  ;;  %257 = vmatprep.subr.mxu1 %v53_v62  ;;  %v2236_v33 = vld [vmem:[#allocation5 + $0x130] sm:$0xff]  ;;  %v2238_v34 = vld [vmem:[#allocation5 + $0x108] sm:$0xff]  ;;  %v2240_v35 = vld [vmem:[#allocation5 + $0x118] sm:$0xff] }
  0x3c   :  { %145 = vmatpush1.msra.mxu0 %v50_v63  ;;  %258 = vmatpush1.msra.mxu1 %v52_v1  ;;  %v2246_v36 = vld [vmem:[#allocation5 + $0x100] sm:$0xff]  ;;  %v2248_v37 = vld [vmem:[#allocation5 + $0x110] sm:$0xff]  ;;  %v2257_v39 = vld [vmem:[#allocation5 + $0xe8] sm:$0xff] }
  0x3d   :  { %179 = vmatmul.mubr.f32.vlgmr.msra.gmra.mxu0 %v42_v2  ;;  %292 = vmatmul.mubr.f32.vlgmr.msra.gmra.mxu1 %v42_v2  ;;  %v46_v38 = vld [vmem:[%s3075_s0 + $0x20] sm:$0xff]  ;;  %v2259_v40 = vld [vmem:[#allocation5 + $0xf8] sm:$0xff]  ;;  %v2265_v42 = vld [vmem:[#allocation5 + $0xf0] sm:$0xff] }
  0x3e   :  { %440 = vmatprep.subr.mxu0 %v2143_v3  ;;  %511 = vmatprep.subr.mxu1 %v2145_v4  ;;  %v2263_v41 = vld [vmem:[#allocation5 + $0xe0] sm:$0xff]  ;;  %v2267_v43 = vld [vmem:[#allocation5 + $0xc8] sm:$0xff]  ;;  %v2269_v44 = vld [vmem:[#allocation5 + $0xd8] sm:$0xff] }
  0x3f   :  { %441 = vmatpush1.msra.mxu0 %v2147_v5  ;;  %512 = vmatpush1.msra.mxu1 %v2149_v6  ;;  %v2275_v45 = vld [vmem:[#allocation5 + $0xc0] sm:$0xff]  ;;  %v2277_v46 = vld [vmem:[#allocation5 + $0xd0] sm:$0xff]  ;;  %v47_v47 = vld [vmem:[%s3075_s0 + $0x28] sm:$0xff] }
  0x40   :  { %442 = vmatprep.subr.mxu0 %v2151_v7  ;;  %513 = vmatprep.subr.mxu1 %v2153_v8  ;;  %v2286_v48 = vld [vmem:[#allocation5 + $0xa8] sm:$0xff]  ;;  %v2288_v49 = vld [vmem:[#allocation5 + $0xb8] sm:$0xff]  ;;  %v2292_v50 = vld [vmem:[#allocation5 + $0xa0] sm:$0xff] }
  0x41   :  { %184 = vmatprep.mubr.f32.mxu0 %v3079_v0  ;;  %297 = vmatprep.mubr.f32.mxu1 %v3079_v0  ;;  %v2294_v51 = vld [vmem:[#allocation5 + $0xb0] sm:$0xff]  ;;  %v2296_v52 = vld [vmem:[#allocation5 + $0x88] sm:$0xff]  ;;  %v2298_v53 = vld [vmem:[#allocation5 + $0x98] sm:$0xff] }
  0x42   :  { %443 = vmatpush1.msra.mxu0 %v2159_v9  ;;  %514 = vmatpush1.msra.mxu1 %v2161_v10  ;;  %3164 = vst [vmem:[#allocation11_spill] sm:$0xff] %v2296_v52  ;;  %v2304_v54 = vld [vmem:[#allocation5 + $0x80] sm:$0xff]  ;;  %v2306_v55 = vld [vmem:[#allocation5 + $0x90] sm:$0xff]  ;;  %v2315_v57 = vld [vmem:[#allocation5 + $0x68] sm:$0xff] }
  0x43   :  { %185 = vmatmul.mubr.f32.gmra.mxu0 %v43_v11  ;;  %298 = vmatmul.mubr.f32.gmra.mxu1 %v43_v11  ;;  %3165 = vst [vmem:[#allocation12_spill] sm:$0xff] %v2306_v55  ;;  %v48_v56 = vld [vmem:[%s3075_s0 + $0x30] sm:$0xff]  ;;  %3166 = vst [vmem:[#allocation13_spill] sm:$0xff] %v2315_v57  ;;  %v2317_v58 = vld [vmem:[#allocation5 + $0x78] sm:$0xff] }
  0x44   :  { %444 = vmatprep.subr.mxu0 %v2170_v12  ;;  %515 = vmatprep.subr.mxu1 %v2172_v13  ;;  %3167 = vst [vmem:[#allocation14_spill] sm:$0xff] %v2317_v58  ;;  %v2321_v59 = vld [vmem:[#allocation5 + $0x60] sm:$0xff]  ;;  %v2323_v60 = vld [vmem:[#allocation5 + $0x70] sm:$0xff]  ;;  %v2325_v61 = vld [vmem:[#allocation5 + $0x48] sm:$0xff] }
  0x45   :  { %445 = vmatpush1.msra.mxu0 %v2176_v14  ;;  %516 = vmatpush1.msra.mxu1 %v2178_v15  ;;  %3168 = vst [vmem:[#allocation15_spill] sm:$0xff] %v2321_v59  ;;  %3169 = vst [vmem:[#allocation16_spill] sm:$0xff] %v2323_v60  ;;  %v2327_v62 = vld [vmem:[#allocation5 + $0x58] sm:$0xff]  ;;  %v2333_v63 = vld [vmem:[#allocation5 + $0x40] sm:$0xff] }
  0x46   :  { %446 = vmatprep.subr.mxu0 %v2180_v16  ;;  %517 = vmatprep.subr.mxu1 %v2182_v17  ;;  %3170 = vst [vmem:[#allocation17_spill] sm:$0xff] %v2325_v61  ;;  %3171 = vst [vmem:[#allocation18_spill] sm:$0xff] %v2327_v62  ;;  %v2335_v1 = vld [vmem:[#allocation5 + $0x50] sm:$0xff]  ;;  %v49_v2 = vld [vmem:[%s3075_s0 + $0x38] sm:$0xff] }
  0x47   :  { %190 = vmatprep.mubr.f32.mxu0 %v3079_v0  ;;  %303 = vmatprep.mubr.f32.mxu1 %v3079_v0  ;;  %3172 = vst [vmem:[#allocation19_spill] sm:$0xff] %v2333_v63  ;;  %3173 = vst [vmem:[#allocation20_spill] sm:$0xff] %v2335_v1  ;;  %v2344_v11 = vld [vmem:[#allocation5 + $0x28] sm:$0xff] }
  0x48   :  { %447 = vmatpush1.msra.mxu0 %v2188_v18  ;;  %518 = vmatpush1.msra.mxu1 %v2190_v19  ;;  %3174 = vst [vmem:[#allocation21_spill] sm:$0xff] %v2344_v11 }
  0x49   :  { %191 = vmatmul.mubr.f32.gmra.mxu0 %v44_v20  ;;  %304 = vmatmul.mubr.f32.gmra.mxu1 %v44_v20  ;;  %v2346_v20 = vld [vmem:[#allocation5 + $0x38] sm:$0xff] }
  0x4a   :  { %448 = vmatprep.subr.mxu0 %v2199_v21  ;;  %519 = vmatprep.subr.mxu1 %v2201_v22  ;;  %3175 = vst [vmem:[#allocation22_spill] sm:$0xff] %v2346_v20 }
  0x4b   :  { %449 = vmatpush1.msra.mxu0 %v2205_v23  ;;  %520 = vmatpush1.msra.mxu1 %v2207_v24 }
  0x4c   :  { %450 = vmatprep.subr.mxu0 %v2209_v25  ;;  %521 = vmatprep.subr.mxu1 %v2211_v26 }
  0x4d   :  { %196 = vmatprep.mubr.f32.mxu0 %v3079_v0  ;;  %309 = vmatprep.mubr.f32.mxu1 %v3079_v0 }
  0x4e   :  { %451 = vmatpush1.msra.mxu0 %v2217_v27  ;;  %522 = vmatpush1.msra.mxu1 %v2219_v28 }
  0x4f   :  { %197 = vmatmul.mubr.f32.gmra.mxu0 %v45_v29  ;;  %310 = vmatmul.mubr.f32.gmra.mxu1 %v45_v29  ;;  %v2350_v29 = vld [vmem:[#allocation5 + $0x20] sm:$0xff] }
  0x50   :  { %452 = vmatprep.subr.mxu0 %v2228_v30  ;;  %523 = vmatprep.subr.mxu1 %v2230_v31  ;;  %3176 = vst [vmem:[#allocation23_spill] sm:$0xff] %v2350_v29 }
  0x51   :  { %453 = vmatpush1.msra.mxu0 %v2234_v32  ;;  %524 = vmatpush1.msra.mxu1 %v2236_v33 }
  0x52   :  { %454 = vmatprep.subr.mxu0 %v2238_v34  ;;  %525 = vmatprep.subr.mxu1 %v2240_v35 }
  0x53   :  { %202 = vmatprep.mubr.f32.mxu0 %v3079_v0  ;;  %315 = vmatprep.mubr.f32.mxu1 %v3079_v0 }
  0x54   :  { %455 = vmatpush1.msra.mxu0 %v2246_v36  ;;  %526 = vmatpush1.msra.mxu1 %v2248_v37 }
  0x55   :  { %203 = vmatmul.mubr.f32.gmra.mxu0 %v46_v38  ;;  %316 = vmatmul.mubr.f32.gmra.mxu1 %v46_v38  ;;  %v2352_v38 = vld [vmem:[#allocation5 + $0x30] sm:$0xff] }
  0x56   :  { %456 = vmatprep.subr.mxu0 %v2257_v39  ;;  %527 = vmatprep.subr.mxu1 %v2259_v40  ;;  %3177 = vst [vmem:[#allocation24_spill] sm:$0xff] %v2352_v38 }
  0x57   :  { %457 = vmatpush1.msra.mxu0 %v2263_v41  ;;  %528 = vmatpush1.msra.mxu1 %v2265_v42 }
  0x58   :  { %458 = vmatprep.subr.mxu0 %v2267_v43  ;;  %529 = vmatprep.subr.mxu1 %v2269_v44 }
  0x59   :  { %208 = vmatprep.mubr.f32.mxu0 %v3079_v0  ;;  %321 = vmatprep.mubr.f32.mxu1 %v3079_v0 }
  0x5a   :  { %459 = vmatpush1.msra.mxu0 %v2275_v45  ;;  %530 = vmatpush1.msra.mxu1 %v2277_v46 }
  0x5b   :  { %209 = vmatmul.mubr.f32.gmra.mxu0 %v47_v47  ;;  %322 = vmatmul.mubr.f32.gmra.mxu1 %v47_v47  ;;  %v2354_v47 = vld [vmem:[#allocation5 + $0x8] sm:$0xff] }
  0x5c   :  { %460 = vmatprep.subr.mxu0 %v2286_v48  ;;  %531 = vmatprep.subr.mxu1 %v2288_v49  ;;  %3178 = vst [vmem:[#allocation25_spill] sm:$0xff] %v2354_v47 }
  0x5d   :  { %461 = vmatpush1.msra.mxu0 %v2292_v50  ;;  %532 = vmatpush1.msra.mxu1 %v2294_v51 }
  0x5e   :  { %462 = vmatprep.subr.mxu0 %v2296_v52  ;;  %533 = vmatprep.subr.mxu1 %v2298_v53 }
  0x5f   :  { %214 = vmatprep.mubr.f32.mxu0 %v3079_v0  ;;  %327 = vmatprep.mubr.f32.mxu1 %v3079_v0 }
  0x60   :  { %463 = vmatpush1.msra.mxu0 %v2304_v54  ;;  %534 = vmatpush1.msra.mxu1 %v2306_v55 }
  0x61   :  { %215 = vmatmul.mubr.f32.gmra.mxu0 %v48_v56  ;;  %328 = vmatmul.mubr.f32.gmra.mxu1 %v48_v56  ;;  %v2356_v56 = vld [vmem:[#allocation5 + $0x18] sm:$0xff] }
  0x62   :  { %464 = vmatprep.subr.mxu0 %v2315_v57  ;;  %535 = vmatprep.subr.mxu1 %v2317_v58  ;;  %3179 = vst [vmem:[#allocation26_spill] sm:$0xff] %v2356_v56 }
  0x63   :  { %465 = vmatpush1.msra.mxu0 %v2321_v59  ;;  %536 = vmatpush1.msra.mxu1 %v2323_v60 }
  0x64   :  { %466 = vmatprep.subr.mxu0 %v2325_v61  ;;  %537 = vmatprep.subr.mxu1 %v2327_v62 }
  0x65   :  { %220 = vmatprep.mubr.f32.mxu0 %v3079_v0  ;;  %333 = vmatprep.mubr.f32.mxu1 %v3079_v0  ;;  %v2360_v0 = vld [vmem:[#allocation5] sm:$0xff] }
  0x66   :  { %467 = vmatpush1.msra.mxu0 %v2333_v63  ;;  %538 = vmatpush1.msra.mxu1 %v2335_v1  ;;  %3180 = vst [vmem:[#allocation27_spill] sm:$0xff] %v2360_v0  ;;  %v2364_v1 = vld [vmem:[#allocation5 + $0x10] sm:$0xff] }
  0x67   :  { %221 = vmatmul.mubr.f32.gmra.mxu0 %v49_v2  ;;  %334 = vmatmul.mubr.f32.gmra.mxu1 %v49_v2  ;;  %3181 = vst [vmem:[#allocation28_spill] sm:$0xff] %v2364_v1  ;;  %v3182_v2 = vmov 0.0  }
  0x68   :  { %468 = vmatprep.subr.mxu0 %v2344_v11  ;;  %539 = vmatprep.subr.mxu1 %v2346_v20 }
  0x69   :  { %469 = vmatpush1.msra.mxu0 %v2350_v29  ;;  %540 = vmatpush1.msra.mxu1 %v2352_v38 }
  0x6a   :  { %470 = vmatprep.subr.mxu0 %v2354_v47  ;;  %541 = vmatprep.subr.mxu1 %v2356_v56 }
  0x6b   :  { %471 = vmatpush1.msra.mxu0 %v2360_v0  ;;  %504 = vmatprep.mubr.f32.mxu0 %v3182_v2 }
  0x6c   :  { %542 = vmatpush1.msra.mxu1 %v2364_v1  ;;  %575 = vmatprep.mubr.f32.mxu1 %v3182_v2 }
  0x6d   :  { %505 = vmatmul.mubr.f32.vlgmr.msra.gmra.mxu0 %v3182_v2  ;;  %576 = vmatmul.mubr.f32.vlgmr.msra.gmra.mxu1 %v3182_v2 }
  0x6e   :  { %615 = vmatprep.subr.mxu0 %v2143_v3  ;;  %686 = vmatprep.subr.mxu1 %v2145_v4 }
  0x6f   :  { %616 = vmatpush1.msra.mxu0 %v2147_v5  ;;  %687 = vmatpush1.msra.mxu1 %v2149_v6 }
  0x70   :  { %617 = vmatprep.subr.mxu0 %v2151_v7  ;;  %688 = vmatprep.subr.mxu1 %v2153_v8 }
  0x71   :  { %618 = vmatpush1.msra.mxu0 %v2159_v9  ;;  %689 = vmatpush1.msra.mxu1 %v2161_v10 }
  0x72   :  { %619 = vmatprep.subr.mxu0 %v2170_v12  ;;  %690 = vmatprep.subr.mxu1 %v2172_v13 }
  0x73   :  { %620 = vmatpush1.msra.mxu0 %v2176_v14  ;;  %691 = vmatpush1.msra.mxu1 %v2178_v15 }
  0x74   :  { %621 = vmatprep.subr.mxu0 %v2180_v16  ;;  %692 = vmatprep.subr.mxu1 %v2182_v17 }
  0x75   :  { %622 = vmatpush1.msra.mxu0 %v2188_v18  ;;  %693 = vmatpush1.msra.mxu1 %v2190_v19 }
  0x76   :  { %623 = vmatprep.subr.mxu0 %v2199_v21  ;;  %694 = vmatprep.subr.mxu1 %v2201_v22 }
  0x77   :  { %624 = vmatpush1.msra.mxu0 %v2205_v23  ;;  %695 = vmatpush1.msra.mxu1 %v2207_v24 }
  0x78   :  { %625 = vmatprep.subr.mxu0 %v2209_v25  ;;  %696 = vmatprep.subr.mxu1 %v2211_v26 }
  0x79   :  { %626 = vmatpush1.msra.mxu0 %v2217_v27  ;;  %697 = vmatpush1.msra.mxu1 %v2219_v28 }
  0x7a   :  { %627 = vmatprep.subr.mxu0 %v2228_v30  ;;  %698 = vmatprep.subr.mxu1 %v2230_v31 }
  0x7b   :  { %628 = vmatpush1.msra.mxu0 %v2234_v32  ;;  %699 = vmatpush1.msra.mxu1 %v2236_v33 }
  0x7c   :  { %629 = vmatprep.subr.mxu0 %v2238_v34  ;;  %700 = vmatprep.subr.mxu1 %v2240_v35 }
  0x7d   :  { %630 = vmatpush1.msra.mxu0 %v2246_v36  ;;  %701 = vmatpush1.msra.mxu1 %v2248_v37 }
  0x7e   :  { %631 = vmatprep.subr.mxu0 %v2257_v39  ;;  %702 = vmatprep.subr.mxu1 %v2259_v40 }
  0x7f   :  { %632 = vmatpush1.msra.mxu0 %v2263_v41  ;;  %703 = vmatpush1.msra.mxu1 %v2265_v42 }
  0x80   :  { %633 = vmatprep.subr.mxu0 %v2267_v43  ;;  %704 = vmatprep.subr.mxu1 %v2269_v44 }
  0x81   :  { %634 = vmatpush1.msra.mxu0 %v2275_v45  ;;  %705 = vmatpush1.msra.mxu1 %v2277_v46 }
  0x82   :  { %635 = vmatprep.subr.mxu0 %v2286_v48  ;;  %706 = vmatprep.subr.mxu1 %v2288_v49 }
  0x83   :  { %636 = vmatpush1.msra.mxu0 %v2292_v50  ;;  %707 = vmatpush1.msra.mxu1 %v2294_v51 }
  0x84   :  { %637 = vmatprep.subr.mxu0 %v2296_v52  ;;  %708 = vmatprep.subr.mxu1 %v2298_v53  ;;  %v3183_v52 = vld [vmem:[#allocation20_spill] sm:$0xff] }
  0x85   :  { %638 = vmatpush1.msra.mxu0 %v2304_v54  ;;  %709 = vmatpush1.msra.mxu1 %v2306_v55 }
  0x86   :  { %639 = vmatprep.subr.mxu0 %v2315_v57  ;;  %710 = vmatprep.subr.mxu1 %v2317_v58 }
  0x87   :  { %640 = vmatpush1.msra.mxu0 %v2321_v59  ;;  %711 = vmatpush1.msra.mxu1 %v2323_v60 }
  0x88   :  { %641 = vmatprep.subr.mxu0 %v2325_v61  ;;  %712 = vmatprep.subr.mxu1 %v2327_v62 }
  0x89   :  { %642 = vmatpush1.msra.mxu0 %v2333_v63  ;;  %713 = vmatpush1.msra.mxu1 %v3183_v52 }
  0x8a   :  { %643 = vmatprep.subr.mxu0 %v2344_v11  ;;  %714 = vmatprep.subr.mxu1 %v2346_v20 }
  0x8b   :  { %644 = vmatpush1.msra.mxu0 %v2350_v29  ;;  %715 = vmatpush1.msra.mxu1 %v2352_v38 }
  0x8c   :  { %645 = vmatprep.subr.mxu0 %v2354_v47  ;;  %716 = vmatprep.subr.mxu1 %v2356_v56 }
  0x8d   :  { %646 = vmatpush1.msra.mxu0 %v2360_v0  ;;  %679 = vmatprep.mubr.f32.mxu0 %v3182_v2 }
  0x8e   :  { %717 = vmatpush1.msra.mxu1 %v2364_v1  ;;  %750 = vmatprep.mubr.f32.mxu1 %v3182_v2 }
  0x8f   :  { %790 = vmatprep.subr.mxu0 %v2143_v3  ;;  %861 = vmatprep.subr.mxu1 %v2145_v4 }
  0xfd   :  { %v180_v20 = vpop.f32.mrf.mxu0  ;;  %v293_v29 = vpop.f32.mrf.mxu1 }
  0xff   :  { %v182_v11 = vpop.f32.mrf.mxu0  ;;  %v295_v38 = vpop.f32.mrf.mxu1 }
 0x103   :  { %v2442_v52 = vpop.f32.mrf.mxu0  ;;  %v2444_v47 = vpop.f32.mrf.mxu1 }
 0x104   :  { %3184 = vst [vmem:[#allocation29_spill] sm:$0xff] %v2442_v52  ;;  %3185 = vst [vmem:[#allocation30_spill] sm:$0xff] %v2444_v47 }
 0x105   :  { %v2446_v56 = vpop.f32.mrf.mxu0  ;;  %v2448_v0 = vpop.f32.mrf.mxu1 }
 0x106   :  { %3186 = vst [vmem:[#allocation31_spill] sm:$0xff] %v2446_v56  ;;  %3187 = vst [vmem:[#allocation32_spill] sm:$0xff] %v2448_v0 }
 0x109   :  { %v2450_v63 = vpop.f32.mrf.mxu0  ;;  %v2452_v1 = vpop.f32.mrf.mxu1 }
 0x10a   :  { %3188 = vst [vmem:[#allocation33_spill] sm:$0xff] %v2450_v63  ;;  %3189 = vst [vmem:[#allocation34_spill] sm:$0xff] %v2452_v1 }
 0x10b   :  { %v2454_v2 = vpop.f32.mrf.mxu0  ;;  %v2456_v3 = vpop.f32.mrf.mxu1 }
 0x10c   :  { %3190 = vst [vmem:[#allocation35_spill] sm:$0xff] %v2454_v2  ;;  %3191 = vst [vmem:[#allocation36_spill] sm:$0xff] %v2456_v3 }
 0x10f   :  { %v2458_v4 = vpop.f32.mrf.mxu0  ;;  %v2460_v62 = vpop.f32.mrf.mxu1 }
 0x110   :  { %3192 = vst [vmem:[#allocation37_spill] sm:$0xff] %v2458_v4  ;;  %3193 = vst [vmem:[#allocation38_spill] sm:$0xff] %v2460_v62 }
 0x111   :  { %v2462_v61 = vpop.f32.mrf.mxu0  ;;  %v2464_v52 = vpop.f32.mrf.mxu1 }
 0x112   :  { %3194 = vst [vmem:[#allocation39_spill] sm:$0xff] %v2462_v61  ;;  %3195 = vst [vmem:[#allocation40_spill] sm:$0xff] %v2464_v52 }
 0x115   :  { %v2466_v47 = vpop.f32.mrf.mxu0  ;;  %v2468_v56 = vpop.f32.mrf.mxu1 }
 0x116   :  { %3196 = vst [vmem:[#allocation41_spill] sm:$0xff] %v2466_v47  ;;  %3197 = vst [vmem:[#allocation42_spill] sm:$0xff] %v2468_v56 }
 0x117   :  { %v2470_v0 = vpop.f32.mrf.mxu0  ;;  %v2472_v63 = vpop.f32.mrf.mxu1 }
 0x118   :  { %3198 = vst [vmem:[#allocation43_spill] sm:$0xff] %v2470_v0  ;;  %3199 = vst [vmem:[#allocation44_spill] sm:$0xff] %v2472_v63 }
 0x11b   :  { %v2474_v1 = vpop.f32.mrf.mxu0  ;;  %v2476_v2 = vpop.f32.mrf.mxu1 }
 0x11c   :  { %3200 = vst [vmem:[#allocation45_spill] sm:$0xff] %v2474_v1  ;;  %3201 = vst [vmem:[#allocation46_spill] sm:$0xff] %v2476_v2 }
 0x11d   :  { %v2478_v3 = vpop.f32.mrf.mxu0  ;;  %v2480_v4 = vpop.f32.mrf.mxu1 }
 0x11e   :  { %3202 = vst [vmem:[#allocation47_spill] sm:$0xff] %v2478_v3  ;;  %3203 = vst [vmem:[#allocation48_spill] sm:$0xff] %v2480_v4 }
 0x121   :  { %v2482_v62 = vpop.f32.mrf.mxu0  ;;  %v2484_v61 = vpop.f32.mrf.mxu1 }
 0x122   :  { %3204 = vst [vmem:[#allocation49_spill] sm:$0xff] %v2482_v62  ;;  %3205 = vst [vmem:[#allocation50_spill] sm:$0xff] %v2484_v61 }
 0x123   :  { %v2486_v52 = vpop.f32.mrf.mxu0  ;;  %v2488_v47 = vpop.f32.mrf.mxu1 }
 0x124   :  { %3206 = vst [vmem:[#allocation51_spill] sm:$0xff] %v2486_v52  ;;  %3207 = vst [vmem:[#allocation52_spill] sm:$0xff] %v2488_v47 }
 0x127   :  { %v2490_v56 = vpop.f32.mrf.mxu0  ;;  %v2494_v63 = vpop.f32.mrf.mxu1 }
 0x128   :  { %3208 = vst [vmem:[#allocation53_spill] sm:$0xff] %v2490_v56  ;;  %3210 = vst [vmem:[#allocation55_spill] sm:$0xff] %v2494_v63 }
 0x129   :  { %v2492_v0 = vpop.f32.mrf.mxu0  ;;  %v2496_v2 = vpop.f32.mrf.mxu1 }
 0x12a   :  { %3209 = vst [vmem:[#allocation54_spill] sm:$0xff] %v2492_v0  ;;  %3211 = vst [vmem:[#allocation56_spill] sm:$0xff] %v2496_v2  ;;  %v3230_v2 = vld [vmem:[#allocation28_spill] sm:$0xff] }
 0x12d   :  { %v506_v1 = vpop.f32.mrf.mxu0  ;;  %v577_v62 = vpop.f32.mrf.mxu1 }
 0x12e   :  { %v582_v3 = vadd.f32 %v506_v1, %v180_v20  ;;  %v584_v56 = vadd.f32 %v577_v62, %v293_v29  ;;  %v3214_v62 = vld [vmem:[#allocation13_spill] sm:$0xff]  ;;  %v3216_v29 = vld [vmem:[#allocation15_spill] sm:$0xff] }
 0x12f   :  { %v508_v60 = vpop.f32.mrf.mxu0  ;;  %v579_v52 = vpop.f32.mrf.mxu1 }
 0x130   :  { %v1842_v4 = vmul.f32 -1.442695, %v582_v3  ;;  %v583_v59 = vadd.f32 %v508_v60, %v182_v11  ;;  %v585_v58 = vadd.f32 %v579_v52, %v295_v38  ;;  %v3217_v38 = vld [vmem:[#allocation16_spill] sm:$0xff] }
 0x132   :  { %1871 = vpow2.f32 %v1842_v4  ;;  %v1843_v61 = vmul.f32 -1.442695, %v583_v59  ;;  %v1844_v47 = vmul.f32 -1.442695, %v585_v58 }
 0x134   :  { %1873 = vpow2.f32 %v1843_v61 }
 0x135   :  { %1875 = vpow2.f32 %v1844_v47  ;;  %v3218_v47 = vld [vmem:[#allocation17_spill] sm:$0xff] }
 0x13f   :  { %v1872_v57 = vpop.eup %1871 }
 0x140   :  { %v589_v55 = vadd.f32 1.0, %v1872_v57 }
 0x141   :  { %v1874_v0 = vpop.eup %1873 }
 0x142   :  { %1877 = vrcp.f32 %v589_v55  ;;  %v595_v63 = vadd.f32 1.0, %v1874_v0  ;;  %v1876_v1 = vpop.eup %1875  ;;  %v3212_v0 = vld [vmem:[#allocation11_spill] sm:$0xff]  ;;  %v3213_v55 = vld [vmem:[#allocation12_spill] sm:$0xff] }
 0x143   :  { %1879 = vtanh.f32 %v584_v56  ;;  %v602_v4 = vadd.f32 1.0, %v1876_v1  ;;  %v3219_v56 = vld [vmem:[#allocation18_spill] sm:$0xff]  ;;  %v3220_v1 = vld [vmem:[#allocation19_spill] sm:$0xff] }
 0x144   :  { %1881 = vrcp.f32 %v595_v63  ;;  %v3215_v63 = vld [vmem:[#allocation14_spill] sm:$0xff] }
 0x145   :  { %1883 = vrcp.f32 %v602_v4  ;;  %v3224_v4 = vld [vmem:[#allocation23_spill] sm:$0xff] }
 0x14f   :  { %v1878_v20 = vpop.eup %1877 }
 0x150   :  { %v1880_v3 = vpop.eup %1879 }
 0x151   :  { %v1882_v60 = vpop.eup %1881  ;;  %v606_v59 = vmul.f32 %v1880_v3, %v1878_v20  ;;  %v3221_v20 = vld [vmem:[#allocation20_spill] sm:$0xff]  ;;  %v3222_v3 = vld [vmem:[#allocation21_spill] sm:$0xff] }
 0x152   :  { %v605_v11 = vmul.f32 0.0, %v1882_v60  ;;  %v1884_v52 = vpop.eup %1883  ;;  %v3223_v60 = vld [vmem:[#allocation22_spill] sm:$0xff] }
 0x154   :  { %v2498_v61 = vadd.f32 %v606_v59, %v605_v11  ;;  %v3225_v11 = vld [vmem:[#allocation24_spill] sm:$0xff]  ;;  %v3226_v59 = vld [vmem:[#allocation25_spill] sm:$0xff] }
 0x156   :  { %1885 = vtanh.f32 %v2498_v61 }
 0x163   :  { %v1886_v57 = vpop.eup %1885 }
 0x164   :  { %v609_v58 = vmul.f32 %v1886_v57, %v1884_v52  ;;  %v3227_v52 = vld [vmem:[#allocation26_spill] sm:$0xff]  ;;  %v3228_v57 = vld [vmem:[#allocation27_spill] sm:$0xff] }
 0x166   :  { %680 = vmatmul.mubr.f32.vlgmr.msra.gmra.mxu0 %v609_v58  ;;  %751 = vmatmul.mubr.f32.vlgmr.msra.gmra.mxu1 %v609_v58  ;;  %v3229_v58 = vmov 0.0  }
 0x167   :  { %791 = vmatpush1.msra.mxu0 %v2147_v5  ;;  %862 = vmatpush1.msra.mxu1 %v2149_v6 }
 0x168   :  { %792 = vmatprep.subr.mxu0 %v2151_v7  ;;  %863 = vmatprep.subr.mxu1 %v2153_v8 }
 0x169   :  { %793 = vmatpush1.msra.mxu0 %v2159_v9  ;;  %864 = vmatpush1.msra.mxu1 %v2161_v10 }
 0x16a   :  { %794 = vmatprep.subr.mxu0 %v2170_v12  ;;  %865 = vmatprep.subr.mxu1 %v2172_v13 }
 0x16b   :  { %795 = vmatpush1.msra.mxu0 %v2176_v14  ;;  %866 = vmatpush1.msra.mxu1 %v2178_v15 }
 0x16c   :  { %796 = vmatprep.subr.mxu0 %v2180_v16  ;;  %867 = vmatprep.subr.mxu1 %v2182_v17 }
 0x16d   :  { %797 = vmatpush1.msra.mxu0 %v2188_v18  ;;  %868 = vmatpush1.msra.mxu1 %v2190_v19 }
 0x16e   :  { %798 = vmatprep.subr.mxu0 %v2199_v21  ;;  %869 = vmatprep.subr.mxu1 %v2201_v22 }
 0x16f   :  { %799 = vmatpush1.msra.mxu0 %v2205_v23  ;;  %870 = vmatpush1.msra.mxu1 %v2207_v24 }
 0x170   :  { %800 = vmatprep.subr.mxu0 %v2209_v25  ;;  %871 = vmatprep.subr.mxu1 %v2211_v26 }
 0x171   :  { %801 = vmatpush1.msra.mxu0 %v2217_v27  ;;  %872 = vmatpush1.msra.mxu1 %v2219_v28 }
 0x172   :  { %802 = vmatprep.subr.mxu0 %v2228_v30  ;;  %873 = vmatprep.subr.mxu1 %v2230_v31 }
 0x173   :  { %803 = vmatpush1.msra.mxu0 %v2234_v32  ;;  %874 = vmatpush1.msra.mxu1 %v2236_v33 }
 0x174   :  { %804 = vmatprep.subr.mxu0 %v2238_v34  ;;  %875 = vmatprep.subr.mxu1 %v2240_v35 }
 0x175   :  { %805 = vmatpush1.msra.mxu0 %v2246_v36  ;;  %876 = vmatpush1.msra.mxu1 %v2248_v37 }
 0x176   :  { %806 = vmatprep.subr.mxu0 %v2257_v39  ;;  %877 = vmatprep.subr.mxu1 %v2259_v40 }
 0x177   :  { %807 = vmatpush1.msra.mxu0 %v2263_v41  ;;  %878 = vmatpush1.msra.mxu1 %v2265_v42 }
 0x178   :  { %808 = vmatprep.subr.mxu0 %v2267_v43  ;;  %879 = vmatprep.subr.mxu1 %v2269_v44 }
 0x179   :  { %809 = vmatpush1.msra.mxu0 %v2275_v45  ;;  %880 = vmatpush1.msra.mxu1 %v2277_v46 }
 0x17a   :  { %810 = vmatprep.subr.mxu0 %v2286_v48  ;;  %881 = vmatprep.subr.mxu1 %v2288_v49 }
 0x17b   :  { %811 = vmatpush1.msra.mxu0 %v2292_v50  ;;  %882 = vmatpush1.msra.mxu1 %v2294_v51 }
 0x17c   :  { %812 = vmatprep.subr.mxu0 %v3212_v0  ;;  %883 = vmatprep.subr.mxu1 %v2298_v53 }
 0x17d   :  { %813 = vmatpush1.msra.mxu0 %v2304_v54  ;;  %884 = vmatpush1.msra.mxu1 %v3213_v55 }
 0x17e   :  { %814 = vmatprep.subr.mxu0 %v3214_v62  ;;  %885 = vmatprep.subr.mxu1 %v3215_v63  ;;  %v3236_v62 = vld [vmem:[#allocation30_spill] sm:$0xff] }
 0x17f   :  { %815 = vmatpush1.msra.mxu0 %v3216_v29  ;;  %886 = vmatpush1.msra.mxu1 %v3217_v38  ;;  %v3235_v29 = vld [vmem:[#allocation32_spill] sm:$0xff] }
 0x180   :  { %816 = vmatprep.subr.mxu0 %v3218_v47  ;;  %887 = vmatprep.subr.mxu1 %v3219_v56 }
 0x181   :  { %817 = vmatpush1.msra.mxu0 %v3220_v1  ;;  %888 = vmatpush1.msra.mxu1 %v3221_v20  ;;  %v3231_v20 = vld [vmem:[#allocation9_spill] sm:$0xff] }
 0x182   :  { %818 = vmatprep.subr.mxu0 %v3222_v3  ;;  %889 = vmatprep.subr.mxu1 %v3223_v60  ;;  %v3232_v3 = vld [vmem:[#allocation10_spill] sm:$0xff] }
 0x183   :  { %819 = vmatpush1.msra.mxu0 %v3224_v4  ;;  %890 = vmatpush1.msra.mxu1 %v3225_v11  ;;  %v3233_v4 = vld [vmem:[#allocation29_spill] sm:$0xff] }
 0x184   :  { %820 = vmatprep.subr.mxu0 %v3226_v59  ;;  %891 = vmatprep.subr.mxu1 %v3227_v52  ;;  %v3234_v59 = vld [vmem:[#allocation31_spill] sm:$0xff] }
 0x185   :  { %821 = vmatpush1.msra.mxu0 %v3228_v57  ;;  %854 = vmatprep.mubr.f32.mxu0 %v3229_v58 }
 0x186   :  { %892 = vmatpush1.msra.mxu1 %v3230_v2  ;;  %925 = vmatprep.mubr.f32.mxu1 %v3229_v58 }
 0x187   :  { %965 = vmatprep.subr.mxu0 %v3231_v20  ;;  %1036 = vmatprep.subr.mxu1 %v3232_v3 }
 0x226   :  { %v681_v60 = vpop.f32.mrf.mxu0  ;;  %v752_v52 = vpop.f32.mrf.mxu1 }
 0x227   :  { %v757_v1 = vadd.f32 %v681_v60, %v3233_v4  ;;  %v759_v20 = vadd.f32 %v752_v52, %v3236_v62  ;;  %v3242_v52 = vld [vmem:[#allocation17_spill] sm:$0xff] }
 0x228   :  { %v683_v11 = vpop.f32.mrf.mxu0  ;;  %v754_v38 = vpop.f32.mrf.mxu1 }
 0x229   :  { %v1845_v56 = vmul.f32 -1.442695, %v757_v1  ;;  %v758_v47 = vadd.f32 %v683_v11, %v3234_v59  ;;  %v760_v2 = vadd.f32 %v754_v38, %v3235_v29  ;;  %v3239_v38 = vld [vmem:[#allocation14_spill] sm:$0xff] }
 0x22b   :  { %1887 = vpow2.f32 %v1845_v56  ;;  %v1846_v57 = vmul.f32 -1.442695, %v758_v47  ;;  %v1847_v63 = vmul.f32 -1.442695, %v760_v2 }
 0x22d   :  { %1889 = vpow2.f32 %v1846_v57 }
 0x22e   :  { %1891 = vpow2.f32 %v1847_v63 }
 0x238   :  { %v1888_v58 = vpop.eup %1887 }
 0x239   :  { %v764_v55 = vadd.f32 1.0, %v1888_v58  ;;  %v3243_v58 = vld [vmem:[#allocation18_spill] sm:$0xff] }
 0x23a   :  { %v1890_v3 = vpop.eup %1889 }
 0x23b   :  { %1893 = vrcp.f32 %v764_v55  ;;  %v770_v60 = vadd.f32 1.0, %v1890_v3  ;;  %v1892_v1 = vpop.eup %1891  ;;  %v3238_v55 = vld [vmem:[#allocation13_spill] sm:$0xff]  ;;  %v3241_v3 = vld [vmem:[#allocation16_spill] sm:$0xff] }
 0x23c   :  { %1895 = vtanh.f32 %v759_v20  ;;  %v777_v47 = vadd.f32 1.0, %v1892_v1  ;;  %v3240_v20 = vld [vmem:[#allocation15_spill] sm:$0xff]  ;;  %v3245_v1 = vld [vmem:[#allocation20_spill] sm:$0xff] }
 0x23d   :  { %1897 = vrcp.f32 %v770_v60  ;;  %v3244_v60 = vld [vmem:[#allocation19_spill] sm:$0xff] }
 0x23e   :  { %1899 = vrcp.f32 %v777_v47  ;;  %v3249_v47 = vld [vmem:[#allocation24_spill] sm:$0xff] }
 0x248   :  { %v1894_v4 = vpop.eup %1893 }
 0x249   :  { %v1896_v56 = vpop.eup %1895 }
 0x24a   :  { %v1898_v11 = vpop.eup %1897  ;;  %v781_v59 = vmul.f32 %v1896_v56, %v1894_v4  ;;  %v3246_v4 = vld [vmem:[#allocation21_spill] sm:$0xff]  ;;  %v3247_v56 = vld [vmem:[#allocation22_spill] sm:$0xff] }
 0x24b   :  { %v780_v57 = vmul.f32 %v1898_v11, %v2498_v61  ;;  %v1900_v2 = vpop.eup %1899  ;;  %v3237_v61 = vld [vmem:[#allocation12_spill] sm:$0xff]  ;;  %v3248_v11 = vld [vmem:[#allocation23_spill] sm:$0xff] }
 0x24d   :  { %v2572_v29 = vadd.f32 %v781_v59, %v780_v57  ;;  %v3250_v59 = vld [vmem:[#allocation25_spill] sm:$0xff]  ;;  %v3251_v57 = vld [vmem:[#allocation26_spill] sm:$0xff] }
 0x24f   :  { %1901 = vtanh.f32 %v2572_v29 }
 0x25c   :  { %v1902_v62 = vpop.eup %1901 }
 0x25d   :  { %v784_v63 = vmul.f32 %v1902_v62, %v1900_v2  ;;  %v3252_v2 = vld [vmem:[#allocation27_spill] sm:$0xff]  ;;  %v3253_v62 = vmov 0.0  }
 0x25f   :  { %855 = vmatmul.mubr.f32.vlgmr.msra.gmra.mxu0 %v784_v63  ;;  %926 = vmatmul.mubr.f32.vlgmr.msra.gmra.mxu1 %v784_v63  ;;  %v3254_v63 = vld [vmem:[#allocation28_spill] sm:$0xff] }
 0x260   :  { %966 = vmatpush1.msra.mxu0 %v2147_v5  ;;  %1037 = vmatpush1.msra.mxu1 %v2149_v6 }
 0x261   :  { %967 = vmatprep.subr.mxu0 %v2151_v7  ;;  %1038 = vmatprep.subr.mxu1 %v2153_v8 }
 0x262   :  { %968 = vmatpush1.msra.mxu0 %v2159_v9  ;;  %1039 = vmatpush1.msra.mxu1 %v2161_v10 }
 0x263   :  { %969 = vmatprep.subr.mxu0 %v2170_v12  ;;  %1040 = vmatprep.subr.mxu1 %v2172_v13 }
 0x264   :  { %970 = vmatpush1.msra.mxu0 %v2176_v14  ;;  %1041 = vmatpush1.msra.mxu1 %v2178_v15 }
 0x265   :  { %971 = vmatprep.subr.mxu0 %v2180_v16  ;;  %1042 = vmatprep.subr.mxu1 %v2182_v17 }
 0x266   :  { %972 = vmatpush1.msra.mxu0 %v2188_v18  ;;  %1043 = vmatpush1.msra.mxu1 %v2190_v19 }
 0x267   :  { %973 = vmatprep.subr.mxu0 %v2199_v21  ;;  %1044 = vmatprep.subr.mxu1 %v2201_v22 }
 0x268   :  { %974 = vmatpush1.msra.mxu0 %v2205_v23  ;;  %1045 = vmatpush1.msra.mxu1 %v2207_v24 }
 0x269   :  { %975 = vmatprep.subr.mxu0 %v2209_v25  ;;  %1046 = vmatprep.subr.mxu1 %v2211_v26 }
 0x26a   :  { %976 = vmatpush1.msra.mxu0 %v2217_v27  ;;  %1047 = vmatpush1.msra.mxu1 %v2219_v28 }
 0x26b   :  { %977 = vmatprep.subr.mxu0 %v2228_v30  ;;  %1048 = vmatprep.subr.mxu1 %v2230_v31 }
 0x26c   :  { %978 = vmatpush1.msra.mxu0 %v2234_v32  ;;  %1049 = vmatpush1.msra.mxu1 %v2236_v33 }
 0x26d   :  { %979 = vmatprep.subr.mxu0 %v2238_v34  ;;  %1050 = vmatprep.subr.mxu1 %v2240_v35 }
 0x26e   :  { %980 = vmatpush1.msra.mxu0 %v2246_v36  ;;  %1051 = vmatpush1.msra.mxu1 %v2248_v37 }
 0x26f   :  { %981 = vmatprep.subr.mxu0 %v2257_v39  ;;  %1052 = vmatprep.subr.mxu1 %v2259_v40 }
 0x270   :  { %982 = vmatpush1.msra.mxu0 %v2263_v41  ;;  %1053 = vmatpush1.msra.mxu1 %v2265_v42 }
 0x271   :  { %983 = vmatprep.subr.mxu0 %v2267_v43  ;;  %1054 = vmatprep.subr.mxu1 %v2269_v44 }
 0x272   :  { %984 = vmatpush1.msra.mxu0 %v2275_v45  ;;  %1055 = vmatpush1.msra.mxu1 %v2277_v46 }
 0x273   :  { %985 = vmatprep.subr.mxu0 %v2286_v48  ;;  %1056 = vmatprep.subr.mxu1 %v2288_v49 }
 0x274   :  { %986 = vmatpush1.msra.mxu0 %v2292_v50  ;;  %1057 = vmatpush1.msra.mxu1 %v2294_v51 }
 0x275   :  { %987 = vmatprep.subr.mxu0 %v3212_v0  ;;  %1058 = vmatprep.subr.mxu1 %v2298_v53 }
 0x276   :  { %988 = vmatpush1.msra.mxu0 %v2304_v54  ;;  %1059 = vmatpush1.msra.mxu1 %v3237_v61 }
 0x277   :  { %989 = vmatprep.subr.mxu0 %v3238_v55  ;;  %1060 = vmatprep.subr.mxu1 %v3239_v38  ;;  %v3260_v55 = vld [vmem:[#allocation34_spill] sm:$0xff] }
 0x278   :  { %990 = vmatpush1.msra.mxu0 %v3240_v20  ;;  %1061 = vmatpush1.msra.mxu1 %v3241_v3  ;;  %v3259_v20 = vld [vmem:[#allocation36_spill] sm:$0xff] }
 0x279   :  { %991 = vmatprep.subr.mxu0 %v3242_v52  ;;  %1062 = vmatprep.subr.mxu1 %v3243_v58 }
 0x27a   :  { %992 = vmatpush1.msra.mxu0 %v3244_v60  ;;  %1063 = vmatpush1.msra.mxu1 %v3245_v1  ;;  %v3255_v1 = vld [vmem:[#allocation9_spill] sm:$0xff] }
 0x27b   :  { %993 = vmatprep.subr.mxu0 %v3246_v4  ;;  %1064 = vmatprep.subr.mxu1 %v3247_v56  ;;  %v3256_v4 = vld [vmem:[#allocation10_spill] sm:$0xff] }
 0x27c   :  { %994 = vmatpush1.msra.mxu0 %v3248_v11  ;;  %1065 = vmatpush1.msra.mxu1 %v3249_v47  ;;  %v3257_v11 = vld [vmem:[#allocation33_spill] sm:$0xff] }
 0x27d   :  { %995 = vmatprep.subr.mxu0 %v3250_v59  ;;  %1066 = vmatprep.subr.mxu1 %v3251_v57  ;;  %v3258_v59 = vld [vmem:[#allocation35_spill] sm:$0xff] }
 0x27e   :  { %996 = vmatpush1.msra.mxu0 %v3252_v2  ;;  %1029 = vmatprep.mubr.f32.mxu0 %v3253_v62 }
 0x27f   :  { %1067 = vmatpush1.msra.mxu1 %v3254_v63  ;;  %1100 = vmatprep.mubr.f32.mxu1 %v3253_v62 }
 0x280   :  { %1140 = vmatprep.subr.mxu0 %v3255_v1  ;;  %1211 = vmatprep.subr.mxu1 %v3256_v4 }
 0x31f   :  { %v856_v56 = vpop.f32.mrf.mxu0  ;;  %v927_v57 = vpop.f32.mrf.mxu1 }
 0x320   :  { %v932_v60 = vadd.f32 %v856_v56, %v3257_v11  ;;  %v934_v1 = vadd.f32 %v927_v57, %v3260_v55 }
 0x321   :  { %v858_v47 = vpop.f32.mrf.mxu0  ;;  %v929_v3 = vpop.f32.mrf.mxu1 }
 0x322   :  { %v1848_v58 = vmul.f32 -1.442695, %v932_v60  ;;  %v933_v52 = vadd.f32 %v858_v47, %v3258_v59  ;;  %v935_v63 = vadd.f32 %v929_v3, %v3259_v20 }
 0x324   :  { %1903 = vpow2.f32 %v1848_v58  ;;  %v1849_v2 = vmul.f32 -1.442695, %v933_v52  ;;  %v1850_v38 = vmul.f32 -1.442695, %v935_v63 }
 0x326   :  { %1905 = vpow2.f32 %v1849_v2 }
 0x327   :  { %1907 = vpow2.f32 %v1850_v38 }
 0x331   :  { %v1904_v62 = vpop.eup %1903 }
 0x332   :  { %v939_v61 = vadd.f32 1.0, %v1904_v62 }
 0x333   :  { %v1906_v4 = vpop.eup %1905 }
 0x334   :  { %1909 = vrcp.f32 %v939_v61  ;;  %v945_v56 = vadd.f32 1.0, %v1906_v4  ;;  %v1908_v60 = vpop.eup %1907  ;;  %v2730_v4 = vld [vmem:[#allocation5 + $0x1f0] sm:$0xff] }
 0x335   :  { %1911 = vtanh.f32 %v934_v1  ;;  %v952_v52 = vadd.f32 1.0, %v1908_v60  ;;  %v2727_v1 = vld [vmem:[#allocation5 + $0x1e0] sm:$0xff]  ;;  %v2736_v60 = vld [vmem:[#allocation5 + $0x1d8] sm:$0xff] }
 0x336   :  { %1913 = vrcp.f32 %v945_v56  ;;  %v2733_v56 = vld [vmem:[#allocation5 + $0x1c8] sm:$0xff] }
 0x337   :  { %1915 = vrcp.f32 %v952_v52  ;;  %v2748_v52 = vld [vmem:[#allocation5 + $0x1b8] sm:$0xff] }
 0x341   :  { %v1910_v11 = vpop.eup %1909 }
 0x342   :  { %v1912_v58 = vpop.eup %1911 }
 0x343   :  { %v1914_v47 = vpop.eup %1913  ;;  %v956_v59 = vmul.f32 %v1912_v58, %v1910_v11  ;;  %v2739_v11 = vld [vmem:[#allocation5 + $0x1c0] sm:$0xff]  ;;  %v2742_v58 = vld [vmem:[#allocation5 + $0x1d0] sm:$0xff] }
 0x344   :  { %v955_v2 = vmul.f32 %v1914_v47, %v2572_v29  ;;  %v1916_v55 = vpop.eup %1915  ;;  %v2745_v47 = vld [vmem:[#allocation5 + $0x1a8] sm:$0xff] }
 0x346   :  { %v2646_v20 = vadd.f32 %v956_v59, %v955_v2  ;;  %v2751_v59 = vld [vmem:[#allocation5 + $0x1a0] sm:$0xff]  ;;  %v2754_v2 = vld [vmem:[#allocation5 + $0x1b0] sm:$0xff] }
 0x348   :  { %1917 = vtanh.f32 %v2646_v20 }
 0x355   :  { %v1918_v3 = vpop.eup %1917 }
 0x356   :  { %v959_v38 = vmul.f32 %v1918_v3, %v1916_v55  ;;  %v2760_v55 = vld [vmem:[#allocation5 + $0x198] sm:$0xff]  ;;  %v2763_v3 = vld [vmem:[#allocation5 + $0x180] sm:$0xff] }
 0x358   :  { %1030 = vmatmul.mubr.f32.vlgmr.msra.gmra.mxu0 %v959_v38  ;;  %1101 = vmatmul.mubr.f32.vlgmr.msra.gmra.mxu1 %v959_v38  ;;  %v2766_v38 = vld [vmem:[#allocation5 + $0x190] sm:$0xff] }
 0x359   :  { %1141 = vmatpush1.msra.mxu0 %v2147_v5  ;;  %1212 = vmatpush1.msra.mxu1 %v2149_v6  ;;  %v3261_v5 = vld [vmem:[#allocation12_spill] sm:$0xff]  ;;  %v3262_v6 = vld [vmem:[#allocation13_spill] sm:$0xff] }
 0x35a   :  { %1142 = vmatprep.subr.mxu0 %v2151_v7  ;;  %1213 = vmatprep.subr.mxu1 %v2153_v8  ;;  %v3263_v7 = vld [vmem:[#allocation14_spill] sm:$0xff]  ;;  %v3264_v8 = vld [vmem:[#allocation15_spill] sm:$0xff] }
 0x35b   :  { %1143 = vmatpush1.msra.mxu0 %v2159_v9  ;;  %1214 = vmatpush1.msra.mxu1 %v2161_v10  ;;  %v3265_v9 = vld [vmem:[#allocation16_spill] sm:$0xff]  ;;  %v3266_v10 = vld [vmem:[#allocation17_spill] sm:$0xff] }
 0x35c   :  { %1144 = vmatprep.subr.mxu0 %v2170_v12  ;;  %1215 = vmatprep.subr.mxu1 %v2172_v13  ;;  %v3267_v12 = vld [vmem:[#allocation18_spill] sm:$0xff]  ;;  %v3268_v13 = vld [vmem:[#allocation19_spill] sm:$0xff] }
 0x35d   :  { %1145 = vmatpush1.msra.mxu0 %v2176_v14  ;;  %1216 = vmatpush1.msra.mxu1 %v2178_v15  ;;  %v3269_v14 = vld [vmem:[#allocation20_spill] sm:$0xff]  ;;  %v3270_v15 = vld [vmem:[#allocation21_spill] sm:$0xff] }
 0x35e   :  { %1146 = vmatprep.subr.mxu0 %v2180_v16  ;;  %1217 = vmatprep.subr.mxu1 %v2182_v17  ;;  %v3271_v16 = vld [vmem:[#allocation22_spill] sm:$0xff]  ;;  %v3272_v17 = vld [vmem:[#allocation23_spill] sm:$0xff] }
 0x35f   :  { %1147 = vmatpush1.msra.mxu0 %v2188_v18  ;;  %1218 = vmatpush1.msra.mxu1 %v2190_v19  ;;  %v3273_v18 = vld [vmem:[#allocation24_spill] sm:$0xff]  ;;  %v3274_v19 = vld [vmem:[#allocation25_spill] sm:$0xff] }
 0x360   :  { %1148 = vmatprep.subr.mxu0 %v2199_v21  ;;  %1219 = vmatprep.subr.mxu1 %v2201_v22  ;;  %v3275_v21 = vld [vmem:[#allocation26_spill] sm:$0xff]  ;;  %v3276_v22 = vld [vmem:[#allocation27_spill] sm:$0xff] }
 0x361   :  { %1149 = vmatpush1.msra.mxu0 %v2205_v23  ;;  %1220 = vmatpush1.msra.mxu1 %v2207_v24  ;;  %v3277_v23 = vmov 0.0   ;;  %v3278_v24 = vld [vmem:[#allocation28_spill] sm:$0xff] }
 0x362   :  { %1150 = vmatprep.subr.mxu0 %v2209_v25  ;;  %1221 = vmatprep.subr.mxu1 %v2211_v26  ;;  %v2713_v25 = vld [vmem:[#allocation5 + $0x1e8] sm:$0xff]  ;;  %v2716_v26 = vld [vmem:[#allocation5 + $0x1f8] sm:$0xff] }
 0x363   :  { %1151 = vmatpush1.msra.mxu0 %v2217_v27  ;;  %1222 = vmatpush1.msra.mxu1 %v2219_v28  ;;  %3279 = vst [vmem:[#allocation11_spill] sm:$0xff] %v2713_v25  ;;  %3280 = vst [vmem:[#allocation29_spill] sm:$0xff] %v2716_v26  ;;  %v3281_v28 = vld [vmem:[#allocation37_spill] sm:$0xff] }
 0x364   :  { %1152 = vmatprep.subr.mxu0 %v2228_v30  ;;  %1223 = vmatprep.subr.mxu1 %v2230_v31 }
 0x365   :  { %1153 = vmatpush1.msra.mxu0 %v2234_v32  ;;  %1224 = vmatpush1.msra.mxu1 %v2236_v33  ;;  %v3282_v33 = vld [vmem:[#allocation39_spill] sm:$0xff] }
 0x366   :  { %1154 = vmatprep.subr.mxu0 %v2238_v34  ;;  %1225 = vmatprep.subr.mxu1 %v2240_v35 }
 0x367   :  { %1155 = vmatpush1.msra.mxu0 %v2246_v36  ;;  %1226 = vmatpush1.msra.mxu1 %v2248_v37 }
 0x368   :  { %1156 = vmatprep.subr.mxu0 %v2257_v39  ;;  %1227 = vmatprep.subr.mxu1 %v2259_v40  ;;  %v3283_v39 = vld [vmem:[#allocation40_spill] sm:$0xff] }
 0x369   :  { %1157 = vmatpush1.msra.mxu0 %v2263_v41  ;;  %1228 = vmatpush1.msra.mxu1 %v2265_v42 }
 0x36a   :  { %1158 = vmatprep.subr.mxu0 %v2267_v43  ;;  %1229 = vmatprep.subr.mxu1 %v2269_v44  ;;  %v3284_v43 = vld [vmem:[#allocation38_spill] sm:$0xff] }
 0x36b   :  { %1159 = vmatpush1.msra.mxu0 %v2275_v45  ;;  %1230 = vmatpush1.msra.mxu1 %v2277_v46 }
 0x36c   :  { %1160 = vmatprep.subr.mxu0 %v2286_v48  ;;  %1231 = vmatprep.subr.mxu1 %v2288_v49 }
 0x36d   :  { %1161 = vmatpush1.msra.mxu0 %v2292_v50  ;;  %1232 = vmatpush1.msra.mxu1 %v2294_v51 }
 0x36e   :  { %1162 = vmatprep.subr.mxu0 %v3212_v0  ;;  %1233 = vmatprep.subr.mxu1 %v2298_v53 }
 0x36f   :  { %1163 = vmatpush1.msra.mxu0 %v2304_v54  ;;  %1234 = vmatpush1.msra.mxu1 %v3261_v5  ;;  %v2769_v5 = vld [vmem:[#allocation5 + $0x168] sm:$0xff] }
 0x370   :  { %1164 = vmatprep.subr.mxu0 %v3262_v6  ;;  %1235 = vmatprep.subr.mxu1 %v3263_v7  ;;  %v2772_v6 = vld [vmem:[#allocation5 + $0x178] sm:$0xff]  ;;  %v2775_v7 = vld [vmem:[#allocation5 + $0x160] sm:$0xff] }
 0x371   :  { %1165 = vmatpush1.msra.mxu0 %v3264_v8  ;;  %1236 = vmatpush1.msra.mxu1 %v3265_v9  ;;  %v2778_v8 = vld [vmem:[#allocation5 + $0x170] sm:$0xff]  ;;  %v2781_v9 = vld [vmem:[#allocation5 + $0x148] sm:$0xff] }
 0x372   :  { %1166 = vmatprep.subr.mxu0 %v3266_v10  ;;  %1237 = vmatprep.subr.mxu1 %v3267_v12  ;;  %v2784_v10 = vld [vmem:[#allocation5 + $0x158] sm:$0xff]  ;;  %v2787_v12 = vld [vmem:[#allocation5 + $0x140] sm:$0xff] }
 0x373   :  { %1167 = vmatpush1.msra.mxu0 %v3268_v13  ;;  %1238 = vmatpush1.msra.mxu1 %v3269_v14  ;;  %v2790_v13 = vld [vmem:[#allocation5 + $0x150] sm:$0xff]  ;;  %v2793_v14 = vld [vmem:[#allocation5 + $0x128] sm:$0xff] }
 0x374   :  { %1168 = vmatprep.subr.mxu0 %v3270_v15  ;;  %1239 = vmatprep.subr.mxu1 %v3271_v16  ;;  %v2796_v15 = vld [vmem:[#allocation5 + $0x138] sm:$0xff]  ;;  %v2799_v16 = vld [vmem:[#allocation5 + $0x120] sm:$0xff] }
 0x375   :  { %1169 = vmatpush1.msra.mxu0 %v3272_v17  ;;  %1240 = vmatpush1.msra.mxu1 %v3273_v18  ;;  %v2802_v17 = vld [vmem:[#allocation5 + $0x130] sm:$0xff]  ;;  %v2805_v18 = vld [vmem:[#allocation5 + $0x108] sm:$0xff] }
 0x376   :  { %1170 = vmatprep.subr.mxu0 %v3274_v19  ;;  %1241 = vmatprep.subr.mxu1 %v3275_v21  ;;  %v2808_v19 = vld [vmem:[#allocation5 + $0x118] sm:$0xff]  ;;  %v2811_v21 = vld [vmem:[#allocation5 + $0x100] sm:$0xff] }
 0x377   :  { %1171 = vmatpush1.msra.mxu0 %v3276_v22  ;;  %1204 = vmatprep.mubr.f32.mxu0 %v3277_v23  ;;  %v2814_v22 = vld [vmem:[#allocation5 + $0x110] sm:$0xff] }
 0x378   :  { %1242 = vmatpush1.msra.mxu1 %v3278_v24  ;;  %1275 = vmatprep.mubr.f32.mxu1 %v3277_v23  ;;  %v2817_v24 = vld [vmem:[#allocation5 + $0xe8] sm:$0xff] }
 0x379   :  { %1315 = vmatprep.subr.mxu0 %v2713_v25  ;;  %1386 = vmatprep.subr.mxu1 %v2716_v26 }
 0x418   :  { %v1031_v27 = vpop.f32.mrf.mxu0  ;;  %v1102_v35 = vpop.f32.mrf.mxu1 }
 0x419   :  { %v1107_v30 = vadd.f32 %v1031_v27, %v3281_v28  ;;  %v1109_v44 = vadd.f32 %v1102_v35, %v3284_v43  ;;  %v2820_v27 = vld [vmem:[#allocation5 + $0xf8] sm:$0xff]  ;;  %v2823_v28 = vld [vmem:[#allocation5 + $0xe0] sm:$0xff]  ;;  %v2841_v35 = vld [vmem:[#allocation5 + $0xa8] sm:$0xff] }
 0x41a   :  { %v1033_v31 = vpop.f32.mrf.mxu0  ;;  %v1104_v37 = vpop.f32.mrf.mxu1  ;;  %v2862_v43 = vld [vmem:[#allocation5 + $0x90] sm:$0xff] }
 0x41b   :  { %v1851_v32 = vmul.f32 -1.442695, %v1107_v30  ;;  %v1108_v34 = vadd.f32 %v1033_v31, %v3282_v33  ;;  %v1110_v40 = vadd.f32 %v1104_v37, %v3283_v39  ;;  %v2826_v30 = vld [vmem:[#allocation5 + $0xf0] sm:$0xff]  ;;  %v2829_v31 = vld [vmem:[#allocation5 + $0xc8] sm:$0xff]  ;;  %v2835_v33 = vld [vmem:[#allocation5 + $0xc0] sm:$0xff]  ;;  %3285 = vst [vmem:[#allocation31_spill] sm:$0xff] %v2862_v43 }
 0x41c   :  { %v2847_v37 = vld [vmem:[#allocation5 + $0xa0] sm:$0xff]  ;;  %v2850_v39 = vld [vmem:[#allocation5 + $0xb0] sm:$0xff] }
 0x41d   :  { %1919 = vpow2.f32 %v1851_v32  ;;  %v1852_v36 = vmul.f32 -1.442695, %v1108_v34  ;;  %v1853_v41 = vmul.f32 -1.442695, %v1110_v40  ;;  %v2832_v32 = vld [vmem:[#allocation5 + $0xd8] sm:$0xff]  ;;  %v2838_v34 = vld [vmem:[#allocation5 + $0xd0] sm:$0xff] }
 0x41e   :  { %v2853_v40 = vld [vmem:[#allocation5 + $0x88] sm:$0xff] }
 0x41f   :  { %1921 = vpow2.f32 %v1852_v36  ;;  %v2844_v36 = vld [vmem:[#allocation5 + $0xb8] sm:$0xff] }
 0x420   :  { %1923 = vpow2.f32 %v1853_v41  ;;  %v2856_v41 = vld [vmem:[#allocation5 + $0x98] sm:$0xff] }
 0x42a   :  { %v1920_v42 = vpop.eup %1919 }
 0x42b   :  { %v1114_v45 = vadd.f32 1.0, %v1920_v42  ;;  %v2859_v42 = vld [vmem:[#allocation5 + $0x80] sm:$0xff] }
 0x42c   :  { %v1922_v46 = vpop.eup %1921 }
 0x42d   :  { %1925 = vrcp.f32 %v1114_v45  ;;  %v1120_v48 = vadd.f32 1.0, %v1922_v46  ;;  %v1924_v49 = vpop.eup %1923  ;;  %v2868_v45 = vld [vmem:[#allocation5 + $0x78] sm:$0xff]  ;;  %v2871_v46 = vld [vmem:[#allocation5 + $0x60] sm:$0xff] }
 0x42e   :  { %1927 = vtanh.f32 %v1109_v44  ;;  %v1127_v54 = vadd.f32 1.0, %v1924_v49  ;;  %v2865_v44 = vld [vmem:[#allocation5 + $0x68] sm:$0xff]  ;;  %3287 = vst [vmem:[#allocation30_spill] sm:$0xff] %v2868_v45  ;;  %3288 = vst [vmem:[#allocation9_spill] sm:$0xff] %v2871_v46 }
 0x42f   :  { %1929 = vrcp.f32 %v1120_v48  ;;  %3286 = vst [vmem:[#allocation32_spill] sm:$0xff] %v2865_v44  ;;  %v2874_v48 = vld [vmem:[#allocation5 + $0x70] sm:$0xff]  ;;  %v2877_v49 = vld [vmem:[#allocation5 + $0x48] sm:$0xff] }
 0x430   :  { %1931 = vrcp.f32 %v1127_v54  ;;  %3289 = vst [vmem:[#allocation10_spill] sm:$0xff] %v2874_v48  ;;  %3290 = vst [vmem:[#allocation33_spill] sm:$0xff] %v2877_v49  ;;  %v2889_v54 = vld [vmem:[#allocation5 + $0x28] sm:$0xff] }
 0x431   :  { %3294 = vst [vmem:[#allocation12_spill] sm:$0xff] %v2889_v54 }
 0x43a   :  { %v1926_v50 = vpop.eup %1925 }
 0x43b   :  { %v1928_v51 = vpop.eup %1927 }
 0x43c   :  { %v1930_v53 = vpop.eup %1929  ;;  %v1131_v0 = vmul.f32 %v1928_v51, %v1926_v50  ;;  %v2880_v50 = vld [vmem:[#allocation5 + $0x58] sm:$0xff]  ;;  %v2883_v51 = vld [vmem:[#allocation5 + $0x40] sm:$0xff] }
 0x43d   :  { %v1130_v29 = vmul.f32 %v1930_v53, %v2646_v20  ;;  %v1932_v57 = vpop.eup %1931  ;;  %v2757_v20 = vld [vmem:[#allocation5 + $0x188] sm:$0xff]  ;;  %3291 = vst [vmem:[#allocation35_spill] sm:$0xff] %v2880_v50  ;;  %3292 = vst [vmem:[#allocation36_spill] sm:$0xff] %v2883_v51  ;;  %v2886_v53 = vld [vmem:[#allocation5 + $0x50] sm:$0xff] }
 0x43e   :  { %3293 = vst [vmem:[#allocation34_spill] sm:$0xff] %v2886_v53 }
 0x43f   :  { %v2724_v61 = vadd.f32 %v1131_v0, %v1130_v29  ;;  %v2892_v0 = vld [vmem:[#allocation5 + $0x38] sm:$0xff]  ;;  %v2895_v29 = vld [vmem:[#allocation5 + $0x20] sm:$0xff] }
 0x440   :  { %3295 = vst [vmem:[#allocation13_spill] sm:$0xff] %v2892_v0  ;;  %3296 = vst [vmem:[#allocation14_spill] sm:$0xff] %v2895_v29 }
 0x441   :  { %1933 = vtanh.f32 %v2724_v61 }
 0x44e   :  { %v1934_v62 = vpop.eup %1933 }
 0x44f   :  { %v1134_v63 = vmul.f32 %v1934_v62, %v1932_v57  ;;  %v2898_v57 = vld [vmem:[#allocation5 + $0x30] sm:$0xff]  ;;  %v2901_v62 = vld [vmem:[#allocation5 + $0x8] sm:$0xff] }
 0x450   :  { %3297 = vst [vmem:[#allocation15_spill] sm:$0xff] %v2898_v57  ;;  %3298 = vst [vmem:[#allocation16_spill] sm:$0xff] %v2901_v62 }
 0x451   :  { %1205 = vmatmul.mubr.f32.vlgmr.msra.gmra.mxu0 %v1134_v63  ;;  %1276 = vmatmul.mubr.f32.vlgmr.msra.gmra.mxu1 %v1134_v63  ;;  %v2904_v63 = vld [vmem:[#allocation5 + $0x18] sm:$0xff] }
 0x452   :  { %1316 = vmatpush1.msra.mxu0 %v2727_v1  ;;  %1387 = vmatpush1.msra.mxu1 %v2730_v4  ;;  %3299 = vst [vmem:[#allocation17_spill] sm:$0xff] %v2904_v63 }
 0x453   :  { %1317 = vmatprep.subr.mxu0 %v2733_v56  ;;  %1388 = vmatprep.subr.mxu1 %v2736_v60 }
 0x454   :  { %1318 = vmatpush1.msra.mxu0 %v2739_v11  ;;  %1389 = vmatpush1.msra.mxu1 %v2742_v58 }
 0x455   :  { %1319 = vmatprep.subr.mxu0 %v2745_v47  ;;  %1390 = vmatprep.subr.mxu1 %v2748_v52 }
 0x456   :  { %1320 = vmatpush1.msra.mxu0 %v2751_v59  ;;  %1391 = vmatpush1.msra.mxu1 %v2754_v2 }
 0x457   :  { %1321 = vmatprep.subr.mxu0 %v2757_v20  ;;  %1392 = vmatprep.subr.mxu1 %v2760_v55 }
 0x458   :  { %1322 = vmatpush1.msra.mxu0 %v2763_v3  ;;  %1393 = vmatpush1.msra.mxu1 %v2766_v38 }
 0x459   :  { %1323 = vmatprep.subr.mxu0 %v2769_v5  ;;  %1394 = vmatprep.subr.mxu1 %v2772_v6 }
 0x45a   :  { %1324 = vmatpush1.msra.mxu0 %v2775_v7  ;;  %1395 = vmatpush1.msra.mxu1 %v2778_v8 }
 0x45b   :  { %1325 = vmatprep.subr.mxu0 %v2781_v9  ;;  %1396 = vmatprep.subr.mxu1 %v2784_v10 }
 0x45c   :  { %1326 = vmatpush1.msra.mxu0 %v2787_v12  ;;  %1397 = vmatpush1.msra.mxu1 %v2790_v13 }
 0x45d   :  { %1327 = vmatprep.subr.mxu0 %v2793_v14  ;;  %1398 = vmatprep.subr.mxu1 %v2796_v15 }
 0x45e   :  { %1328 = vmatpush1.msra.mxu0 %v2799_v16  ;;  %1399 = vmatpush1.msra.mxu1 %v2802_v17 }
 0x45f   :  { %1329 = vmatprep.subr.mxu0 %v2805_v18  ;;  %1400 = vmatprep.subr.mxu1 %v2808_v19 }
 0x460   :  { %1330 = vmatpush1.msra.mxu0 %v2811_v21  ;;  %1401 = vmatpush1.msra.mxu1 %v2814_v22 }
 0x461   :  { %1331 = vmatprep.subr.mxu0 %v2817_v24  ;;  %1402 = vmatprep.subr.mxu1 %v2820_v27 }
 0x462   :  { %1332 = vmatpush1.msra.mxu0 %v2823_v28  ;;  %1403 = vmatpush1.msra.mxu1 %v2826_v30 }
 0x463   :  { %1333 = vmatprep.subr.mxu0 %v2829_v31  ;;  %1404 = vmatprep.subr.mxu1 %v2832_v32 }
 0x464   :  { %1334 = vmatpush1.msra.mxu0 %v2835_v33  ;;  %1405 = vmatpush1.msra.mxu1 %v2838_v34 }
 0x465   :  { %1335 = vmatprep.subr.mxu0 %v2841_v35  ;;  %1406 = vmatprep.subr.mxu1 %v2844_v36 }
 0x466   :  { %1336 = vmatpush1.msra.mxu0 %v2847_v37  ;;  %1407 = vmatpush1.msra.mxu1 %v2850_v39 }
 0x467   :  { %1337 = vmatprep.subr.mxu0 %v2853_v40  ;;  %1408 = vmatprep.subr.mxu1 %v2856_v41 }
 0x468   :  { %1338 = vmatpush1.msra.mxu0 %v2859_v42  ;;  %1409 = vmatpush1.msra.mxu1 %v2862_v43 }
 0x469   :  { %1339 = vmatprep.subr.mxu0 %v2865_v44  ;;  %1410 = vmatprep.subr.mxu1 %v2868_v45  ;;  %v3305_v44 = vld [vmem:[#allocation42_spill] sm:$0xff] }
 0x46a   :  { %1340 = vmatpush1.msra.mxu0 %v2871_v46  ;;  %1411 = vmatpush1.msra.mxu1 %v2874_v48  ;;  %v3304_v46 = vld [vmem:[#allocation44_spill] sm:$0xff] }
 0x46b   :  { %1341 = vmatprep.subr.mxu0 %v2877_v49  ;;  %1412 = vmatprep.subr.mxu1 %v2880_v50 }
 0x46c   :  { %1342 = vmatpush1.msra.mxu0 %v2883_v51  ;;  %1413 = vmatpush1.msra.mxu1 %v2886_v53  ;;  %v3303_v51 = vld [vmem:[#allocation43_spill] sm:$0xff] }
 0x46d   :  { %1343 = vmatprep.subr.mxu0 %v2889_v54  ;;  %1414 = vmatprep.subr.mxu1 %v2892_v0  ;;  %v2907_v54 = vld [vmem:[#allocation5] sm:$0xff]  ;;  %v2911_v0 = vld [vmem:[#allocation5 + $0x10] sm:$0xff] }
 0x46e   :  { %1344 = vmatpush1.msra.mxu0 %v2895_v29  ;;  %1415 = vmatpush1.msra.mxu1 %v2898_v57  ;;  %3300 = vst [vmem:[#allocation18_spill] sm:$0xff] %v2907_v54  ;;  %3301 = vst [vmem:[#allocation19_spill] sm:$0xff] %v2911_v0  ;;  %v3302_v57 = vld [vmem:[#allocation41_spill] sm:$0xff] }
 0x46f   :  { %1345 = vmatprep.subr.mxu0 %v2901_v62  ;;  %1416 = vmatprep.subr.mxu1 %v2904_v63 }
 0x470   :  { %1346 = vmatpush1.msra.mxu0 %v2907_v54  ;;  %1379 = vmatprep.mubr.f32.mxu0 %v3277_v23 }
 0x471   :  { %1417 = vmatpush1.msra.mxu1 %v2911_v0  ;;  %1450 = vmatprep.mubr.f32.mxu1 %v3277_v23 }
 0x472   :  { %1490 = vmatprep.subr.mxu0 %v2713_v25  ;;  %1561 = vmatprep.subr.mxu1 %v2716_v26 }
 0x511   :  { %v1206_v62 = vpop.f32.mrf.mxu0  ;;  %v1277_v54 = vpop.f32.mrf.mxu1 }
 0x512   :  { %v1282_v29 = vadd.f32 %v1206_v62, %v3302_v57  ;;  %v1284_v25 = vadd.f32 %v1277_v54, %v3305_v44  ;;  %v3311_v54 = vld [vmem:[#allocation33_spill] sm:$0xff] }
 0x513   :  { %v1208_v63 = vpop.f32.mrf.mxu0  ;;  %v1279_v48 = vpop.f32.mrf.mxu1 }
 0x514   :  { %v1854_v53 = vmul.f32 -1.442695, %v1282_v29  ;;  %v1283_v50 = vadd.f32 %v1208_v63, %v3303_v51  ;;  %v1285_v0 = vadd.f32 %v1279_v48, %v3304_v46  ;;  %v3310_v48 = vld [vmem:[#allocation10_spill] sm:$0xff] }
 0x516   :  { %1935 = vpow2.f32 %v1854_v53  ;;  %v1855_v49 = vmul.f32 -1.442695, %v1283_v50  ;;  %v1856_v45 = vmul.f32 -1.442695, %v1285_v0  ;;  %v3312_v0 = vld [vmem:[#allocation35_spill] sm:$0xff] }
 0x518   :  { %1937 = vpow2.f32 %v1855_v49 }
 0x519   :  { %1939 = vpow2.f32 %v1856_v45 }
 0x523   :  { %v1936_v23 = vpop.eup %1935 }
 0x524   :  { %v1289_v43 = vadd.f32 1.0, %v1936_v23 }
 0x525   :  { %v1938_v26 = vpop.eup %1937 }
 0x526   :  { %1941 = vrcp.f32 %v1289_v43  ;;  %v1295_v57 = vadd.f32 1.0, %v1938_v26  ;;  %v1940_v29 = vpop.eup %1939  ;;  %v3307_v26 = vld [vmem:[#allocation32_spill] sm:$0xff]  ;;  %v3309_v43 = vld [vmem:[#allocation9_spill] sm:$0xff] }
 0x527   :  { %1943 = vtanh.f32 %v1284_v25  ;;  %v1302_v50 = vadd.f32 1.0, %v1940_v29  ;;  %v3306_v25 = vld [vmem:[#allocation31_spill] sm:$0xff]  ;;  %v3314_v29 = vld [vmem:[#allocation34_spill] sm:$0xff] }
 0x528   :  { %1945 = vrcp.f32 %v1295_v57  ;;  %v3313_v57 = vld [vmem:[#allocation36_spill] sm:$0xff] }
 0x529   :  { %1947 = vrcp.f32 %v1302_v50  ;;  %v3318_v50 = vld [vmem:[#allocation15_spill] sm:$0xff] }
 0x533   :  { %v1942_v51 = vpop.eup %1941 }
 0x534   :  { %v1944_v53 = vpop.eup %1943 }
 0x535   :  { %v1946_v62 = vpop.eup %1945  ;;  %v1306_v49 = vmul.f32 %v1944_v53, %v1942_v51  ;;  %v3315_v51 = vld [vmem:[#allocation12_spill] sm:$0xff]  ;;  %v3316_v53 = vld [vmem:[#allocation13_spill] sm:$0xff] }
 0x536   :  { %v1305_v63 = vmul.f32 %v1946_v62, %v2724_v61  ;;  %v1948_v23 = vpop.eup %1947  ;;  %v3308_v61 = vld [vmem:[#allocation30_spill] sm:$0xff] }
 0x537   :  { %v3317_v62 = vld [vmem:[#allocation14_spill] sm:$0xff] }
 0x538   :  { %v2922_v46 = vadd.f32 %v1306_v49, %v1305_v63  ;;  %v3319_v49 = vld [vmem:[#allocation16_spill] sm:$0xff]  ;;  %v3320_v63 = vld [vmem:[#allocation17_spill] sm:$0xff] }
 0x53a   :  { %1949 = vtanh.f32 %v2922_v46 }
 0x547   :  { %v1950_v44 = vpop.eup %1949 }
 0x548   :  { %v1309_v45 = vmul.f32 %v1950_v44, %v1948_v23  ;;  %v3321_v23 = vld [vmem:[#allocation18_spill] sm:$0xff]  ;;  %v3322_v44 = vmov 0.0  }
 0x54a   :  { %1380 = vmatmul.mubr.f32.vlgmr.msra.gmra.mxu0 %v1309_v45  ;;  %1451 = vmatmul.mubr.f32.vlgmr.msra.gmra.mxu1 %v1309_v45  ;;  %v3323_v45 = vld [vmem:[#allocation19_spill] sm:$0xff] }
 0x54b   :  { %1491 = vmatpush1.msra.mxu0 %v2727_v1  ;;  %1562 = vmatpush1.msra.mxu1 %v2730_v4 }
 0x54c   :  { %1492 = vmatprep.subr.mxu0 %v2733_v56  ;;  %1563 = vmatprep.subr.mxu1 %v2736_v60 }
 0x54d   :  { %1493 = vmatpush1.msra.mxu0 %v2739_v11  ;;  %1564 = vmatpush1.msra.mxu1 %v2742_v58 }
 0x54e   :  { %1494 = vmatprep.subr.mxu0 %v2745_v47  ;;  %1565 = vmatprep.subr.mxu1 %v2748_v52 }
 0x54f   :  { %1495 = vmatpush1.msra.mxu0 %v2751_v59  ;;  %1566 = vmatpush1.msra.mxu1 %v2754_v2 }
 0x550   :  { %1496 = vmatprep.subr.mxu0 %v2757_v20  ;;  %1567 = vmatprep.subr.mxu1 %v2760_v55 }
 0x551   :  { %1497 = vmatpush1.msra.mxu0 %v2763_v3  ;;  %1568 = vmatpush1.msra.mxu1 %v2766_v38 }
 0x552   :  { %1498 = vmatprep.subr.mxu0 %v2769_v5  ;;  %1569 = vmatprep.subr.mxu1 %v2772_v6 }
 0x553   :  { %1499 = vmatpush1.msra.mxu0 %v2775_v7  ;;  %1570 = vmatpush1.msra.mxu1 %v2778_v8 }
 0x554   :  { %1500 = vmatprep.subr.mxu0 %v2781_v9  ;;  %1571 = vmatprep.subr.mxu1 %v2784_v10 }
 0x555   :  { %1501 = vmatpush1.msra.mxu0 %v2787_v12  ;;  %1572 = vmatpush1.msra.mxu1 %v2790_v13 }
 0x556   :  { %1502 = vmatprep.subr.mxu0 %v2793_v14  ;;  %1573 = vmatprep.subr.mxu1 %v2796_v15 }
 0x557   :  { %1503 = vmatpush1.msra.mxu0 %v2799_v16  ;;  %1574 = vmatpush1.msra.mxu1 %v2802_v17 }
 0x558   :  { %1504 = vmatprep.subr.mxu0 %v2805_v18  ;;  %1575 = vmatprep.subr.mxu1 %v2808_v19 }
 0x559   :  { %1505 = vmatpush1.msra.mxu0 %v2811_v21  ;;  %1576 = vmatpush1.msra.mxu1 %v2814_v22 }
 0x55a   :  { %1506 = vmatprep.subr.mxu0 %v2817_v24  ;;  %1577 = vmatprep.subr.mxu1 %v2820_v27 }
 0x55b   :  { %1507 = vmatpush1.msra.mxu0 %v2823_v28  ;;  %1578 = vmatpush1.msra.mxu1 %v2826_v30 }
 0x55c   :  { %1508 = vmatprep.subr.mxu0 %v2829_v31  ;;  %1579 = vmatprep.subr.mxu1 %v2832_v32 }
 0x55d   :  { %1509 = vmatpush1.msra.mxu0 %v2835_v33  ;;  %1580 = vmatpush1.msra.mxu1 %v2838_v34 }
 0x55e   :  { %1510 = vmatprep.subr.mxu0 %v2841_v35  ;;  %1581 = vmatprep.subr.mxu1 %v2844_v36 }
 0x55f   :  { %1511 = vmatpush1.msra.mxu0 %v2847_v37  ;;  %1582 = vmatpush1.msra.mxu1 %v2850_v39 }
 0x560   :  { %1512 = vmatprep.subr.mxu0 %v2853_v40  ;;  %1583 = vmatprep.subr.mxu1 %v2856_v41 }
 0x561   :  { %1513 = vmatpush1.msra.mxu0 %v2859_v42  ;;  %1584 = vmatpush1.msra.mxu1 %v3306_v25 }
 0x562   :  { %1514 = vmatprep.subr.mxu0 %v3307_v26  ;;  %1585 = vmatprep.subr.mxu1 %v3308_v61  ;;  %v3329_v26 = vld [vmem:[#allocation46_spill] sm:$0xff] }
 0x563   :  { %1515 = vmatpush1.msra.mxu0 %v3309_v43  ;;  %1586 = vmatpush1.msra.mxu1 %v3310_v48  ;;  %v3328_v43 = vld [vmem:[#allocation48_spill] sm:$0xff] }
 0x564   :  { %1516 = vmatprep.subr.mxu0 %v3311_v54  ;;  %1587 = vmatprep.subr.mxu1 %v3312_v0 }
 0x565   :  { %1517 = vmatpush1.msra.mxu0 %v3313_v57  ;;  %1588 = vmatpush1.msra.mxu1 %v3314_v29  ;;  %v3324_v29 = vld [vmem:[#allocation11_spill] sm:$0xff] }
 0x566   :  { %1518 = vmatprep.subr.mxu0 %v3315_v51  ;;  %1589 = vmatprep.subr.mxu1 %v3316_v53  ;;  %v3325_v51 = vld [vmem:[#allocation29_spill] sm:$0xff] }
 0x567   :  { %1519 = vmatpush1.msra.mxu0 %v3317_v62  ;;  %1590 = vmatpush1.msra.mxu1 %v3318_v50  ;;  %v3326_v62 = vld [vmem:[#allocation45_spill] sm:$0xff] }
 0x568   :  { %1520 = vmatprep.subr.mxu0 %v3319_v49  ;;  %1591 = vmatprep.subr.mxu1 %v3320_v63  ;;  %v3327_v49 = vld [vmem:[#allocation47_spill] sm:$0xff] }
 0x569   :  { %1521 = vmatpush1.msra.mxu0 %v3321_v23  ;;  %1554 = vmatprep.mubr.f32.mxu0 %v3322_v44 }
 0x56a   :  { %1592 = vmatpush1.msra.mxu1 %v3323_v45  ;;  %1625 = vmatprep.mubr.f32.mxu1 %v3322_v44 }
 0x56b   :  { %1665 = vmatprep.subr.mxu0 %v3324_v29  ;;  %1736 = vmatprep.subr.mxu1 %v3325_v51 }
 0x60a   :  { %v1381_v53 = vpop.f32.mrf.mxu0  ;;  %v1452_v63 = vpop.f32.mrf.mxu1 }
 0x60b   :  { %v1457_v57 = vadd.f32 %v1381_v53, %v3326_v62  ;;  %v1459_v29 = vadd.f32 %v1452_v63, %v3329_v26 }
 0x60c   :  { %v1383_v50 = vpop.f32.mrf.mxu0  ;;  %v1454_v48 = vpop.f32.mrf.mxu1 }
 0x60d   :  { %v1857_v0 = vmul.f32 -1.442695, %v1457_v57  ;;  %v1458_v54 = vadd.f32 %v1383_v50, %v3327_v49  ;;  %v1460_v45 = vadd.f32 %v1454_v48, %v3328_v43 }
 0x60f   :  { %1951 = vpow2.f32 %v1857_v0  ;;  %v1858_v23 = vmul.f32 -1.442695, %v1458_v54  ;;  %v1859_v61 = vmul.f32 -1.442695, %v1460_v45  ;;  %v3352_v45 = vld [vmem:[#allocation53_spill] sm:$0xff] }
 0x611   :  { %1953 = vpow2.f32 %v1858_v23 }
 0x612   :  { %1955 = vpow2.f32 %v1859_v61 }
 0x61c   :  { %v1952_v44 = vpop.eup %1951 }
 0x61d   :  { %v1464_v25 = vadd.f32 1.0, %v1952_v44 }
 0x61e   :  { %v1954_v51 = vpop.eup %1953 }
 0x61f   :  { %1957 = vrcp.f32 %v1464_v25  ;;  %v1470_v53 = vadd.f32 1.0, %v1954_v51  ;;  %v1956_v57 = vpop.eup %1955 }
 0x620   :  { %1959 = vtanh.f32 %v1459_v29  ;;  %v1477_v54 = vadd.f32 1.0, %v1956_v57  ;;  %v3353_v57 = vld [vmem:[#allocation54_spill] sm:$0xff] }
 0x621   :  { %1961 = vrcp.f32 %v1470_v53 }
 0x622   :  { %1963 = vrcp.f32 %v1477_v54 }
 0x62c   :  { %v1958_v62 = vpop.eup %1957 }
 0x62d   :  { %v1960_v0 = vpop.eup %1959 }
 0x62e   :  { %v1962_v50 = vpop.eup %1961  ;;  %v1481_v49 = vmul.f32 %v1960_v0, %v1958_v62 }
 0x62f   :  { %v1480_v23 = vmul.f32 %v1962_v50, %v2922_v46  ;;  %v1964_v26 = vpop.eup %1963 }
 0x631   :  { %v2996_v43 = vadd.f32 %v1481_v49, %v1480_v23  ;;  %v3354_v49 = vld [vmem:[#allocation56_spill] sm:$0xff] }
 0x633   :  { %1965 = vtanh.f32 %v2996_v43 }
 0x640   :  { %v1966_v48 = vpop.eup %1965 }
 0x641   :  { %v1484_v61 = vmul.f32 %v1966_v48, %v1964_v26  ;;  %v3355_v48 = vld [vmem:[#allocation55_spill] sm:$0xff] }
 0x643   :  { %1555 = vmatmul.mubr.f32.vlgmr.msra.gmra.mxu0 %v1484_v61  ;;  %1626 = vmatmul.mubr.f32.vlgmr.msra.gmra.mxu1 %v1484_v61 }
 0x644   :  { %1666 = vmatpush1.msra.mxu0 %v2727_v1  ;;  %1737 = vmatpush1.msra.mxu1 %v2730_v4  ;;  %v3330_v1 = vld [vmem:[#allocation31_spill] sm:$0xff]  ;;  %v3331_v4 = vld [vmem:[#allocation32_spill] sm:$0xff] }
 0x645   :  { %1667 = vmatprep.subr.mxu0 %v2733_v56  ;;  %1738 = vmatprep.subr.mxu1 %v2736_v60  ;;  %v3332_v56 = vld [vmem:[#allocation30_spill] sm:$0xff]  ;;  %v3333_v60 = vld [vmem:[#allocation9_spill] sm:$0xff] }
 0x646   :  { %1668 = vmatpush1.msra.mxu0 %v2739_v11  ;;  %1739 = vmatpush1.msra.mxu1 %v2742_v58  ;;  %v3334_v11 = vld [vmem:[#allocation10_spill] sm:$0xff]  ;;  %v3335_v58 = vld [vmem:[#allocation33_spill] sm:$0xff] }
 0x647   :  { %1669 = vmatprep.subr.mxu0 %v2745_v47  ;;  %1740 = vmatprep.subr.mxu1 %v2748_v52  ;;  %v3336_v47 = vld [vmem:[#allocation35_spill] sm:$0xff]  ;;  %v3337_v52 = vld [vmem:[#allocation36_spill] sm:$0xff] }
 0x648   :  { %1670 = vmatpush1.msra.mxu0 %v2751_v59  ;;  %1741 = vmatpush1.msra.mxu1 %v2754_v2  ;;  %v3338_v59 = vld [vmem:[#allocation34_spill] sm:$0xff]  ;;  %v3339_v2 = vld [vmem:[#allocation12_spill] sm:$0xff] }
 0x649   :  { %1671 = vmatprep.subr.mxu0 %v2757_v20  ;;  %1742 = vmatprep.subr.mxu1 %v2760_v55  ;;  %v3340_v20 = vld [vmem:[#allocation13_spill] sm:$0xff]  ;;  %v3341_v55 = vld [vmem:[#allocation14_spill] sm:$0xff] }
 0x64a   :  { %1672 = vmatpush1.msra.mxu0 %v2763_v3  ;;  %1743 = vmatpush1.msra.mxu1 %v2766_v38  ;;  %v3342_v3 = vld [vmem:[#allocation15_spill] sm:$0xff]  ;;  %v3343_v38 = vld [vmem:[#allocation16_spill] sm:$0xff] }
 0x64b   :  { %1673 = vmatprep.subr.mxu0 %v2769_v5  ;;  %1744 = vmatprep.subr.mxu1 %v2772_v6  ;;  %v3344_v5 = vld [vmem:[#allocation17_spill] sm:$0xff]  ;;  %v3345_v6 = vld [vmem:[#allocation18_spill] sm:$0xff] }
 0x64c   :  { %1674 = vmatpush1.msra.mxu0 %v2775_v7  ;;  %1745 = vmatpush1.msra.mxu1 %v2778_v8  ;;  %v3346_v7 = vmov 0.0   ;;  %v3347_v8 = vld [vmem:[#allocation19_spill] sm:$0xff] }
 0x64d   :  { %1675 = vmatprep.subr.mxu0 %v2781_v9  ;;  %1746 = vmatprep.subr.mxu1 %v2784_v10  ;;  %v3348_v10 = vld [vmem:[#allocation49_spill] sm:$0xff] }
 0x64e   :  { %1676 = vmatpush1.msra.mxu0 %v2787_v12  ;;  %1747 = vmatpush1.msra.mxu1 %v2790_v13 }
 0x64f   :  { %1677 = vmatprep.subr.mxu0 %v2793_v14  ;;  %1748 = vmatprep.subr.mxu1 %v2796_v15  ;;  %v3349_v15 = vld [vmem:[#allocation51_spill] sm:$0xff] }
 0x650   :  { %1678 = vmatpush1.msra.mxu0 %v2799_v16  ;;  %1749 = vmatpush1.msra.mxu1 %v2802_v17 }
 0x651   :  { %1679 = vmatprep.subr.mxu0 %v2805_v18  ;;  %1750 = vmatprep.subr.mxu1 %v2808_v19 }
 0x652   :  { %1680 = vmatpush1.msra.mxu0 %v2811_v21  ;;  %1751 = vmatpush1.msra.mxu1 %v2814_v22  ;;  %v3350_v21 = vld [vmem:[#allocation52_spill] sm:$0xff] }
 0x653   :  { %1681 = vmatprep.subr.mxu0 %v2817_v24  ;;  %1752 = vmatprep.subr.mxu1 %v2820_v27 }
 0x654   :  { %1682 = vmatpush1.msra.mxu0 %v2823_v28  ;;  %1753 = vmatpush1.msra.mxu1 %v2826_v30  ;;  %v3351_v28 = vld [vmem:[#allocation50_spill] sm:$0xff] }
 0x655   :  { %1683 = vmatprep.subr.mxu0 %v2829_v31  ;;  %1754 = vmatprep.subr.mxu1 %v2832_v32 }
 0x656   :  { %1684 = vmatpush1.msra.mxu0 %v2835_v33  ;;  %1755 = vmatpush1.msra.mxu1 %v2838_v34 }
 0x657   :  { %1685 = vmatprep.subr.mxu0 %v2841_v35  ;;  %1756 = vmatprep.subr.mxu1 %v2844_v36 }
 0x658   :  { %1686 = vmatpush1.msra.mxu0 %v2847_v37  ;;  %1757 = vmatpush1.msra.mxu1 %v2850_v39 }
 0x659   :  { %1687 = vmatprep.subr.mxu0 %v2853_v40  ;;  %1758 = vmatprep.subr.mxu1 %v2856_v41 }
 0x65a   :  { %1688 = vmatpush1.msra.mxu0 %v2859_v42  ;;  %1759 = vmatpush1.msra.mxu1 %v3330_v1 }
 0x65b   :  { %1689 = vmatprep.subr.mxu0 %v3331_v4  ;;  %1760 = vmatprep.subr.mxu1 %v3332_v56 }
 0x65c   :  { %1690 = vmatpush1.msra.mxu0 %v3333_v60  ;;  %1761 = vmatpush1.msra.mxu1 %v3334_v11 }
 0x65d   :  { %1691 = vmatprep.subr.mxu0 %v3335_v58  ;;  %1762 = vmatprep.subr.mxu1 %v3336_v47 }
 0x65e   :  { %1692 = vmatpush1.msra.mxu0 %v3337_v52  ;;  %1763 = vmatpush1.msra.mxu1 %v3338_v59 }
 0x65f   :  { %1693 = vmatprep.subr.mxu0 %v3339_v2  ;;  %1764 = vmatprep.subr.mxu1 %v3340_v20 }
 0x660   :  { %1694 = vmatpush1.msra.mxu0 %v3341_v55  ;;  %1765 = vmatpush1.msra.mxu1 %v3342_v3 }
 0x661   :  { %1695 = vmatprep.subr.mxu0 %v3343_v38  ;;  %1766 = vmatprep.subr.mxu1 %v3344_v5 }
 0x662   :  { %1696 = vmatpush1.msra.mxu0 %v3345_v6  ;;  %1729 = vmatprep.mubr.f32.mxu0 %v3346_v7 }
 0x663   :  { %1767 = vmatpush1.msra.mxu1 %v3347_v8  ;;  %1800 = vmatprep.mubr.f32.mxu1 %v3346_v7 }
 0x703   :  { %v1556_v9 = vpop.f32.mrf.mxu0  ;;  %v1627_v17 = vpop.f32.mrf.mxu1 }
 0x704   :  { %v1632_v12 = vadd.f32 %v1556_v9, %v3348_v10  ;;  %v1634_v30 = vadd.f32 %v1627_v17, %v3351_v28 }
 0x705   :  { %v1558_v13 = vpop.f32.mrf.mxu0  ;;  %v1629_v19 = vpop.f32.mrf.mxu1 }
 0x706   :  { %v1860_v14 = vmul.f32 -1.442695, %v1632_v12  ;;  %v1633_v16 = vadd.f32 %v1558_v13, %v3349_v15  ;;  %v1635_v22 = vadd.f32 %v1629_v19, %v3350_v21 }
 0x708   :  { %1967 = vpow2.f32 %v1860_v14  ;;  %v1861_v18 = vmul.f32 -1.442695, %v1633_v16  ;;  %v1862_v24 = vmul.f32 -1.442695, %v1635_v22 }
 0x70a   :  { %1969 = vpow2.f32 %v1861_v18 }
 0x70b   :  { %1971 = vpow2.f32 %v1862_v24 }
 0x715   :  { %v1968_v27 = vpop.eup %1967 }
 0x716   :  { %v1639_v31 = vadd.f32 1.0, %v1968_v27 }
 0x717   :  { %v1970_v32 = vpop.eup %1969 }
 0x718   :  { %1973 = vrcp.f32 %v1639_v31  ;;  %v1645_v33 = vadd.f32 1.0, %v1970_v32  ;;  %v1972_v34 = vpop.eup %1971 }
 0x719   :  { %1975 = vtanh.f32 %v1634_v30  ;;  %v1652_v39 = vadd.f32 1.0, %v1972_v34 }
 0x71a   :  { %1977 = vrcp.f32 %v1645_v33 }
 0x71b   :  { %1979 = vrcp.f32 %v1652_v39 }
 0x725   :  { %v1974_v35 = vpop.eup %1973 }
 0x726   :  { %v1976_v36 = vpop.eup %1975 }
 0x727   :  { %v1978_v37 = vpop.eup %1977  ;;  %v1656_v40 = vmul.f32 %v1976_v36, %v1974_v35 }
 0x728   :  { %v1655_v41 = vmul.f32 %v1978_v37, %v2996_v43  ;;  %v1980_v46 = vpop.eup %1979 }
 0x72a   :  { %v1657_v42 = vadd.f32 %v1656_v40, %v1655_v41 }
 0x72c   :  { %1981 = vtanh.f32 %v1657_v42 }
 0x739   :  { %v1982_v25 = vpop.eup %1981 }
 0x73a   :  { %v1659_v63 = vmul.f32 %v1982_v25, %v1980_v46 }
 0x73c   :  { %1730 = vmatmul.mubr.f32.vlgmr.msra.gmra.mxu0 %v1659_v63  ;;  %1801 = vmatmul.mubr.f32.vlgmr.msra.gmra.mxu1 %v1659_v63 }
 0x7fc   :  { %v1731_v44 = vpop.f32.mrf.mxu0  ;;  %v1802_v0 = vpop.f32.mrf.mxu1 }
 0x7fd   :  { %v1807_v29 = vadd.f32 %v1731_v44, %v3352_v45  ;;  %v1809_v61 = vadd.f32 %v1802_v0, %v3355_v48 }
 0x7fe   :  { %v1733_v51 = vpop.f32.mrf.mxu0  ;;  %v1804_v54 = vpop.f32.mrf.mxu1 }
 0x7ff   :  { %v1863_v53 = vmul.f32 -1.442695, %v1807_v29  ;;  %v1808_v62 = vadd.f32 %v1733_v51, %v3353_v57  ;;  %v1810_v23 = vadd.f32 %v1804_v54, %v3354_v49 }
 0x801   :  { %1983 = vpow2.f32 %v1863_v53  ;;  %v1864_v50 = vmul.f32 -1.442695, %v1808_v62  ;;  %v1865_v43 = vmul.f32 -1.442695, %v1810_v23 }
 0x803   :  { %1985 = vpow2.f32 %v1864_v50 }
 0x804   :  { %1987 = vpow2.f32 %v1865_v43 }
 0x80e   :  { %v1984_v26 = vpop.eup %1983 }
 0x80f   :  { %v1814_v1 = vadd.f32 1.0, %v1984_v26 }
 0x810   :  { %v1986_v4 = vpop.eup %1985 }
 0x811   :  { %1989 = vrcp.f32 %v1814_v1  ;;  %v1820_v56 = vadd.f32 1.0, %v1986_v4  ;;  %v1988_v60 = vpop.eup %1987 }
 0x812   :  { %1991 = vtanh.f32 %v1809_v61  ;;  %v1827_v52 = vadd.f32 1.0, %v1988_v60 }
 0x813   :  { %1993 = vrcp.f32 %v1820_v56 }
 0x814   :  { %1995 = vrcp.f32 %v1827_v52 }
 0x81e   :  { %v1990_v11 = vpop.eup %1989 }
 0x81f   :  { %v1992_v58 = vpop.eup %1991 }
 0x820   :  { %v1994_v47 = vpop.eup %1993  ;;  %v1831_v59 = vmul.f32 %v1992_v58, %v1990_v11 }
 0x821   :  { %v1830_v2 = vmul.f32 %v1994_v47, %v1657_v42  ;;  %v1996_v55 = vpop.eup %1995 }
 0x823   :  { %v1832_v20 = vadd.f32 %v1831_v59, %v1830_v2 }
 0x825   :  { %1997 = vtanh.f32 %v1832_v20 }
 0x832   :  { %v1998_v3 = vpop.eup %1997 }
 0x833   :  { %v1834_v38 = vmul.f32 %v1998_v3, %v1996_v55 }
 0x835   :  { %1835 = vst [vmem:[%s3078_s3] sm:$0xff] %v1834_v38 }
 0x836   :  { %1840 = vsyncpa [#allocation4], 1 }
 0x837   :  { %1841 = vsyncpa [#allocation6], 1 }

// kernel: lstm_model_forward.3
= control target key start
LH: loop header
LB: loop body
LE: loop exit
PB: predicated region body
PF: predicated region fallthrough
CT: control target
= control target key end

     0   :  { %8 = vsyncpa [#allocation3], 0  ;;  %s4863_s0 = inlined_call_operand.vmem [shape: f32[8,128], index: 0, kind: input, shape index: {}]   ;;  %s4864_s1 = inlined_call_operand.hbm [shape: bf16[128,10240], index: 1, kind: input, shape index: {}]   ;;  %s4865_s2 = inlined_call_operand.hbm [shape: f32[1,10240], index: 2, kind: input, shape index: {}]   ;;  %s4866_s3 = inlined_call_operand.vmem [shape: f32[4,8,2560], index: 3, kind: output, shape index: {}]  }
   0x1   :  { %10 = vsyncpa [#allocation3 + $0x1], 0 }
   0x2   :  { %11 = vsyncpa [#allocation5], 0 }
   0x3   :  { %13 = vsyncpa [#allocation5 + $0x1], 0  ;;  %s3191_s12 = smov 0   ;;  %s3193_s13 = smov 0  }
   0x4   :  { %s3195_s14 = smov 0   ;;  %s3197_s15 = smov 0  }
   0x5 LB: > { %s3210_s16 = sadd.s32 4294967295, %s3163_s15   ;;  %s3213_s17 = sadd.s32 1, %s3163_s15   ;;  %s3163_s15 = sphi %s3197_s15, %s5047_s15   ;;  %s3159_s14 = sphi %s3195_s14, %s5046_s14   ;;  %s3155_s13 = sphi %s3193_s13, %s5045_s13   ;;  %s3151_s12 = sphi %s3191_s12, %s5044_s12  }
   0x6   : > { %s44_s18 = ssub.s32 %s3163_s15, %s3213_s17  ;;  %s47_s19 = sadd.s32 1, %s3159_s14 }
   0x7   : > { %p45_p0 = scmp.eq.s32.totalorder %s44_s18, 0  ;;  %p54_p1 = scmp.ne.s32.totalorder %s3159_s14, %s3155_s13 }
   0x8   : > { %p55_p2 = scmp.eq.s32.totalorder %s3163_s15, 0  ;;  %p60_p3 = scmp.ne.s32.totalorder %s3155_s13, %s3151_s12 }
   0x9   : > { %s3223_s20 = scalar_select %p45_p0, %s3159_s14, %s47_s19  }
   0xa   : > { %p56_p4 = por %p55_p2, %p54_p1  ;;  %p61_p5 = scmp.eq.s32.totalorder %s3210_s16, 0 }
   0xb   : > { %p2630_p6 = scmp.lt.s32.totalorder %s3163_s15, 4  ;;  %s3232_s22 = sand.u32 1, %s3159_s14  }
   0xc   : > { %p3227_p7 = por %p61_p5, %p60_p3  ;;  %s2615_s23 = smul.u32 1280, %s3232_s22 }
   0xd   : > { %s2612_s24 = smul.u32 1280, %s3163_s15  ;;  %p3236_p8 = pnand %p2630_p6, %p56_p4 }
   0xe   : > { %s4925_s21 = scalar_select %p3227_p7, 1, 0 }
   0xf   : > { %s3243_s28 = scalar_lea.hbm %s4864_s1, %s2612_s24  ;;  %s138_s29 = scalar_lea.vmem [#allocation2], %s2615_s23 }
  0x10   : > { %s145_s30 = sshll.u32 %s138_s29, 4  ;;  %s135_s4 = scalar_lea.sflag [#allocation3], %s3232_s22  ;;  %s3245_s30 = int_to_ptr.vmem [resolvable:$true] %s145_s30 }
  0x11   : > { %s3069_s5 = scalar_lea.hbm %s3243_s28, 20480  ;;  %p3071_p10 = pneg %p3236_p8 }
  0x12   : > { %p3070_p9 = scmp.ne.s32.totalorder %s3243_s28, %s3069_s5  ;;  %s3074_s8 = scalar_lea.hbm %s4864_s1, 81920 }
  0x13   : > { %p3075_p13 = scmp.lt.s32.totalorder %s3243_s28, %s4864_s1  ;;  %p3076_p0 = scmp.lt.s32.totalorder %s3074_s8, %s3069_s5 }
  0x14   : > { %p3072_p11 = pnand %p3071_p10, %p3070_p9 }
  0x15   : > { %p3077_p1 = por %p3076_p0, %p3075_p13 }
  0x16   : > { %p3073_p12 = pneg %p3072_p11 }
  0x18   : > { %p3078_p2 = pnand %p3077_p1, %p3073_p12 }
  0x1a   : > { %3081 = shalt.err (!%p3078_p2)
}
  0x1b   : > { %s3082_s11 = scalar_lea.vmem %s3245_s30, 20480  ;;  %s3165_s12 = smov [#allocation2]  }
  0x1c   : > { %p3083_p3 = scmp.ne.s32.totalorder %s3245_s30, %s3082_s11  ;;  %s3087_s18 = sshll.u32 %s3165_s12, 4  ;;  %s3088_s18 = int_to_ptr.vmem [resolvable:$false] %s3087_s18 }
  0x1d   : > { %s3089_s19 = scalar_lea.vmem %s3088_s18, 40960  ;;  %p3090_p6 = scmp.lt.s32.totalorder %s3245_s30, %s3088_s18 }
  0x1e   : > { %p3085_p4 = pnand %p3083_p3, %p3071_p10  ;;  %p3091_p9 = scmp.lt.s32.totalorder %s3089_s19, %s3082_s11 }
  0x20   : > { %p3086_p5 = pneg %p3085_p4  ;;  %p3092_p11 = por %p3091_p9, %p3090_p6 }
  0x22   : > { %p3093_p13 = pnand %p3092_p11, %p3086_p5 }
  0x24   : > { %3096 = shalt.err (!%p3093_p13)
}
  0x25   : > { %s3166_s23 = smov 5120   ;;  %s3167_s24 = smov 1280  }
  0x26   : > { %s3168_s26 = smov 80   ;;  %p2447_p12 = scmp.ge.s32.totalorder %s3163_s15, 1 }
  0x27   : > { %2626 = dma.hbm_to_vmem [thread:$0]  (!%p3236_p8), %s3243_s28, 20480, %s3245_s30, %s135_s4, %s3166_s23, %s3167_s24, %s3168_s26  }
  0x28   : > { %p172_p0 = scmp.lt.s32.totalorder %s3163_s15, 5  ;;  %s2616_s27 = smul.u32 20, %s3232_s22 }
  0x29   : > { %s2613_s5 = smul.u32 320, %s3163_s15  ;;  %s156_s28 = scalar_lea.sflag [#allocation5], %s3232_s22 }
  0x2a   : > { %p3277_p1 = pnand %p2447_p12, %p172_p0  ;;  %s159_s9 = scalar_lea.vmem [#allocation4], %s2616_s27 }
  0x2b   : > { %s3285_s8 = scalar_lea.hbm %s4865_s2, %s2613_s5  ;;  %s167_s10 = sshll.u32 %s159_s9, 4  ;;  %s168_s10 = int_to_ptr.vmem [resolvable:$true] %s167_s10 }
  0x2c   : > { %s4927_s29 = scalar_select %p3277_p1, 1, 0 }
  0x2d   : > { %s3097_s30 = scalar_lea.hbm %s3285_s8, 320  ;;  %s3102_s11 = scalar_lea.hbm %s4865_s2, 1280 }
  0x2e   : > { %p3098_p2 = scmp.ne.s32.totalorder %s3285_s8, %s3097_s30  ;;  %p3103_p5 = scmp.lt.s32.totalorder %s3285_s8, %s4865_s2 }
  0x2f   : > { %p3104_p6 = scmp.lt.s32.totalorder %s3102_s11, %s3097_s30 }
  0x30   : > { %p3100_p3 = pnand %p3098_p2, %p3071_p10 }
  0x31   : > { %p3105_p9 = por %p3104_p6, %p3103_p5 }
  0x32   : > { %p3101_p4 = pneg %p3100_p3 }
  0x34   : > { %p3106_p11 = pnand %p3105_p9, %p3101_p4 }
  0x36   : > { %3109 = shalt.err (!%p3106_p11)
}
  0x37   : > { %s3110_s19 = scalar_lea.vmem %s168_s10, 320  ;;  %s3169_s22 = smov [#allocation4]  }
  0x38   : > { %p3111_p13 = scmp.ne.s32.totalorder %s168_s10, %s3110_s19  ;;  %s3115_s23 = sshll.u32 %s3169_s22, 4  ;;  %s3116_s23 = int_to_ptr.vmem [resolvable:$false] %s3115_s23 }
  0x39   : > { %s3117_s24 = scalar_lea.vmem %s3116_s23, 640  ;;  %p3118_p2 = scmp.lt.s32.totalorder %s168_s10, %s3116_s23 }
  0x3a   : > { %p3113_p12 = pnand %p3111_p13, %p3071_p10  ;;  %p3119_p3 = scmp.lt.s32.totalorder %s3117_s24, %s3110_s19 }
  0x3c   : > { %p3114_p0 = pneg %p3113_p12  ;;  %p3120_p7 = por %p3119_p3, %p3118_p2 }
  0x3e   : > { %p3121_p1 = pnand %p3120_p7, %p3114_p0 }
  0x40   : > { %3124 = shalt.err (!%p3121_p1)
}
  0x41   : > { %2629 = dma.hbm_to_vmem [thread:$0]  (!%p3236_p8), %s3285_s8, 320, %s168_s10, %s156_s28  }
  0x42   : > { %p4928_p4 = scmp.ne.s32.totalorder %s4927_s29, 0 }
  0x43   : > { %s178_s26 = sand.u32 (!%p4928_p4), 1, %s3155_s13   ;;  %p4929_p10 = scmp.ne.s32.totalorder (!%p4928_p4), %s4925_s21, 0 }
  0x44   : > { %176 = sbr.rel (%p4928_p4) target bundleno = 952 (0x3b8), region = 32  ;;  %s179_s5 = scalar_lea.sflag (!%p4928_p4), [#allocation3], %s178_s26 }
  0x45   : > { %s2617_s27 = smul.u32 (!%p4928_p4), 1280, %s178_s26 }
  0x47   : > { %s3309_s6 = scalar_lea.vmem (!%p4928_p4), [#allocation2], %s2617_s27 }
  0x49   : > { %3142 = dma.done.wait (%p4929_p10), %s179_s5, 20480  }
  0x4a   : > { %3144 = vsyncadd (%p4929_p10), %s179_s5, 4294946816  ;;  %s2618_s7 = smul.u32 20, %s178_s26  ;;  %s188_s25 = scalar_lea.sflag [#allocation5], %s178_s26 }
  0x4c   : > { %s3315_s9 = scalar_lea.vmem [#allocation4], %s2618_s7 }
  0x4d   : > { %3146 = dma.done.wait (%p4929_p10), %s188_s25, 320  }
  0x4e   : > { %3148 = vsyncadd (%p4929_p10), %s188_s25, 4294966976  ;;  %v3170_v0 = vmov 0   ;;  %v2667_v1 = vld [vmem:[%s3309_s6 + $0x464] ss:$80 sps:$4 sm:$0xff]   ;;  %v2669_v2 = vld [vmem:[%s3309_s6 + $0x46c] ss:$80 sps:$4 sm:$0xff]  }
  0x4f   : > { %1317 = vmatprep.mubr.bf16.mxu0 %v3170_v0  ;;  %1358 = vmatprep.mubr.bf16.mxu1 %v3170_v0  ;;  %v2671_v3 = vld [vmem:[%s3309_s6 + $0x460] ss:$80 sps:$4 sm:$0xff]   ;;  %v2672_v4 = vld [vmem:[%s3309_s6 + $0x468] ss:$80 sps:$4 sm:$0xff]   ;;  %v2673_v5 = vld [vmem:[%s3309_s6 + $0x3c4] ss:$80 sps:$4 sm:$0xff]  }
  0x50   : > { %1285 = vmatprep.subr.bf16.mxu0 %v2667_v1  ;;  %1326 = vmatprep.subr.bf16.mxu1 %v2669_v2  ;;  %v2675_v6 = vld [vmem:[%s3309_s6 + $0x3cc] ss:$80 sps:$4 sm:$0xff]   ;;  %v2677_v7 = vld [vmem:[%s3309_s6 + $0x3c0] ss:$80 sps:$4 sm:$0xff]   ;;  %v2678_v8 = vld [vmem:[%s3309_s6 + $0x3c8] ss:$80 sps:$4 sm:$0xff]  }
  0x51   : > { %1286 = vmatpush1.bf16.msra.mxu0 %v2671_v3  ;;  %1327 = vmatpush1.bf16.msra.mxu1 %v2672_v4  ;;  %v2679_v9 = vld [vmem:[%s3309_s6 + $0x324] ss:$80 sps:$4 sm:$0xff]   ;;  %v2681_v10 = vld [vmem:[%s3309_s6 + $0x32c] ss:$80 sps:$4 sm:$0xff]   ;;  %v2683_v11 = vld [vmem:[%s3309_s6 + $0x320] ss:$80 sps:$4 sm:$0xff]  }
  0x52   : > { %1287 = vmatprep.subr.bf16.mxu0 %v2673_v5  ;;  %1328 = vmatprep.subr.bf16.mxu1 %v2675_v6  ;;  %v2684_v12 = vld [vmem:[%s3309_s6 + $0x328] ss:$80 sps:$4 sm:$0xff]   ;;  %v2685_v13 = vld [vmem:[%s3309_s6 + $0x284] ss:$80 sps:$4 sm:$0xff]   ;;  %v2687_v14 = vld [vmem:[%s3309_s6 + $0x28c] ss:$80 sps:$4 sm:$0xff]  }
  0x53   : > { %v2689_v15 = vld [vmem:[%s3309_s6 + $0x280] ss:$80 sps:$4 sm:$0xff]   ;;  %v2690_v16 = vld [vmem:[%s3309_s6 + $0x288] ss:$80 sps:$4 sm:$0xff]   ;;  %v2691_v17 = vld [vmem:[%s3309_s6 + $0x1e4] ss:$80 sps:$4 sm:$0xff]  }
  0x54   : > { %v2693_v18 = vld [vmem:[%s3309_s6 + $0x1ec] ss:$80 sps:$4 sm:$0xff]   ;;  %v2695_v19 = vld [vmem:[%s3309_s6 + $0x1e0] ss:$80 sps:$4 sm:$0xff]   ;;  %v2696_v20 = vld [vmem:[%s3309_s6 + $0x1e8] ss:$80 sps:$4 sm:$0xff]  }
  0x55   : > { %1288 = vmatpush1.bf16.msra.mxu0 %v2677_v7  ;;  %1329 = vmatpush1.bf16.msra.mxu1 %v2678_v8  ;;  %v2697_v21 = vld [vmem:[%s3309_s6 + $0x144] ss:$80 sps:$4 sm:$0xff]   ;;  %v2699_v22 = vld [vmem:[%s3309_s6 + $0x14c] ss:$80 sps:$4 sm:$0xff]   ;;  %v2701_v23 = vld [vmem:[%s3309_s6 + $0x140] ss:$80 sps:$4 sm:$0xff]  }
  0x56   : > { %1289 = vmatprep.subr.bf16.mxu0 %v2679_v9  ;;  %1330 = vmatprep.subr.bf16.mxu1 %v2681_v10  ;;  %v2702_v24 = vld [vmem:[%s3309_s6 + $0x148] ss:$80 sps:$4 sm:$0xff]   ;;  %v2703_v25 = vld [vmem:[%s3309_s6 + $0xa4] ss:$80 sps:$4 sm:$0xff]   ;;  %v2705_v26 = vld [vmem:[%s3309_s6 + $0xac] ss:$80 sps:$4 sm:$0xff]  }
  0x57   : > { %v2707_v27 = vld [vmem:[%s3309_s6 + $0xa0] ss:$80 sps:$4 sm:$0xff]   ;;  %v2708_v28 = vld [vmem:[%s3309_s6 + $0xa8] ss:$80 sps:$4 sm:$0xff]   ;;  %v2709_v29 = vld [vmem:[%s3309_s6 + $0x4] ss:$80 sps:$4 sm:$0xff]  }
  0x58   : > { %v2711_v30 = vld [vmem:[%s3309_s6 + $0xc] ss:$80 sps:$4 sm:$0xff]   ;;  %v2713_v31 = vld [vmem:[%s3309_s6] ss:$80 sps:$4 sm:$0xff]   ;;  %v2714_v32 = vld [vmem:[%s3309_s6 + $0x8] ss:$80 sps:$4 sm:$0xff]  }
  0x59   : > { %1290 = vmatpush1.bf16.msra.mxu0 %v2683_v11  ;;  %1331 = vmatpush1.bf16.msra.mxu1 %v2684_v12  ;;  %v217_v33 = vld [vmem:[%s4863_s0] sm:$0xff]  ;;  %v2720_v35 = vld [vmem:[%s3309_s6 + $0x47c] ss:$80 sps:$4 sm:$0xff]   ;;  %v2718_v38 = vld [vmem:[%s3309_s6 + $0x478] ss:$80 sps:$4 sm:$0xff]   ;;  %s2614_s8 = smul.u32 160, %s3210_s16 }
  0x5a   : > { %1291 = vmatprep.subr.bf16.mxu0 %v2685_v13  ;;  %1332 = vmatprep.subr.bf16.mxu1 %v2687_v14  ;;  %v2717_v34 = vld [vmem:[%s3309_s6 + $0x474] ss:$80 sps:$4 sm:$0xff]   ;;  %v3360_v36 = vpack.c.bf16 %v217_v33, %v217_v33  ;;  %v2715_v37 = vld [vmem:[%s3309_s6 + $0x470] ss:$80 sps:$4 sm:$0xff]   ;;  %v2726_v40 = vld [vmem:[%s3309_s6 + $0x3dc] ss:$80 sps:$4 sm:$0xff]  }
  0x5b   : > { %v2723_v39 = vld [vmem:[%s3309_s6 + $0x3d4] ss:$80 sps:$4 sm:$0xff]   ;;  %v2721_v41 = vld [vmem:[%s3309_s6 + $0x3d0] ss:$80 sps:$4 sm:$0xff]   ;;  %v2724_v42 = vld [vmem:[%s3309_s6 + $0x3d8] ss:$80 sps:$4 sm:$0xff]   ;;  %s3529_s30 = scalar_lea.vmem %s4866_s3, %s2614_s8 }
  0x5c   : > { %v2729_v43 = vld [vmem:[%s3309_s6 + $0x334] ss:$80 sps:$4 sm:$0xff]   ;;  %v2732_v44 = vld [vmem:[%s3309_s6 + $0x33c] ss:$80 sps:$4 sm:$0xff]   ;;  %v2727_v45 = vld [vmem:[%s3309_s6 + $0x330] ss:$80 sps:$4 sm:$0xff]  }
  0x5d   : > { %1292 = vmatpush1.bf16.msra.mxu0 %v2689_v15  ;;  %1333 = vmatpush1.bf16.msra.mxu1 %v2690_v16  ;;  %v2730_v46 = vld [vmem:[%s3309_s6 + $0x338] ss:$80 sps:$4 sm:$0xff]   ;;  %v2735_v47 = vld [vmem:[%s3309_s6 + $0x294] ss:$80 sps:$4 sm:$0xff]   ;;  %v2738_v48 = vld [vmem:[%s3309_s6 + $0x29c] ss:$80 sps:$4 sm:$0xff]  }
  0x5e   : > { %1293 = vmatprep.subr.bf16.mxu0 %v2691_v17  ;;  %1334 = vmatprep.subr.bf16.mxu1 %v2693_v18  ;;  %v2733_v49 = vld [vmem:[%s3309_s6 + $0x290] ss:$80 sps:$4 sm:$0xff]   ;;  %v2736_v50 = vld [vmem:[%s3309_s6 + $0x298] ss:$80 sps:$4 sm:$0xff]   ;;  %v2741_v51 = vld [vmem:[%s3309_s6 + $0x1f4] ss:$80 sps:$4 sm:$0xff]  }
  0x5f   : > { %v2744_v52 = vld [vmem:[%s3309_s6 + $0x1fc] ss:$80 sps:$4 sm:$0xff]   ;;  %v2739_v53 = vld [vmem:[%s3309_s6 + $0x1f0] ss:$80 sps:$4 sm:$0xff]   ;;  %v2742_v54 = vld [vmem:[%s3309_s6 + $0x1f8] ss:$80 sps:$4 sm:$0xff]  }
  0x60   : > { %v2747_v55 = vld [vmem:[%s3309_s6 + $0x154] ss:$80 sps:$4 sm:$0xff]   ;;  %v2750_v56 = vld [vmem:[%s3309_s6 + $0x15c] ss:$80 sps:$4 sm:$0xff]   ;;  %v2745_v57 = vld [vmem:[%s3309_s6 + $0x150] ss:$80 sps:$4 sm:$0xff]  }
  0x61   : > { %1294 = vmatpush1.bf16.msra.mxu0 %v2695_v19  ;;  %1335 = vmatpush1.bf16.msra.mxu1 %v2696_v20  ;;  %v2748_v58 = vld [vmem:[%s3309_s6 + $0x158] ss:$80 sps:$4 sm:$0xff]   ;;  %v2753_v59 = vld [vmem:[%s3309_s6 + $0xb4] ss:$80 sps:$4 sm:$0xff]   ;;  %v2756_v60 = vld [vmem:[%s3309_s6 + $0xbc] ss:$80 sps:$4 sm:$0xff]  }
  0x62   : > { %1295 = vmatprep.subr.bf16.mxu0 %v2697_v21  ;;  %1336 = vmatprep.subr.bf16.mxu1 %v2699_v22  ;;  %v2751_v61 = vld [vmem:[%s3309_s6 + $0xb0] ss:$80 sps:$4 sm:$0xff]   ;;  %v2754_v62 = vld [vmem:[%s3309_s6 + $0xb8] ss:$80 sps:$4 sm:$0xff]   ;;  %v2759_v63 = vld [vmem:[%s3309_s6 + $0x14] ss:$80 sps:$4 sm:$0xff]  }
  0x63   : > { %v2762_v1 = vld [vmem:[%s3309_s6 + $0x1c] ss:$80 sps:$4 sm:$0xff]   ;;  %v2757_v2 = vld [vmem:[%s3309_s6 + $0x10] ss:$80 sps:$4 sm:$0xff]   ;;  %v2760_v3 = vld [vmem:[%s3309_s6 + $0x18] ss:$80 sps:$4 sm:$0xff]  }
  0x64   : > { %v2765_v4 = vld [vmem:[%s3309_s6 + $0x484] ss:$80 sps:$4 sm:$0xff]   ;;  %v2768_v5 = vld [vmem:[%s3309_s6 + $0x48c] ss:$80 sps:$4 sm:$0xff]   ;;  %v2763_v6 = vld [vmem:[%s3309_s6 + $0x480] ss:$80 sps:$4 sm:$0xff]  }
  0x65   : > { %1296 = vmatpush1.bf16.msra.mxu0 %v2701_v23  ;;  %1337 = vmatpush1.bf16.msra.mxu1 %v2702_v24  ;;  %v2766_v7 = vld [vmem:[%s3309_s6 + $0x488] ss:$80 sps:$4 sm:$0xff]   ;;  %v2771_v8 = vld [vmem:[%s3309_s6 + $0x3e4] ss:$80 sps:$4 sm:$0xff]   ;;  %v2774_v9 = vld [vmem:[%s3309_s6 + $0x3ec] ss:$80 sps:$4 sm:$0xff]  }
  0x66   : > { %1297 = vmatprep.subr.bf16.mxu0 %v2703_v25  ;;  %1338 = vmatprep.subr.bf16.mxu1 %v2705_v26  ;;  %v2769_v10 = vld [vmem:[%s3309_s6 + $0x3e0] ss:$80 sps:$4 sm:$0xff]   ;;  %v2772_v11 = vld [vmem:[%s3309_s6 + $0x3e8] ss:$80 sps:$4 sm:$0xff]   ;;  %v2777_v12 = vld [vmem:[%s3309_s6 + $0x344] ss:$80 sps:$4 sm:$0xff]  }
  0x67   : > { %v2780_v13 = vld [vmem:[%s3309_s6 + $0x34c] ss:$80 sps:$4 sm:$0xff]   ;;  %v2775_v14 = vld [vmem:[%s3309_s6 + $0x340] ss:$80 sps:$4 sm:$0xff]   ;;  %v2778_v15 = vld [vmem:[%s3309_s6 + $0x348] ss:$80 sps:$4 sm:$0xff]  }
  0x68   : > { %v2783_v16 = vld [vmem:[%s3309_s6 + $0x2a4] ss:$80 sps:$4 sm:$0xff]   ;;  %v2786_v17 = vld [vmem:[%s3309_s6 + $0x2ac] ss:$80 sps:$4 sm:$0xff]   ;;  %v2781_v18 = vld [vmem:[%s3309_s6 + $0x2a0] ss:$80 sps:$4 sm:$0xff]  }
  0x69   : > { %1298 = vmatpush1.bf16.msra.mxu0 %v2707_v27  ;;  %1339 = vmatpush1.bf16.msra.mxu1 %v2708_v28  ;;  %v2784_v19 = vld [vmem:[%s3309_s6 + $0x2a8] ss:$80 sps:$4 sm:$0xff]   ;;  %v2789_v20 = vld [vmem:[%s3309_s6 + $0x204] ss:$80 sps:$4 sm:$0xff]   ;;  %v2792_v21 = vld [vmem:[%s3309_s6 + $0x20c] ss:$80 sps:$4 sm:$0xff]  }
  0x6a   : > { %1299 = vmatprep.subr.bf16.mxu0 %v2709_v29  ;;  %1340 = vmatprep.subr.bf16.mxu1 %v2711_v30  ;;  %v2787_v22 = vld [vmem:[%s3309_s6 + $0x200] ss:$80 sps:$4 sm:$0xff]   ;;  %v2790_v23 = vld [vmem:[%s3309_s6 + $0x208] ss:$80 sps:$4 sm:$0xff]   ;;  %v2795_v24 = vld [vmem:[%s3309_s6 + $0x164] ss:$80 sps:$4 sm:$0xff]  }
  0x6b   : > { %v2798_v25 = vld [vmem:[%s3309_s6 + $0x16c] ss:$80 sps:$4 sm:$0xff]   ;;  %v2793_v26 = vld [vmem:[%s3309_s6 + $0x160] ss:$80 sps:$4 sm:$0xff]   ;;  %v2796_v27 = vld [vmem:[%s3309_s6 + $0x168] ss:$80 sps:$4 sm:$0xff]  }
  0x6c   : > { %v2801_v28 = vld [vmem:[%s3309_s6 + $0xc4] ss:$80 sps:$4 sm:$0xff]   ;;  %v2804_v29 = vld [vmem:[%s3309_s6 + $0xcc] ss:$80 sps:$4 sm:$0xff]   ;;  %v2799_v30 = vld [vmem:[%s3309_s6 + $0xc0] ss:$80 sps:$4 sm:$0xff]  }
  0x6d   : > { %1300 = vmatpush1.bf16.msra.mxu0 %v2713_v31  ;;  %1341 = vmatpush1.bf16.msra.mxu1 %v2714_v32  ;;  %v2802_v31 = vld [vmem:[%s3309_s6 + $0xc8] ss:$80 sps:$4 sm:$0xff]   ;;  %v2807_v32 = vld [vmem:[%s3309_s6 + $0x24] ss:$80 sps:$4 sm:$0xff]   ;;  %v2810_v33 = vld [vmem:[%s3309_s6 + $0x2c] ss:$80 sps:$4 sm:$0xff]  }
  0x6e   : > { %1367 = vmatprep.subr.bf16.mxu0 %v2717_v34  ;;  %1408 = vmatprep.subr.bf16.mxu1 %v2720_v35  ;;  %v2805_v34 = vld [vmem:[%s3309_s6 + $0x20] ss:$80 sps:$4 sm:$0xff]   ;;  %v2808_v35 = vld [vmem:[%s3309_s6 + $0x28] ss:$80 sps:$4 sm:$0xff]   ;;  %p2609_p7 = scmp.ne.s32.totalorder %s3210_s16, 3 }
  0x70   : > { %1318 = vmatmul.mubr.bf16.vlgmr.msra.gmra.mxu0 %v3360_v36  ;;  %1359 = vmatmul.mubr.bf16.vlgmr.msra.gmra.mxu1 %v3360_v36 }
  0x71   : > { %1368 = vmatpush1.bf16.msra.mxu0 %v2715_v37  ;;  %1409 = vmatpush1.bf16.msra.mxu1 %v2718_v38  ;;  %v2813_v37 = vld [vmem:[%s3309_s6 + $0x494] ss:$80 sps:$4 sm:$0xff]   ;;  %v2816_v38 = vld [vmem:[%s3309_s6 + $0x49c] ss:$80 sps:$4 sm:$0xff]  }
  0x72   : > { %1369 = vmatprep.subr.bf16.mxu0 %v2723_v39  ;;  %1410 = vmatprep.subr.bf16.mxu1 %v2726_v40  ;;  %v2811_v39 = vld [vmem:[%s3309_s6 + $0x490] ss:$80 sps:$4 sm:$0xff]   ;;  %v2814_v40 = vld [vmem:[%s3309_s6 + $0x498] ss:$80 sps:$4 sm:$0xff]  }
  0x73   : > { %1399 = vmatprep.mubr.bf16.mxu0 %v3170_v0  ;;  %1440 = vmatprep.mubr.bf16.mxu1 %v3170_v0 }
  0x75   : > { %1370 = vmatpush1.bf16.msra.mxu0 %v2721_v41  ;;  %1411 = vmatpush1.bf16.msra.mxu1 %v2724_v42  ;;  %v2819_v41 = vld [vmem:[%s3309_s6 + $0x3f4] ss:$80 sps:$4 sm:$0xff]   ;;  %v2822_v42 = vld [vmem:[%s3309_s6 + $0x3fc] ss:$80 sps:$4 sm:$0xff]  }
  0x76   : > { %1371 = vmatprep.subr.bf16.mxu0 %v2729_v43  ;;  %1412 = vmatprep.subr.bf16.mxu1 %v2732_v44  ;;  %v2817_v43 = vld [vmem:[%s3309_s6 + $0x3f0] ss:$80 sps:$4 sm:$0xff]   ;;  %v2820_v44 = vld [vmem:[%s3309_s6 + $0x3f8] ss:$80 sps:$4 sm:$0xff]  }
  0x79   : > { %1372 = vmatpush1.bf16.msra.mxu0 %v2727_v45  ;;  %1413 = vmatpush1.bf16.msra.mxu1 %v2730_v46  ;;  %v2825_v45 = vld [vmem:[%s3309_s6 + $0x354] ss:$80 sps:$4 sm:$0xff]   ;;  %v2828_v46 = vld [vmem:[%s3309_s6 + $0x35c] ss:$80 sps:$4 sm:$0xff]  }
  0x7a   : > { %1373 = vmatprep.subr.bf16.mxu0 %v2735_v47  ;;  %1414 = vmatprep.subr.bf16.mxu1 %v2738_v48  ;;  %v2823_v47 = vld [vmem:[%s3309_s6 + $0x350] ss:$80 sps:$4 sm:$0xff]   ;;  %v2826_v48 = vld [vmem:[%s3309_s6 + $0x358] ss:$80 sps:$4 sm:$0xff]  }
  0x7d   : > { %1374 = vmatpush1.bf16.msra.mxu0 %v2733_v49  ;;  %1415 = vmatpush1.bf16.msra.mxu1 %v2736_v50  ;;  %v2831_v49 = vld [vmem:[%s3309_s6 + $0x2b4] ss:$80 sps:$4 sm:$0xff]   ;;  %v2834_v50 = vld [vmem:[%s3309_s6 + $0x2bc] ss:$80 sps:$4 sm:$0xff]  }
  0x7e   : > { %1375 = vmatprep.subr.bf16.mxu0 %v2741_v51  ;;  %1416 = vmatprep.subr.bf16.mxu1 %v2744_v52  ;;  %v2829_v51 = vld [vmem:[%s3309_s6 + $0x2b0] ss:$80 sps:$4 sm:$0xff]   ;;  %v2832_v52 = vld [vmem:[%s3309_s6 + $0x2b8] ss:$80 sps:$4 sm:$0xff]  }
  0x81   : > { %1376 = vmatpush1.bf16.msra.mxu0 %v2739_v53  ;;  %1417 = vmatpush1.bf16.msra.mxu1 %v2742_v54  ;;  %v2837_v53 = vld [vmem:[%s3309_s6 + $0x214] ss:$80 sps:$4 sm:$0xff]   ;;  %v2840_v54 = vld [vmem:[%s3309_s6 + $0x21c] ss:$80 sps:$4 sm:$0xff]  }
  0x82   : > { %1377 = vmatprep.subr.bf16.mxu0 %v2747_v55  ;;  %1418 = vmatprep.subr.bf16.mxu1 %v2750_v56  ;;  %v2835_v55 = vld [vmem:[%s3309_s6 + $0x210] ss:$80 sps:$4 sm:$0xff]   ;;  %v2838_v56 = vld [vmem:[%s3309_s6 + $0x218] ss:$80 sps:$4 sm:$0xff]  }
  0x85   : > { %1378 = vmatpush1.bf16.msra.mxu0 %v2745_v57  ;;  %1419 = vmatpush1.bf16.msra.mxu1 %v2748_v58  ;;  %v2843_v57 = vld [vmem:[%s3309_s6 + $0x174] ss:$80 sps:$4 sm:$0xff]   ;;  %v2846_v58 = vld [vmem:[%s3309_s6 + $0x17c] ss:$80 sps:$4 sm:$0xff]  }
  0x86   : > { %1379 = vmatprep.subr.bf16.mxu0 %v2753_v59  ;;  %1420 = vmatprep.subr.bf16.mxu1 %v2756_v60  ;;  %v2841_v59 = vld [vmem:[%s3309_s6 + $0x170] ss:$80 sps:$4 sm:$0xff]   ;;  %v2844_v60 = vld [vmem:[%s3309_s6 + $0x178] ss:$80 sps:$4 sm:$0xff]  }
  0x89   : > { %1380 = vmatpush1.bf16.msra.mxu0 %v2751_v61  ;;  %1421 = vmatpush1.bf16.msra.mxu1 %v2754_v62  ;;  %v2849_v61 = vld [vmem:[%s3309_s6 + $0xd4] ss:$80 sps:$4 sm:$0xff]   ;;  %v2852_v62 = vld [vmem:[%s3309_s6 + $0xdc] ss:$80 sps:$4 sm:$0xff]  }
  0x8a   : > { %1381 = vmatprep.subr.bf16.mxu0 %v2759_v63  ;;  %1422 = vmatprep.subr.bf16.mxu1 %v2762_v1  ;;  %v2847_v63 = vld [vmem:[%s3309_s6 + $0xd0] ss:$80 sps:$4 sm:$0xff]   ;;  %v2850_v1 = vld [vmem:[%s3309_s6 + $0xd8] ss:$80 sps:$4 sm:$0xff]  }
  0x8d   : > { %1382 = vmatpush1.bf16.msra.mxu0 %v2757_v2  ;;  %1423 = vmatpush1.bf16.msra.mxu1 %v2760_v3  ;;  %v2855_v2 = vld [vmem:[%s3309_s6 + $0x34] ss:$80 sps:$4 sm:$0xff]   ;;  %v2858_v3 = vld [vmem:[%s3309_s6 + $0x3c] ss:$80 sps:$4 sm:$0xff]  }
  0x8e   : > { %1449 = vmatprep.subr.bf16.mxu0 %v2765_v4  ;;  %1490 = vmatprep.subr.bf16.mxu1 %v2768_v5  ;;  %v2853_v4 = vld [vmem:[%s3309_s6 + $0x30] ss:$80 sps:$4 sm:$0xff]   ;;  %v2856_v5 = vld [vmem:[%s3309_s6 + $0x38] ss:$80 sps:$4 sm:$0xff]  }
  0x90   : > { %1400 = vmatmul.mubr.bf16.vlgmr.msra.gmra.mxu0 %v3360_v36  ;;  %1441 = vmatmul.mubr.bf16.vlgmr.msra.gmra.mxu1 %v3360_v36 }
  0x91   : > { %1450 = vmatpush1.bf16.msra.mxu0 %v2763_v6  ;;  %1491 = vmatpush1.bf16.msra.mxu1 %v2766_v7  ;;  %v2861_v6 = vld [vmem:[%s3309_s6 + $0x4a4] ss:$80 sps:$4 sm:$0xff]   ;;  %v2864_v7 = vld [vmem:[%s3309_s6 + $0x4ac] ss:$80 sps:$4 sm:$0xff]  }
  0x92   : > { %1451 = vmatprep.subr.bf16.mxu0 %v2771_v8  ;;  %1492 = vmatprep.subr.bf16.mxu1 %v2774_v9  ;;  %v2859_v8 = vld [vmem:[%s3309_s6 + $0x4a0] ss:$80 sps:$4 sm:$0xff]   ;;  %v2862_v9 = vld [vmem:[%s3309_s6 + $0x4a8] ss:$80 sps:$4 sm:$0xff]  }
  0x93   : > { %1481 = vmatprep.mubr.bf16.mxu0 %v3170_v0  ;;  %1522 = vmatprep.mubr.bf16.mxu1 %v3170_v0 }
  0x95   : > { %1452 = vmatpush1.bf16.msra.mxu0 %v2769_v10  ;;  %1493 = vmatpush1.bf16.msra.mxu1 %v2772_v11  ;;  %v2867_v10 = vld [vmem:[%s3309_s6 + $0x404] ss:$80 sps:$4 sm:$0xff]   ;;  %v2870_v11 = vld [vmem:[%s3309_s6 + $0x40c] ss:$80 sps:$4 sm:$0xff]  }
  0x96   : > { %1453 = vmatprep.subr.bf16.mxu0 %v2777_v12  ;;  %1494 = vmatprep.subr.bf16.mxu1 %v2780_v13  ;;  %v2865_v12 = vld [vmem:[%s3309_s6 + $0x400] ss:$80 sps:$4 sm:$0xff]   ;;  %v2868_v13 = vld [vmem:[%s3309_s6 + $0x408] ss:$80 sps:$4 sm:$0xff]  }
  0x99   : > { %1454 = vmatpush1.bf16.msra.mxu0 %v2775_v14  ;;  %1495 = vmatpush1.bf16.msra.mxu1 %v2778_v15  ;;  %v2873_v14 = vld [vmem:[%s3309_s6 + $0x364] ss:$80 sps:$4 sm:$0xff]   ;;  %v2876_v15 = vld [vmem:[%s3309_s6 + $0x36c] ss:$80 sps:$4 sm:$0xff]  }
  0x9a   : > { %1455 = vmatprep.subr.bf16.mxu0 %v2783_v16  ;;  %1496 = vmatprep.subr.bf16.mxu1 %v2786_v17  ;;  %v2871_v16 = vld [vmem:[%s3309_s6 + $0x360] ss:$80 sps:$4 sm:$0xff]   ;;  %v2874_v17 = vld [vmem:[%s3309_s6 + $0x368] ss:$80 sps:$4 sm:$0xff]  }
  0x9d   : > { %1456 = vmatpush1.bf16.msra.mxu0 %v2781_v18  ;;  %1497 = vmatpush1.bf16.msra.mxu1 %v2784_v19  ;;  %v2879_v18 = vld [vmem:[%s3309_s6 + $0x2c4] ss:$80 sps:$4 sm:$0xff]   ;;  %v2882_v19 = vld [vmem:[%s3309_s6 + $0x2cc] ss:$80 sps:$4 sm:$0xff]  }
  0x9e   : > { %1457 = vmatprep.subr.bf16.mxu0 %v2789_v20  ;;  %1498 = vmatprep.subr.bf16.mxu1 %v2792_v21  ;;  %v2877_v20 = vld [vmem:[%s3309_s6 + $0x2c0] ss:$80 sps:$4 sm:$0xff]   ;;  %v2880_v21 = vld [vmem:[%s3309_s6 + $0x2c8] ss:$80 sps:$4 sm:$0xff]  }
  0xa1   : > { %1458 = vmatpush1.bf16.msra.mxu0 %v2787_v22  ;;  %1499 = vmatpush1.bf16.msra.mxu1 %v2790_v23  ;;  %v2888_v22 = vld [vmem:[%s3309_s6 + $0x22c] ss:$80 sps:$4 sm:$0xff]   ;;  %v2883_v23 = vld [vmem:[%s3309_s6 + $0x220] ss:$80 sps:$4 sm:$0xff]  }
  0xa2   : > { %1459 = vmatprep.subr.bf16.mxu0 %v2795_v24  ;;  %1500 = vmatprep.subr.bf16.mxu1 %v2798_v25  ;;  %v2886_v24 = vld [vmem:[%s3309_s6 + $0x228] ss:$80 sps:$4 sm:$0xff]   ;;  %v2891_v25 = vld [vmem:[%s3309_s6 + $0x184] ss:$80 sps:$4 sm:$0xff]  }
  0xa5   : > { %1460 = vmatpush1.bf16.msra.mxu0 %v2793_v26  ;;  %1501 = vmatpush1.bf16.msra.mxu1 %v2796_v27  ;;  %v2894_v26 = vld [vmem:[%s3309_s6 + $0x18c] ss:$80 sps:$4 sm:$0xff]   ;;  %v2889_v27 = vld [vmem:[%s3309_s6 + $0x180] ss:$80 sps:$4 sm:$0xff]  }
  0xa6   : > { %1461 = vmatprep.subr.bf16.mxu0 %v2801_v28  ;;  %1502 = vmatprep.subr.bf16.mxu1 %v2804_v29  ;;  %v2892_v28 = vld [vmem:[%s3309_s6 + $0x188] ss:$80 sps:$4 sm:$0xff]   ;;  %v2897_v29 = vld [vmem:[%s3309_s6 + $0xe4] ss:$80 sps:$4 sm:$0xff]  }
  0xa9   : > { %1462 = vmatpush1.bf16.msra.mxu0 %v2799_v30  ;;  %1503 = vmatpush1.bf16.msra.mxu1 %v2802_v31  ;;  %v2900_v30 = vld [vmem:[%s3309_s6 + $0xec] ss:$80 sps:$4 sm:$0xff]   ;;  %v2895_v31 = vld [vmem:[%s3309_s6 + $0xe0] ss:$80 sps:$4 sm:$0xff]  }
  0xaa   : > { %1463 = vmatprep.subr.bf16.mxu0 %v2807_v32  ;;  %1504 = vmatprep.subr.bf16.mxu1 %v2810_v33  ;;  %v2898_v32 = vld [vmem:[%s3309_s6 + $0xe8] ss:$80 sps:$4 sm:$0xff]   ;;  %v2903_v33 = vld [vmem:[%s3309_s6 + $0x44] ss:$80 sps:$4 sm:$0xff]  }
  0xad   : > { %1464 = vmatpush1.bf16.msra.mxu0 %v2805_v34  ;;  %1505 = vmatpush1.bf16.msra.mxu1 %v2808_v35  ;;  %v2906_v34 = vld [vmem:[%s3309_s6 + $0x4c] ss:$80 sps:$4 sm:$0xff]   ;;  %v2901_v35 = vld [vmem:[%s3309_s6 + $0x40] ss:$80 sps:$4 sm:$0xff]  }
  0xae   : > { %1531 = vmatprep.subr.bf16.mxu0 %v2813_v37  ;;  %1572 = vmatprep.subr.bf16.mxu1 %v2816_v38  ;;  %v2904_v37 = vld [vmem:[%s3309_s6 + $0x48] ss:$80 sps:$4 sm:$0xff]   ;;  %v385_v38 = vlaneseq }
  0xb0   : > { %1482 = vmatmul.mubr.bf16.vlgmr.msra.gmra.mxu0 %v3360_v36  ;;  %1523 = vmatmul.mubr.bf16.vlgmr.msra.gmra.mxu1 %v3360_v36 }
  0xb1   : > { %1532 = vmatpush1.bf16.msra.mxu0 %v2811_v39  ;;  %1573 = vmatpush1.bf16.msra.mxu1 %v2814_v40  ;;  %v3506_v39 = vshrl.u32 %v385_v38, 7 }
  0xb2   : > { %1533 = vmatprep.subr.bf16.mxu0 %v2819_v41  ;;  %1574 = vmatprep.subr.bf16.mxu1 %v2822_v42  ;;  %v379_v42 = vld [vmem:[%s3315_s9] sm:$0xff] }
  0xb3   : > { %1563 = vmatprep.mubr.bf16.mxu0 %v3170_v0  ;;  %1604 = vmatprep.mubr.bf16.mxu1 %v3170_v0  ;;  %v3509_v40 = vsub.s32 0, %v3506_v39  ;;  %v3512_v41 = vsub.s32 2, %v3506_v39 }
  0xb5   : > { %1534 = vmatpush1.bf16.msra.mxu0 %v2817_v43  ;;  %1575 = vmatpush1.bf16.msra.mxu1 %v2820_v44  ;;  %v3516_v43 = vsub.s32 1, %v3506_v39  ;;  %v3519_v44 = vsub.s32 3, %v3506_v39 }
  0xb6   : > { %1535 = vmatprep.subr.bf16.mxu0 %v2825_v45  ;;  %1576 = vmatprep.subr.bf16.mxu1 %v2828_v46  ;;  %v388_v45 = vrot.slane %v379_v42, %v3509_v40 }
  0xb7   : > { %v392_v46 = vrot.slane %v379_v42, %v3516_v43 }
  0xb9   : > { %1536 = vmatpush1.bf16.msra.mxu0 %v2823_v47  ;;  %1577 = vmatpush1.bf16.msra.mxu1 %v2826_v48  ;;  %v400_v47 = vrot.slane %v379_v42, %v3519_v44 }
  0xba   : > { %1537 = vmatprep.subr.bf16.mxu0 %v2831_v49  ;;  %1578 = vmatprep.subr.bf16.mxu1 %v2834_v50 }
  0xbd   : > { %1538 = vmatpush1.bf16.msra.mxu0 %v2829_v51  ;;  %1579 = vmatpush1.bf16.msra.mxu1 %v2832_v52 }
  0xbe   : > { %1539 = vmatprep.subr.bf16.mxu0 %v2837_v53  ;;  %1580 = vmatprep.subr.bf16.mxu1 %v2840_v54 }
  0xc1   : > { %1540 = vmatpush1.bf16.msra.mxu0 %v2835_v55  ;;  %1581 = vmatpush1.bf16.msra.mxu1 %v2838_v56 }
  0xc2   : > { %1541 = vmatprep.subr.bf16.mxu0 %v2843_v57  ;;  %1582 = vmatprep.subr.bf16.mxu1 %v2846_v58 }
  0xc5   : > { %1542 = vmatpush1.bf16.msra.mxu0 %v2841_v59  ;;  %1583 = vmatpush1.bf16.msra.mxu1 %v2844_v60  ;;  %v403_v60 = vsub.s32 4, %v3506_v39 }
  0xc6   : > { %1543 = vmatprep.subr.bf16.mxu0 %v2849_v61  ;;  %1584 = vmatprep.subr.bf16.mxu1 %v2852_v62  ;;  %v411_v61 = vsub.s32 6, %v3506_v39  ;;  %v407_v62 = vsub.s32 5, %v3506_v39 }
  0xc9   : > { %1544 = vmatpush1.bf16.msra.mxu0 %v2847_v63  ;;  %1585 = vmatpush1.bf16.msra.mxu1 %v2850_v1  ;;  %v415_v63 = vsub.s32 7, %v3506_v39  ;;  %v404_v1 = vrot.slane %v379_v42, %v403_v60 }
  0xca   : > { %1545 = vmatprep.subr.bf16.mxu0 %v2855_v2  ;;  %1586 = vmatprep.subr.bf16.mxu1 %v2858_v3  ;;  %v412_v2 = vrot.slane %v379_v42, %v411_v61  ;;  %v408_v3 = vrot.slane %v379_v42, %v407_v62 }
  0xcd   : > { %1546 = vmatpush1.bf16.msra.mxu0 %v2853_v4  ;;  %1587 = vmatpush1.bf16.msra.mxu1 %v2856_v5  ;;  %v416_v4 = vrot.slane %v379_v42, %v415_v63 }
  0xce   : > { %1613 = vmatprep.subr.bf16.mxu0 %v2861_v6  ;;  %1654 = vmatprep.subr.bf16.mxu1 %v2864_v7 }
  0xd0   : > { %1564 = vmatmul.mubr.bf16.vlgmr.msra.gmra.mxu0 %v3360_v36  ;;  %1605 = vmatmul.mubr.bf16.vlgmr.msra.gmra.mxu1 %v3360_v36 }
  0xd1   : > { %1614 = vmatpush1.bf16.msra.mxu0 %v2859_v8  ;;  %1655 = vmatpush1.bf16.msra.mxu1 %v2862_v9 }
  0xd2   : > { %1615 = vmatprep.subr.bf16.mxu0 %v2867_v10  ;;  %1656 = vmatprep.subr.bf16.mxu1 %v2870_v11 }
  0xd3   : > { %1645 = vmatprep.mubr.bf16.mxu0 %v3170_v0  ;;  %1686 = vmatprep.mubr.bf16.mxu1 %v3170_v0  ;;  %v2885_v0 = vld [vmem:[%s3309_s6 + $0x224] ss:$80 sps:$4 sm:$0xff]  }
  0xd5   : > { %1616 = vmatpush1.bf16.msra.mxu0 %v2865_v12  ;;  %1657 = vmatpush1.bf16.msra.mxu1 %v2868_v13 }
  0xd6   : > { %1617 = vmatprep.subr.bf16.mxu0 %v2873_v14  ;;  %1658 = vmatprep.subr.bf16.mxu1 %v2876_v15 }
  0xd9   : > { %1618 = vmatpush1.bf16.msra.mxu0 %v2871_v16  ;;  %1659 = vmatpush1.bf16.msra.mxu1 %v2874_v17  ;;  %v380_v17 = vld [vmem:[%s3315_s9 + $0x8] sm:$0xff] }
  0xda   : > { %1619 = vmatprep.subr.bf16.mxu0 %v2879_v18  ;;  %1660 = vmatprep.subr.bf16.mxu1 %v2882_v19  ;;  %v420_v18 = vrot.slane %v380_v17, %v3509_v40  ;;  %v428_v19 = vrot.slane %v380_v17, %v3512_v41 }
  0xdd   : > { %1620 = vmatpush1.bf16.msra.mxu0 %v2877_v20  ;;  %1661 = vmatpush1.bf16.msra.mxu1 %v2880_v21  ;;  %v424_v20 = vrot.slane %v380_v17, %v3516_v43  ;;  %v432_v21 = vrot.slane %v380_v17, %v3519_v44 }
  0xde   : > { %1621 = vmatprep.subr.bf16.mxu0 %v2885_v0  ;;  %1662 = vmatprep.subr.bf16.mxu1 %v2888_v22 }
  0xe1   : > { %1622 = vmatpush1.bf16.msra.mxu0 %v2883_v23  ;;  %1663 = vmatpush1.bf16.msra.mxu1 %v2886_v24 }
  0xe2   : > { %1623 = vmatprep.subr.bf16.mxu0 %v2891_v25  ;;  %1664 = vmatprep.subr.bf16.mxu1 %v2894_v26 }
  0xe5   : > { %1624 = vmatpush1.bf16.msra.mxu0 %v2889_v27  ;;  %1665 = vmatpush1.bf16.msra.mxu1 %v2892_v28 }
  0xe6   : > { %1625 = vmatprep.subr.bf16.mxu0 %v2897_v29  ;;  %1666 = vmatprep.subr.bf16.mxu1 %v2900_v30 }
  0xe9   : > { %1626 = vmatpush1.bf16.msra.mxu0 %v2895_v31  ;;  %1667 = vmatpush1.bf16.msra.mxu1 %v2898_v32 }
  0xea   : > { %1627 = vmatprep.subr.bf16.mxu0 %v2903_v33  ;;  %1668 = vmatprep.subr.bf16.mxu1 %v2906_v34  ;;  %v436_v33 = vrot.slane %v380_v17, %v403_v60  ;;  %v444_v34 = vrot.slane %v380_v17, %v411_v61 }
  0xed   : > { %1628 = vmatpush1.bf16.msra.mxu0 %v2901_v35  ;;  %1669 = vmatpush1.bf16.msra.mxu1 %v2904_v37  ;;  %v440_v35 = vrot.slane %v380_v17, %v407_v62  ;;  %v448_v37 = vrot.slane %v380_v17, %v415_v63 }
  0xf0   : > { %1646 = vmatmul.mubr.bf16.vlgmr.msra.gmra.mxu0 %v3360_v36  ;;  %1687 = vmatmul.mubr.bf16.vlgmr.msra.gmra.mxu1 %v3360_v36  ;;  %v396_v36 = vrot.slane %v379_v42, %v3512_v41 }
 0x130   : > { %v1319_v48 = vpop.f32.mrf.mxu0  ;;  %v1360_v49 = vpop.f32.mrf.mxu1 }
 0x131   : > { %v1320_v50 = vadd.f32 %v1319_v48, %v388_v45  ;;  %v1361_v51 = vadd.f32 %v1360_v49, %v396_v36 }
 0x132   : > { %v1321_v52 = vpop.f32.mrf.mxu0  ;;  %v1362_v53 = vpop.f32.mrf.mxu1 }
 0x133   : > { %1698 = vst [vmem:[%s3529_s30] sm:$0xff] %v1320_v50  ;;  %1700 = vst [vmem:[%s3529_s30 + $0x10] sm:$0xff] %v1361_v51  ;;  %v1322_v54 = vadd.f32 %v1321_v52, %v392_v46  ;;  %v1363_v55 = vadd.f32 %v1362_v53, %v400_v47  ;;  %v381_v53 = vld [vmem:[%s3315_s9 + $0x10] sm:$0xf] }
 0x134   : > { %v1323_v56 = vpop.f32.mrf.mxu0  ;;  %v1364_v57 = vpop.f32.mrf.mxu1 }
 0x135   : > { %1699 = vst [vmem:[%s3529_s30 + $0x8] sm:$0xff] %v1322_v54  ;;  %1701 = vst [vmem:[%s3529_s30 + $0x18] sm:$0xff] %v1363_v55  ;;  %v452_v54 = vrot.slane %v381_v53, %v3509_v40  ;;  %v460_v55 = vrot.slane %v381_v53, %v3512_v41  ;;  %v456_v56 = vrot.slane %v381_v53, %v3516_v43 }
 0x136   : > { %v1324_v58 = vpop.f32.mrf.mxu0  ;;  %v1365_v59 = vpop.f32.mrf.mxu1  ;;  %v464_v57 = vrot.slane %v381_v53, %v3519_v44 }
 0x150   : > { %v1401_v5 = vpop.f32.mrf.mxu0  ;;  %v1442_v6 = vpop.f32.mrf.mxu1 }
 0x151   : > { %v1402_v7 = vadd.f32 %v1401_v5, %v404_v1  ;;  %v1443_v8 = vadd.f32 %v1442_v6, %v412_v2 }
 0x152   : > { %v1403_v9 = vpop.f32.mrf.mxu0  ;;  %v1444_v10 = vpop.f32.mrf.mxu1 }
 0x153   : > { %1702 = vst [vmem:[%s3529_s30 + $0x20] sm:$0xff] %v1402_v7  ;;  %1704 = vst [vmem:[%s3529_s30 + $0x30] sm:$0xff] %v1443_v8  ;;  %v1404_v11 = vadd.f32 %v1403_v9, %v408_v3  ;;  %v1445_v12 = vadd.f32 %v1444_v10, %v416_v4 }
 0x154   : > { %v1405_v13 = vpop.f32.mrf.mxu0  ;;  %v1446_v14 = vpop.f32.mrf.mxu1 }
 0x155   : > { %1703 = vst [vmem:[%s3529_s30 + $0x28] sm:$0xff] %v1404_v11  ;;  %1705 = vst [vmem:[%s3529_s30 + $0x38] sm:$0xff] %v1445_v12 }
 0x156   : > { %v1406_v15 = vpop.f32.mrf.mxu0  ;;  %v1447_v16 = vpop.f32.mrf.mxu1 }
 0x170   : > { %v1483_v0 = vpop.f32.mrf.mxu0  ;;  %v1524_v22 = vpop.f32.mrf.mxu1 }
 0x171   : > { %v1484_v23 = vadd.f32 %v1483_v0, %v420_v18  ;;  %v1525_v24 = vadd.f32 %v1524_v22, %v428_v19 }
 0x172   : > { %v1485_v25 = vpop.f32.mrf.mxu0  ;;  %v1526_v26 = vpop.f32.mrf.mxu1 }
 0x173   : > { %1706 = vst [vmem:[%s3529_s30 + $0x40] sm:$0xff] %v1484_v23  ;;  %1708 = vst [vmem:[%s3529_s30 + $0x50] sm:$0xff] %v1525_v24  ;;  %v1486_v27 = vadd.f32 %v1485_v25, %v424_v20  ;;  %v1527_v28 = vadd.f32 %v1526_v26, %v432_v21 }
 0x174   : > { %v1487_v29 = vpop.f32.mrf.mxu0  ;;  %v1528_v30 = vpop.f32.mrf.mxu1 }
 0x175   : > { %1707 = vst [vmem:[%s3529_s30 + $0x48] sm:$0xff] %v1486_v27  ;;  %1709 = vst [vmem:[%s3529_s30 + $0x58] sm:$0xff] %v1527_v28 }
 0x176   : > { %v1488_v31 = vpop.f32.mrf.mxu0  ;;  %v1529_v32 = vpop.f32.mrf.mxu1 }
 0x190   : > { %v1565_v38 = vpop.f32.mrf.mxu0  ;;  %v1606_v39 = vpop.f32.mrf.mxu1 }
 0x191   : > { %v1566_v42 = vadd.f32 %v1565_v38, %v436_v33  ;;  %v1607_v45 = vadd.f32 %v1606_v39, %v444_v34 }
 0x192   : > { %v1567_v36 = vpop.f32.mrf.mxu0  ;;  %v1608_v46 = vpop.f32.mrf.mxu1 }
 0x193   : > { %1710 = vst [vmem:[%s3529_s30 + $0x60] sm:$0xff] %v1566_v42  ;;  %1712 = vst [vmem:[%s3529_s30 + $0x70] sm:$0xff] %v1607_v45  ;;  %v1568_v47 = vadd.f32 %v1567_v36, %v440_v35  ;;  %v1609_v48 = vadd.f32 %v1608_v46, %v448_v37 }
 0x194   : > { %v1569_v49 = vpop.f32.mrf.mxu0  ;;  %v1610_v50 = vpop.f32.mrf.mxu1 }
 0x195   : > { %1711 = vst [vmem:[%s3529_s30 + $0x68] sm:$0xff] %v1568_v47  ;;  %1713 = vst [vmem:[%s3529_s30 + $0x78] sm:$0xff] %v1609_v48 }
 0x196   : > { %v1570_v51 = vpop.f32.mrf.mxu0  ;;  %v1611_v52 = vpop.f32.mrf.mxu1 }
 0x1b0   : > { %v1647_v58 = vpop.f32.mrf.mxu0  ;;  %v1688_v59 = vpop.f32.mrf.mxu1 }
 0x1b1   : > { %v1648_v60 = vadd.f32 %v1647_v58, %v452_v54  ;;  %v1689_v61 = vadd.f32 %v1688_v59, %v460_v55 }
 0x1b2   : > { %v1649_v62 = vpop.f32.mrf.mxu0  ;;  %v1690_v63 = vpop.f32.mrf.mxu1  ;;  %1721 = sbr.rel (%p2609_p7) target bundleno = 952 (0x3b8), region = 44 }
 0x1b3   : > { %1714 = vst [vmem:[%s3529_s30 + $0x80] sm:$0xff] %v1648_v60  ;;  %1716 = vst [vmem:[%s3529_s30 + $0x90] sm:$0xff] %v1689_v61  ;;  %v1650_v1 = vadd.f32 %v1649_v62, %v456_v56  ;;  %v1691_v2 = vadd.f32 %v1690_v63, %v464_v57 }
 0x1b4   : > { %v1651_v3 = vpop.f32.mrf.mxu0  ;;  %v1692_v40 = vpop.f32.mrf.mxu1 }
 0x1b5   : > { %1715 = vst [vmem:[%s3529_s30 + $0x88] sm:$0xff] %v1650_v1  ;;  %1717 = vst [vmem:[%s3529_s30 + $0x98] sm:$0xff] %v1691_v2 }
 0x1b6   : > { %v1652_v41 = vpop.f32.mrf.mxu0  ;;  %v1693_v4 = vpop.f32.mrf.mxu1 }
 0x1bc   : > { %v3569_v43 = vld [vmem:[%s4866_s3 + $0x140] sm:$0xff]  ;;  %v3574_v44 = vld [vmem:[%s4866_s3 + $0x148] sm:$0xff]  ;;  %v3579_v5 = vld [vmem:[%s4866_s3 + $0x150] sm:$0xff] }
 0x1bd   : > { %v1844_v6 = vmax.f32 %v3569_v43, %v3574_v44  ;;  %v3586_v7 = vld [vmem:[%s4866_s3 + $0x158] sm:$0xff]  ;;  %v3592_v9 = vld [vmem:[%s4866_s3 + $0x160] sm:$0xff]  ;;  %v3598_v11 = vld [vmem:[%s4866_s3 + $0x168] sm:$0xff] }
 0x1be   : > { %v3603_v12 = vld [vmem:[%s4866_s3] sm:$0xff]  ;;  %v3609_v14 = vld [vmem:[%s4866_s3 + $0x8] sm:$0xff]  ;;  %v3614_v15 = vld [vmem:[%s4866_s3 + $0x10] sm:$0xff] }
 0x1bf   : > { %v1845_v8 = vmax.f32 %v1844_v6, %v3579_v5  ;;  %v3619_v16 = vld [vmem:[%s4866_s3 + $0x170] sm:$0xff]  ;;  %v1802_v17 = vmax.f32 %v3603_v12, %v3609_v14  ;;  %v3627_v19 = vld [vmem:[%s4866_s3 + $0x18] sm:$0xff]  ;;  %v3639_v22 = vld [vmem:[%s4866_s3 + $0x20] sm:$0xff] }
 0x1c0   : > { %v3632_v20 = vld [vmem:[%s4866_s3 + $0x178] sm:$0xff]  ;;  %v3644_v23 = vld [vmem:[%s4866_s3 + $0x180] sm:$0xff]  ;;  %v3651_v26 = vld [vmem:[%s4866_s3 + $0x28] sm:$0xff] }
 0x1c1   : > { %v1846_v10 = vmax.f32 %v1845_v8, %v3586_v7  ;;  %v1803_v21 = vmax.f32 %v1802_v17, %v3614_v15  ;;  %v3656_v27 = vld [vmem:[%s4866_s3 + $0x1e0] sm:$0xff]  ;;  %v3661_v28 = vld [vmem:[%s4866_s3 + $0x1e8] sm:$0xff]  ;;  %v3672_v31 = vld [vmem:[%s4866_s3 + $0x1f0] sm:$0xff] }
 0x1c2   : > { %4930 = vst [vmem:[#allocation8_spill] sm:$0xff] %v3656_v27  ;;  %4931 = vst [vmem:[#allocation9_spill] sm:$0xff] %v3661_v28  ;;  %v3666_v29 = vld [vmem:[%s4866_s3 + $0x188] sm:$0xff]  ;;  %v1865_v32 = vmax.f32 %v3656_v27, %v3661_v28  ;;  %v3680_v34 = vld [vmem:[%s4866_s3 + $0x30] sm:$0xff] }
 0x1c3   : > { %v1847_v13 = vmax.f32 %v1846_v10, %v3592_v9  ;;  %v1804_v24 = vmax.f32 %v1803_v21, %v3627_v19  ;;  %4932 = vst [vmem:[#allocation10_spill] sm:$0xff] %v3672_v31  ;;  %v3685_v35 = vld [vmem:[%s4866_s3 + $0x1f8] sm:$0xff]  ;;  %v3690_v37 = vld [vmem:[%s4866_s3 + $0x190] sm:$0xff]  ;;  %v3703_v36 = vld [vmem:[%s4866_s3 + $0x200] sm:$0xff] }
 0x1c4   : > { %4933 = vst [vmem:[#allocation11_spill] sm:$0xff] %v3685_v35  ;;  %v1866_v39 = vmax.f32 %v1865_v32, %v3672_v31  ;;  %v3698_v45 = vld [vmem:[%s4866_s3 + $0x38] sm:$0xff]  ;;  %4934 = vst [vmem:[#allocation12_spill] sm:$0xff] %v3703_v36  ;;  %v3715_v49 = vld [vmem:[%s4866_s3 + $0x1a0] sm:$0xff] }
 0x1c5   : > { %v1848_v18 = vmax.f32 %v1847_v13, %v3598_v11  ;;  %v1805_v30 = vmax.f32 %v1804_v24, %v3639_v22  ;;  %v3708_v46 = vld [vmem:[%s4866_s3 + $0x198] sm:$0xff]  ;;  %4936 = vst [vmem:[#allocation14_spill] sm:$0xff] %v3715_v49  ;;  %v3721_v51 = vld [vmem:[%s4866_s3 + $0x40] sm:$0xff]  ;;  %v3726_v52 = vld [vmem:[%s4866_s3 + $0x208] sm:$0xff] }
 0x1c6   : > { %4935 = vst [vmem:[#allocation13_spill] sm:$0xff] %v3708_v46  ;;  %v1867_v48 = vmax.f32 %v1866_v39, %v3685_v35  ;;  %4937 = vst [vmem:[#allocation15_spill] sm:$0xff] %v3726_v52  ;;  %v3733_v55 = vld [vmem:[%s4866_s3 + $0xa0] sm:$0xff]  ;;  %v3738_v56 = vld [vmem:[%s4866_s3 + $0xa8] sm:$0xff] }
 0x1c7   : > { %v1849_v0 = vmax.f32 %v1848_v18, %v3619_v16  ;;  %v1806_v38 = vmax.f32 %v1805_v30, %v3651_v26  ;;  %v3743_v57 = vld [vmem:[%s4866_s3 + $0xb0] sm:$0xff]  ;;  %v3749_v59 = vld [vmem:[%s4866_s3 + $0x48] sm:$0xff]  ;;  %v1823_v61 = vmax.f32 %v3733_v55, %v3738_v56  ;;  %v3768_v2 = vld [vmem:[%s4866_s3 + $0xb8] sm:$0xff] }
 0x1c8   : > { %v1868_v54 = vmax.f32 %v1867_v48, %v3703_v36  ;;  %v3754_v60 = vld [vmem:[%s4866_s3 + $0x210] sm:$0xff]  ;;  %v3761_v62 = vld [vmem:[%s4866_s3 + $0x1a8] sm:$0xff]  ;;  %v3779_v41 = vld [vmem:[%s4866_s3 + $0x218] sm:$0xff] }
 0x1c9   : > { %v1850_v25 = vmax.f32 %v1849_v0, %v3632_v20  ;;  %v1807_v47 = vmax.f32 %v1806_v38, %v3680_v34  ;;  %4938 = vst [vmem:[#allocation16_spill] sm:$0xff] %v3754_v60  ;;  %4939 = vst [vmem:[#allocation17_spill] sm:$0xff] %v3761_v62  ;;  %v3774_v40 = vld [vmem:[%s4866_s3 + $0x50] sm:$0xff]  ;;  %v1824_v4 = vmax.f32 %v1823_v61, %v3743_v57  ;;  %v3792_v13 = vld [vmem:[%s4866_s3 + $0xc0] sm:$0xff] }
 0x1ca   : > { %v1869_v1 = vmax.f32 %v1868_v54, %v3726_v52  ;;  %4940 = vst [vmem:[#allocation18_spill] sm:$0xff] %v3779_v41  ;;  %v3785_v6 = vld [vmem:[%s4866_s3 + $0x1b0] sm:$0xff]  ;;  %v3798_v18 = vld [vmem:[%s4866_s3 + $0x58] sm:$0xff]  ;;  %v3803_v21 = vld [vmem:[%s4866_s3 + $0x220] sm:$0xff] }
 0x1cb   : > { %v1851_v33 = vmax.f32 %v1850_v25, %v3644_v23  ;;  %v1808_v53 = vmax.f32 %v1807_v47, %v3698_v45  ;;  %4941 = vst [vmem:[#allocation19_spill] sm:$0xff] %v3785_v6  ;;  %4942 = vst [vmem:[#allocation20_spill] sm:$0xff] %v3803_v21  ;;  %v1825_v0 = vmax.f32 %v1824_v4, %v3768_v2  ;;  %v3809_v24 = vld [vmem:[%s4866_s3 + $0x1b8] sm:$0xff]  ;;  %v3816_v32 = vld [vmem:[%s4866_s3 + $0xc8] sm:$0xff] }
 0x1cc   : > { %v1870_v10 = vmax.f32 %v1869_v1, %v3754_v60  ;;  %4943 = vst [vmem:[#allocation21_spill] sm:$0xff] %v3809_v24  ;;  %v3822_v38 = vld [vmem:[%s4866_s3 + $0x60] sm:$0xff]  ;;  %v3827_v39 = vld [vmem:[%s4866_s3 + $0x228] sm:$0xff]  ;;  %v3851_v61 = vld [vmem:[%s4866_s3 + $0x230] sm:$0xff] }
 0x1cd   : > { %v1852_v42 = vmax.f32 %v1851_v33, %v3666_v29  ;;  %v1809_v63 = vmax.f32 %v1808_v53, %v3721_v51  ;;  %4944 = vst [vmem:[#allocation22_spill] sm:$0xff] %v3827_v39  ;;  %v3833_v47 = vld [vmem:[%s4866_s3 + $0x1c0] sm:$0xff]  ;;  %v3840_v53 = vld [vmem:[%s4866_s3 + $0xd0] sm:$0xff]  ;;  %4946 = vst [vmem:[#allocation24_spill] sm:$0xff] %v3851_v61 }
 0x1ce   : > { %v1871_v30 = vmax.f32 %v1870_v10, %v3779_v41  ;;  %4945 = vst [vmem:[#allocation23_spill] sm:$0xff] %v3833_v47  ;;  %v3857_v1 = vld [vmem:[%s4866_s3 + $0x1c8] sm:$0xff]  ;;  %v3960_v60 = vld [vmem:[%s4866_s3 + $0x258] sm:$0xff] }
 0x1cf   : > { %v1853_v50 = vmax.f32 %v1852_v42, %v3690_v37  ;;  %v1810_v8 = vmax.f32 %v1809_v63, %v3749_v59  ;;  %v1826_v42 = vmax.f32 %v1825_v0, %v3792_v13  ;;  %4947 = vst [vmem:[#allocation25_spill] sm:$0xff] %v3857_v1  ;;  %v3875_v0 = vld [vmem:[%s4866_s3 + $0x238] sm:$0xff]  ;;  %v3923_v41 = vld [vmem:[%s4866_s3 + $0x248] sm:$0xff]  ;;  %4954 = vst [vmem:[#allocation32_spill] sm:$0xff] %v3960_v60 }
 0x1d0   : > { %4948 = vst [vmem:[#allocation26_spill] sm:$0xff] %v3875_v0  ;;  %4952 = vst [vmem:[#allocation30_spill] sm:$0xff] %v3923_v41  ;;  %v3991_v52 = vld [vmem:[%s4866_s3 + $0x268] sm:$0xff] }
 0x1d1   : > { %v1854_v58 = vmax.f32 %v1853_v50, %v3708_v46  ;;  %v1811_v25 = vmax.f32 %v1810_v8, %v3774_v40  ;;  %v1872_v50 = vmax.f32 %v1871_v30, %v3803_v21  ;;  %v1827_v63 = vmax.f32 %v1826_v42, %v3816_v32  ;;  %v3864_v8 = vld [vmem:[%s4866_s3 + $0xd8] sm:$0xff]  ;;  %v3881_v30 = vld [vmem:[%s4866_s3 + $0x1d0] sm:$0xff]  ;;  %4956 = vst [vmem:[#allocation34_spill] sm:$0xff] %v3991_v52 }
 0x1d2   : > { %4949 = vst [vmem:[#allocation27_spill] sm:$0xff] %v3881_v30 }
 0x1d3   : > { %v1855_v3 = vmax.f32 %v1854_v58, %v3715_v49  ;;  %v1812_v48 = vmax.f32 %v1811_v25, %v3798_v18  ;;  %v3846_v58 = vld [vmem:[%s4866_s3 + $0x68] sm:$0xff]  ;;  %v1873_v4 = vmax.f32 %v1872_v50, %v3827_v39  ;;  %v1828_v25 = vmax.f32 %v1827_v63, %v3840_v53  ;;  %v3899_v63 = vld [vmem:[%s4866_s3 + $0x240] sm:$0xff] }
 0x1d4   : > { %4950 = vst [vmem:[#allocation28_spill] sm:$0xff] %v3899_v63  ;;  %v3912_v39 = vld [vmem:[%s4866_s3 + $0xe8] sm:$0xff] }
 0x1d5   : > { %v1856_v17 = vmax.f32 %v1855_v3, %v3761_v62  ;;  %v1813_v3 = vmax.f32 %v1812_v48, %v3822_v38  ;;  %v1874_v42 = vmax.f32 %v1873_v4, %v3851_v61  ;;  %v3888_v48 = vld [vmem:[%s4866_s3 + $0xe0] sm:$0xff]  ;;  %v3905_v4 = vld [vmem:[%s4866_s3 + $0x1d8] sm:$0xff] }
 0x1d6   : > { %4951 = vst [vmem:[#allocation29_spill] sm:$0xff] %v3905_v4 }
 0x1d7   : > { %v1857_v33 = vmax.f32 %v1856_v17, %v3785_v6  ;;  %v3870_v17 = vld [vmem:[%s4866_s3 + $0x70] sm:$0xff] }
 0x1d9   : > { %v1858_v54 = vmax.f32 %v1857_v33, %v3809_v24  ;;  %v1814_v33 = vmax.f32 %v1813_v3, %v3846_v58  ;;  %v1829_v3 = vmax.f32 %v1828_v25, %v3864_v8  ;;  %v3918_v25 = vld [vmem:[%s4866_s3 + $0x80] sm:$0xff] }
 0x1db   : > { %v1859_v10 = vmax.f32 %v1858_v54, %v3833_v47  ;;  %v3894_v54 = vld [vmem:[%s4866_s3 + $0x78] sm:$0xff]  ;;  %v1815_v61 = vmax.f32 %v1814_v33, %v3870_v17  ;;  %v1830_v33 = vmax.f32 %v1829_v3, %v3888_v48  ;;  %v3942_v3 = vld [vmem:[%s4866_s3 + $0x250] sm:$0xff]  ;;  %v3978_v47 = vld [vmem:[%s4866_s3 + $0x260] sm:$0xff] }
 0x1dc   : > { %4953 = vst [vmem:[#allocation31_spill] sm:$0xff] %v3942_v3  ;;  %4955 = vst [vmem:[#allocation33_spill] sm:$0xff] %v3978_v47 }
 0x1dd   : > { %v1860_v50 = vmax.f32 %v1859_v10, %v3857_v1  ;;  %v1875_v10 = vmax.f32 %v1874_v42, %v3875_v0  ;;  %v1816_v42 = vmax.f32 %v1815_v61, %v3894_v54  ;;  %v3937_v1 = vld [vmem:[%s4866_s3 + $0x88] sm:$0xff]  ;;  %v1831_v61 = vmax.f32 %v1830_v33, %v3912_v39 }
 0x1df   : > { %v1861_v21 = vmax.f32 %v1860_v50, %v3881_v30  ;;  %v1876_v0 = vmax.f32 %v1875_v10, %v3899_v63  ;;  %v3931_v50 = vld [vmem:[%s4866_s3 + $0xf0] sm:$0xff]  ;;  %v1817_v10 = vmax.f32 %v1816_v42, %v3918_v25 }
 0x1e0   : > { %v1832_v33 = vmax.f32 %v1831_v61, %v3931_v50 }
 0x1e1   : > { %v1862_v30 = vmax.f32 %v1861_v21, %v3905_v4  ;;  %v1877_v63 = vmax.f32 %v1876_v0, %v3923_v41  ;;  %v3950_v21 = vld [vmem:[%s4866_s3 + $0xf8] sm:$0xff]  ;;  %v3955_v4 = vld [vmem:[%s4866_s3 + $0x90] sm:$0xff]  ;;  %v1818_v0 = vmax.f32 %v1817_v10, %v3937_v1 }
 0x1e2   : > { %v3973_v41 = vld [vmem:[%s4866_s3 + $0x98] sm:$0xff]  ;;  %v1833_v61 = vmax.f32 %v1832_v33, %v3950_v21 }
 0x1e3   : > { %1863 = vmax.xlane.f32.xlu1 %v1862_v30  ;;  %v1878_v42 = vmax.f32 %v1877_v63, %v3942_v3  ;;  %v3968_v30 = vld [vmem:[%s4866_s3 + $0x100] sm:$0xff]  ;;  %v1819_v10 = vmax.f32 %v1818_v0, %v3955_v4  ;;  %v3986_v3 = vld [vmem:[%s4866_s3 + $0x108] sm:$0xff]  ;;  %v3999_v0 = vld [vmem:[%s4866_s3 + $0x110] sm:$0xff] }
 0x1e4   : > { %v1834_v24 = vmax.f32 %v1833_v61, %v3968_v30  ;;  %v4011_v61 = vld [vmem:[%s4866_s3 + $0x118] sm:$0xff] }
 0x1e5   : > { %v1879_v63 = vmax.f32 %v1878_v42, %v3960_v60  ;;  %v1820_v36 = vmax.f32 %v1819_v10, %v3973_v41  ;;  %v4004_v42 = vld [vmem:[%s4866_s3 + $0x270] sm:$0xff]  ;;  %v4016_v10 = vld [vmem:[%s4866_s3 + $0x278] sm:$0xff] }
 0x1e6   : > { %4957 = vst [vmem:[#allocation35_spill] sm:$0xff] %v4004_v42  ;;  %v1835_v60 = vmax.f32 %v1834_v24, %v3986_v3  ;;  %4958 = vst [vmem:[#allocation36_spill] sm:$0xff] %v4016_v10 }
 0x1e7   : > { %v1880_v33 = vmax.f32 %v1879_v63, %v3978_v47  ;;  %1821 = vmax.xlane.f32.xlu0 %v1820_v36  ;;  %v4023_v36 = vld [vmem:[%s4866_s3 + $0x120] sm:$0xff] }
 0x1e8   : > { %v1836_v63 = vmax.f32 %v1835_v60, %v3999_v0  ;;  %v4036_v60 = vld [vmem:[%s4866_s3 + $0x130] sm:$0xff] }
 0x1e9   : > { %v1881_v6 = vmax.f32 %v1880_v33, %v3991_v52  ;;  %v4030_v52 = vld [vmem:[%s4866_s3 + $0x128] sm:$0xff] }
 0x1ea   : > { %v1837_v24 = vmax.f32 %v1836_v63, %v4011_v61  ;;  %v4042_v63 = vld [vmem:[%s4866_s3 + $0x138] sm:$0xff] }
 0x1eb   : > { %v1882_v47 = vmax.f32 %v1881_v6, %v4004_v42 }
 0x1ec   : > { %v1838_v35 = vmax.f32 %v1837_v24, %v4023_v36 }
 0x1ed   : > { %v1883_v33 = vmax.f32 %v1882_v47, %v4016_v10 }
 0x1ee   : > { %v1839_v6 = vmax.f32 %v1838_v35, %v4030_v52 }
 0x1ef   : > { %1884 = vmax.xlane.f32.xlu1 %v1883_v33 }
 0x1f0   : > { %v1840_v47 = vmax.f32 %v1839_v6, %v4036_v60 }
 0x1f2   : > { %v1841_v10 = vmax.f32 %v1840_v47, %v4042_v63 }
 0x1f4   : > { %1842 = vmax.xlane.f32.xlu0 %v1841_v10 }
 0x26c   : > { %v1864_v42 = vpop.xlane.xlu1 %1863 }
 0x270   : > { %v1822_v24 = vpop.xlane.xlu0 %1821 }
 0x278   : > { %v1885_v33 = vpop.xlane.xlu1 %1884 }
 0x279   : > { %v1887_v31 = vmax.f32 %v1864_v42, %v1885_v33 }
 0x27d   : > { %v1843_v62 = vpop.xlane.xlu0 %1842 }
 0x27e   : > { %v1886_v49 = vmax.f32 %v1822_v24, %v1843_v62 }
 0x280   : > { %v4046_v28 = vmax.f32 %v1886_v49, %v1887_v31 }
 0x282   : > { %v1909_v35 = vsub.f32 %v3733_v55, %v4046_v28  ;;  %v1910_v27 = vsub.f32 %v3738_v56, %v4046_v28  ;;  %v1911_v6 = vsub.f32 %v3743_v57, %v4046_v28  ;;  %v1912_v10 = vsub.f32 %v3768_v2, %v4046_v28 }
 0x283   : > { %v1913_v42 = vsub.f32 %v3792_v13, %v4046_v28  ;;  %v1914_v31 = vsub.f32 %v3816_v32, %v4046_v28  ;;  %v1915_v55 = vsub.f32 %v3840_v53, %v4046_v28  ;;  %v1916_v57 = vsub.f32 %v3864_v8, %v4046_v28 }
 0x284   : > { %v2009_v47 = vmul.f32 1.442695, %v1909_v35  ;;  %v2011_v46 = vmul.f32 1.442695, %v1910_v27  ;;  %v2013_v62 = vmul.f32 1.442695, %v1911_v6  ;;  %v1917_v2 = vsub.f32 %v3888_v48, %v4046_v28 }
 0x285   : > { %v2015_v49 = vmul.f32 1.442695, %v1912_v10  ;;  %v2017_v56 = vmul.f32 1.442695, %v1913_v42  ;;  %v2019_v27 = vmul.f32 1.442695, %v1914_v31  ;;  %v1918_v32 = vsub.f32 %v3912_v39, %v4046_v28 }
 0x286   : > { %2907 = vpow2.f32 %v2009_v47  ;;  %v2021_v13 = vmul.f32 1.442695, %v1915_v55  ;;  %v1919_v53 = vsub.f32 %v3931_v50, %v4046_v28  ;;  %v2025_v24 = vmul.f32 1.442695, %v1917_v2 }
 0x287   : > { %2909 = vpow2.f32 %v2011_v46  ;;  %v2023_v46 = vmul.f32 1.442695, %v1916_v57  ;;  %v1889_v8 = vsub.f32 %v3603_v12, %v4046_v28  ;;  %v1920_v48 = vsub.f32 %v3950_v21, %v4046_v28 }
 0x288   : > { %2911 = vpow2.f32 %v2013_v62  ;;  %v2027_v35 = vmul.f32 1.442695, %v1918_v32  ;;  %v1890_v39 = vsub.f32 %v3609_v14, %v4046_v28  ;;  %v1921_v50 = vsub.f32 %v3968_v30, %v4046_v28 }
 0x289   : > { %2913 = vpow2.f32 %v2015_v49  ;;  %v2029_v10 = vmul.f32 1.442695, %v1919_v53  ;;  %v1891_v21 = vsub.f32 %v3614_v15, %v4046_v28  ;;  %v1969_v42 = vmul.f32 1.442695, %v1889_v8 }
 0x28a   : > { %2915 = vpow2.f32 %v2017_v56  ;;  %v1922_v62 = vsub.f32 %v3986_v3, %v4046_v28  ;;  %v2031_v31 = vmul.f32 1.442695, %v1920_v48  ;;  %v1892_v30 = vsub.f32 %v3627_v19, %v4046_v28 }
 0x28b   : > { %2917 = vpow2.f32 %v2019_v27  ;;  %v1971_v55 = vmul.f32 1.442695, %v1890_v39  ;;  %v1923_v56 = vsub.f32 %v3999_v0, %v4046_v28  ;;  %v2033_v57 = vmul.f32 1.442695, %v1921_v50 }
 0x28c   : > { %2919 = vpow2.f32 %v2021_v13  ;;  %v1893_v3 = vsub.f32 %v3639_v22, %v4046_v28  ;;  %v1973_v2 = vmul.f32 1.442695, %v1891_v21  ;;  %v1924_v13 = vsub.f32 %v4011_v61, %v4046_v28 }
 0x28d   : > { %2921 = vpow2.f32 %v2023_v46  ;;  %v2035_v19 = vmul.f32 1.442695, %v1922_v62  ;;  %v1894_v0 = vsub.f32 %v3651_v26, %v4046_v28  ;;  %v1975_v53 = vmul.f32 1.442695, %v1892_v30 }
 0x28e   : > { %2923 = vpow2.f32 %v2025_v24  ;;  %v1925_v24 = vsub.f32 %v4023_v36, %v4046_v28  ;;  %v2037_v22 = vmul.f32 1.442695, %v1923_v56  ;;  %v1895_v61 = vsub.f32 %v3680_v34, %v4046_v28 }
 0x28f   : > { %2925 = vpow2.f32 %v2027_v35  ;;  %v1977_v35 = vmul.f32 1.442695, %v1893_v3  ;;  %v1926_v39 = vsub.f32 %v4030_v52, %v4046_v28  ;;  %v2039_v26 = vmul.f32 1.442695, %v1924_v13 }
 0x290   : > { %2927 = vpow2.f32 %v2029_v10  ;;  %v1896_v36 = vsub.f32 %v3698_v45, %v4046_v28  ;;  %v1927_v21 = vsub.f32 %v4036_v60, %v4046_v28  ;;  %v2041_v34 = vmul.f32 1.442695, %v1925_v24 }
 0x291   : > { %2929 = vpow2.f32 %v1969_v42  ;;  %v1897_v52 = vsub.f32 %v3721_v51, %v4046_v28  ;;  %v2043_v45 = vmul.f32 1.442695, %v1926_v39  ;;  %v1898_v60 = vsub.f32 %v3749_v59, %v4046_v28 }
 0x292   : > { %2931 = vpow2.f32 %v2031_v31  ;;  %v1981_v31 = vmul.f32 1.442695, %v1895_v61  ;;  %v1983_v56 = vmul.f32 1.442695, %v1896_v36  ;;  %v1900_v13 = vsub.f32 %v3798_v18, %v4046_v28 }
 0x293   : > { %v4072_v33 = vpop.eup %2907  ;;  %2933 = vpow2.f32 %v1971_v55  ;;  %v1985_v3 = vmul.f32 1.442695, %v1897_v52  ;;  %v1931_v39 = vsub.f32 %v3579_v5, %v4046_v28  ;;  %v1902_v36 = vsub.f32 %v3846_v58, %v4046_v28 }
 0x294   : > { %v4076_v6 = vpop.eup %2909  ;;  %2935 = vpow2.f32 %v2033_v57  ;;  %v2045_v57 = vmul.f32 1.442695, %v1927_v21 }
 0x295   : > { %v2150_v12 = vadd.f32 %v4076_v6, %v4072_v33  ;;  %v4084_v47 = vpop.eup %2911  ;;  %2937 = vpow2.f32 %v1973_v2 }
 0x296   : > { %v4091_v49 = vpop.eup %2913  ;;  %2939 = vpow2.f32 %v2035_v19 }
 0x297   : > { %v2151_v14 = vadd.f32 %v4084_v47, %v2150_v12  ;;  %v4098_v27 = vpop.eup %2915  ;;  %v1979_v12 = vmul.f32 1.442695, %v1894_v0  ;;  %2941 = vpow2.f32 %v1975_v53  ;;  %v1929_v0 = vsub.f32 %v3569_v43, %v4046_v28 }
 0x298   : > { %v4105_v46 = vpop.eup %2917  ;;  %2943 = vpow2.f32 %v2037_v22  ;;  %v1987_v53 = vmul.f32 1.442695, %v1898_v60 }
 0x299   : > { %v2152_v15 = vadd.f32 %v4091_v49, %v2151_v14  ;;  %v4112_v48 = vpop.eup %2919  ;;  %2945 = vpow2.f32 %v1977_v35  ;;  %v1928_v14 = vsub.f32 %v4042_v63, %v4046_v28  ;;  %v1899_v63 = vsub.f32 %v3774_v40, %v4046_v28 }
 0x29a   : > { %v4119_v10 = vpop.eup %2921  ;;  %2947 = vpow2.f32 %v2039_v26  ;;  %v1930_v40 = vsub.f32 %v3574_v44, %v4046_v28  ;;  %v1991_v26 = vmul.f32 1.442695, %v1900_v13 }
 0x29b   : > { %v2153_v32 = vadd.f32 %v4098_v27, %v2152_v15  ;;  %v4126_v62 = vpop.eup %2923  ;;  %2949 = vpow2.f32 %v1979_v12  ;;  %v2047_v59 = vmul.f32 1.442695, %v1928_v14  ;;  %v1989_v61 = vmul.f32 1.442695, %v1899_v63 }
 0x29c   : > { %v4133_v55 = vpop.eup %2925  ;;  %2951 = vpow2.f32 %v2041_v34  ;;  %v1932_v34 = vsub.f32 %v3586_v7, %v4046_v28  ;;  %v2053_v7 = vmul.f32 1.442695, %v1931_v39 }
 0x29d   : > { %v2154_v8 = vadd.f32 %v4105_v46, %v2153_v32  ;;  %v4138_v15 = vpop.eup %2927  ;;  %2953 = vpow2.f32 %v1981_v31  ;;  %v1903_v31 = vsub.f32 %v3870_v17, %v4046_v28 }
 0x29e   : > { %v4142_v2 = vpop.eup %2929  ;;  %2955 = vpow2.f32 %v2043_v45  ;;  %v2055_v13 = vmul.f32 1.442695, %v1932_v34 }
 0x29f   : > { %v2155_v50 = vadd.f32 %v4112_v48, %v2154_v8  ;;  %v4147_v32 = vpop.eup %2931  ;;  %2957 = vpow2.f32 %v1983_v56  ;;  %v1901_v8 = vsub.f32 %v3822_v38, %v4046_v28  ;;  %v2049_v38 = vmul.f32 1.442695, %v1929_v0 }
 0x2a0   : > { %v4151_v24 = vpop.eup %2933  ;;  %2959 = vpow2.f32 %v2045_v57  ;;  %v1904_v57 = vsub.f32 %v3894_v54, %v4046_v28  ;;  %v1997_v0 = vmul.f32 1.442695, %v1903_v31 }
 0x2a1   : > { %v2156_v42 = vadd.f32 %v4119_v10, %v2155_v50  ;;  %v4156_v18 = vpop.eup %2935  ;;  %2961 = vpow2.f32 %v1985_v3  ;;  %v2129_v43 = vadd.f32 %v4151_v24, %v4142_v2  ;;  %v1993_v14 = vmul.f32 1.442695, %v1901_v8 }
 0x2a2   : > { %v4162_v35 = vpop.eup %2937  ;;  %2963 = vpow2.f32 %v2047_v59  ;;  %v1934_v3 = vsub.f32 %v3598_v11, %v4046_v28 }
 0x2a3   : > { %v2157_v30 = vadd.f32 %v4126_v62, %v2156_v42  ;;  %v4167_v50 = vpop.eup %2939  ;;  %2965 = vpow2.f32 %v1987_v53  ;;  %v2130_v12 = vadd.f32 %v4162_v35, %v2129_v43  ;;  %v2051_v42 = vmul.f32 1.442695, %v1930_v40 }
 0x2a4   : > { %v4172_v21 = vpop.eup %2941  ;;  %2967 = vpow2.f32 %v1989_v61  ;;  %v1935_v40 = vsub.f32 %v3619_v16, %v4046_v28  ;;  %v1906_v61 = vsub.f32 %v3937_v1, %v4046_v28  ;;  %v1999_v43 = vmul.f32 1.442695, %v1904_v57 }
 0x2a5   : > { %v2158_v51 = vadd.f32 %v4133_v55, %v2157_v30  ;;  %v4177_v52 = vpop.eup %2943  ;;  %v2131_v58 = vadd.f32 %v4172_v21, %v2130_v12  ;;  %v1933_v30 = vsub.f32 %v3592_v9, %v4046_v28  ;;  %2969 = vpow2.f32 %v1991_v26 }
 0x2a6   : > { %v4182_v45 = vpop.eup %2945  ;;  %2971 = vpow2.f32 %v2049_v38  ;;  %v2059_v26 = vmul.f32 1.442695, %v1934_v3  ;;  %v1907_v38 = vsub.f32 %v3955_v4, %v4046_v28  ;;  %v1939_v57 = vsub.f32 %v3690_v37, %v4046_v28  ;;  %v4959_v3 = vld [vmem:[#allocation13_spill] sm:$0xff] }
 0x2a7   : > { %v2159_v19 = vadd.f32 %v4138_v15, %v2158_v51  ;;  %v4187_v56 = vpop.eup %2947  ;;  %v1995_v51 = vmul.f32 1.442695, %v1902_v36  ;;  %v2132_v17 = vadd.f32 %v4182_v45, %v2131_v58  ;;  %2973 = vpow2.f32 %v2051_v42 }
 0x2a8   : > { %v4192_v63 = vpop.eup %2949  ;;  %2975 = vpow2.f32 %v1993_v14  ;;  %v2061_v42 = vmul.f32 1.442695, %v1935_v40  ;;  %v1908_v14 = vsub.f32 %v3973_v41, %v4046_v28  ;;  %v2003_v58 = vmul.f32 1.442695, %v1906_v61 }
 0x2a9   : > { %v2160_v22 = vadd.f32 %v4147_v32, %v2159_v19  ;;  %v4197_v59 = vpop.eup %2951  ;;  %v1905_v19 = vsub.f32 %v3918_v25, %v4046_v28  ;;  %v2133_v54 = vadd.f32 %v4192_v63, %v2132_v17  ;;  %2977 = vpow2.f32 %v2053_v7 }
 0x2aa   : > { %v4202_v53 = vpop.eup %2953  ;;  %2979 = vpow2.f32 %v1995_v51  ;;  %v2005_v51 = vmul.f32 1.442695, %v1907_v38 }
 0x2ab   : > { %v2161_v44 = vadd.f32 %v4156_v18, %v2160_v22  ;;  %v2057_v22 = vmul.f32 1.442695, %v1933_v30  ;;  %v4207_v8 = vpop.eup %2955  ;;  %v2134_v25 = vadd.f32 %v4202_v53, %v2133_v54  ;;  %2981 = vpow2.f32 %v2055_v13 }
 0x2ac   : > { %v4212_v39 = vpop.eup %2957  ;;  %v2001_v12 = vmul.f32 1.442695, %v1905_v19  ;;  %2983 = vpow2.f32 %v1997_v0  ;;  %v4960_v19 = vld [vmem:[#allocation8_spill] sm:$0xff]  ;;  %v2007_v54 = vmul.f32 1.442695, %v1908_v14  ;;  %v4967_v14 = vld [vmem:[#allocation17_spill] sm:$0xff] }
 0x2ad   : > { %v2162_v5 = vadd.f32 %v4167_v50, %v2161_v44  ;;  %v1936_v44 = vsub.f32 %v3632_v20, %v4046_v28  ;;  %v4217_v36 = vpop.eup %2959  ;;  %v2135_v1 = vadd.f32 %v4212_v39, %v2134_v25  ;;  %2985 = vpow2.f32 %v2057_v22  ;;  %v4964_v25 = vld [vmem:[#allocation14_spill] sm:$0xff] }
 0x2ae   : > { %v4222_v34 = vpop.eup %2961  ;;  %2987 = vpow2.f32 %v1999_v43  ;;  %v1949_v0 = vsub.f32 %v4960_v19, %v4046_v28 }
 0x2af   : > { %v2163_v60 = vadd.f32 %v4177_v52, %v2162_v5  ;;  %v1937_v5 = vsub.f32 %v3644_v23, %v4046_v28  ;;  %v4227_v31 = vpop.eup %2963  ;;  %v2136_v4 = vadd.f32 %v4222_v34, %v2135_v1  ;;  %v2063_v7 = vmul.f32 1.442695, %v1936_v44 }
 0x2b0   : > { %v4232_v30 = vpop.eup %2965  ;;  %2989 = vpow2.f32 %v2059_v26  ;;  %v1941_v44 = vsub.f32 %v4964_v25, %v4046_v28 }
 0x2b1   : > { %v2164_v9 = vadd.f32 %v4187_v56, %v2163_v60  ;;  %v1938_v60 = vsub.f32 %v3666_v29, %v4046_v28  ;;  %2991 = vpow2.f32 %v2001_v12  ;;  %v2137_v41 = vadd.f32 %v4232_v30, %v2136_v4  ;;  %v4240_v17 = vpop.eup %2967  ;;  %v4965_v12 = vld [vmem:[#allocation10_spill] sm:$0xff] }
 0x2b2   : > { %v2065_v13 = vmul.f32 1.442695, %v1937_v5  ;;  %2993 = vpow2.f32 %v2061_v42  ;;  %v4244_v29 = vpop.eup %2969  ;;  %v1951_v1 = vsub.f32 %v4965_v12, %v4046_v28  ;;  %v2089_v4 = vmul.f32 1.442695, %v1949_v0 }
 0x2b3   : > { %v2165_v11 = vadd.f32 %v4197_v59, %v2164_v9  ;;  %v1940_v9 = vsub.f32 %v4959_v3, %v4046_v28  ;;  %2995 = vpow2.f32 %v2003_v58  ;;  %v2138_v37 = vadd.f32 %v4240_v17, %v2137_v41  ;;  %v4249_v40 = vpop.eup %2971 }
 0x2b4   : > { %4961 = vst [vmem:[#allocation13_spill] sm:$0xff] %v4249_v40  ;;  %v2067_v61 = vmul.f32 1.442695, %v1938_v60  ;;  %2997 = vpow2.f32 %v2063_v7  ;;  %v4253_v43 = vpop.eup %2973  ;;  %v1942_v58 = vsub.f32 %v4967_v14, %v4046_v28  ;;  %v4968_v7 = vld [vmem:[#allocation11_spill] sm:$0xff]  ;;  %v2073_v19 = vmul.f32 1.442695, %v1941_v44 }
 0x2b5   : > { %v2166_v16 = vadd.f32 %v4207_v8, %v2165_v11  ;;  %v4962_v11 = vld [vmem:[#allocation9_spill] sm:$0xff]  ;;  %4963 = vst [vmem:[#allocation8_spill] sm:$0xff] %v4253_v43  ;;  %2999 = vpow2.f32 %v2005_v51  ;;  %v2139_v26 = vadd.f32 %v4244_v29, %v2138_v37  ;;  %v4258_v38 = vpop.eup %2975  ;;  %v2071_v5 = vmul.f32 1.442695, %v1940_v9  ;;  %v4970_v9 = vld [vmem:[#allocation19_spill] sm:$0xff]  ;;  %v4971_v37 = vld [vmem:[#allocation12_spill] sm:$0xff] }
 0x2b6   : > { %v1950_v22 = vsub.f32 %v4962_v11, %v4046_v28  ;;  %3001 = vpow2.f32 %v2065_v13  ;;  %v4264_v42 = vpop.eup %2977  ;;  %v1943_v13 = vsub.f32 %v4970_v9, %v4046_v28  ;;  %v1953_v11 = vsub.f32 %v4971_v37, %v4046_v28 }
 0x2b7   : > { %v2167_v20 = vadd.f32 %v4217_v36, %v2166_v16  ;;  %v2069_v16 = vmul.f32 1.442695, %v1939_v57  ;;  %4966 = vst [vmem:[#allocation9_spill] sm:$0xff] %v4264_v42  ;;  %3003 = vpow2.f32 %v2007_v54  ;;  %v2140_v60 = vadd.f32 %v4258_v38, %v2139_v26  ;;  %v4973_v26 = vld [vmem:[#allocation21_spill] sm:$0xff] }
 0x2b8   : > { %v1952_v57 = vsub.f32 %v4968_v7, %v4046_v28  ;;  %v2091_v51 = vmul.f32 1.442695, %v1950_v22  ;;  %3005 = vpow2.f32 %v2067_v61  ;;  %v2093_v25 = vmul.f32 1.442695, %v1951_v1 }
 0x2b9   : > { %v2168_v23 = vadd.f32 %v4227_v31, %v2167_v20  ;;  %v2171_v20 = vadd.f32 %v4253_v43, %v4249_v40  ;;  %3007 = vpow2.f32 %v2069_v16  ;;  %v1944_v12 = vsub.f32 %v4973_v26, %v4046_v28  ;;  %v4974_v16 = vld [vmem:[#allocation15_spill] sm:$0xff] }
 0x2ba   : > { %3009 = vpow2.f32 %v2071_v5  ;;  %v2095_v7 = vmul.f32 1.442695, %v1952_v57  ;;  %v2077_v37 = vmul.f32 1.442695, %v1943_v13 }
 0x2bb   : > { %2169 = vadd.xlane.f32.xlu1 %v2168_v23  ;;  %v4269_v23 = vpop.eup %2979  ;;  %v2172_v41 = vadd.f32 %v4264_v42, %v2171_v20  ;;  %v2075_v20 = vmul.f32 1.442695, %v1942_v58  ;;  %3011 = vpow2.f32 %v2089_v4  ;;  %v4977_v4 = vld [vmem:[#allocation16_spill] sm:$0xff] }
 0x2bc   : > { %v4274_v3 = vpop.eup %2981  ;;  %v2141_v0 = vadd.f32 %v4269_v23, %v2140_v60  ;;  %v1954_v60 = vsub.f32 %v4974_v16, %v4046_v28  ;;  %3013 = vpow2.f32 %v2091_v51  ;;  %v1955_v26 = vsub.f32 %v4977_v4, %v4046_v28 }
 0x2bd   : > { %4969 = vst [vmem:[#allocation14_spill] sm:$0xff] %v4274_v3  ;;  %v4279_v54 = vpop.eup %2983  ;;  %v2173_v22 = vadd.f32 %v4274_v3, %v2172_v41  ;;  %v4976_v41 = vld [vmem:[#allocation23_spill] sm:$0xff]  ;;  %3015 = vpow2.f32 %v2073_v19  ;;  %v2097_v3 = vmul.f32 1.442695, %v1953_v11  ;;  %v4980_v19 = vld [vmem:[#allocation18_spill] sm:$0xff] }
 0x2be   : > { %v4284_v61 = vpop.eup %2985  ;;  %v2142_v44 = vadd.f32 %v4279_v54, %v2141_v0  ;;  %v1945_v9 = vsub.f32 %v4976_v41, %v4046_v28  ;;  %3017 = vpow2.f32 %v2093_v25  ;;  %v1956_v41 = vsub.f32 %v4980_v19, %v4046_v28 }
 0x2bf   : > { %4972 = vst [vmem:[#allocation10_spill] sm:$0xff] %v4284_v61  ;;  %v4289_v14 = vpop.eup %2987  ;;  %v2174_v1 = vadd.f32 %v4284_v61, %v2173_v22  ;;  %v4979_v22 = vld [vmem:[#allocation25_spill] sm:$0xff]  ;;  %v2079_v61 = vmul.f32 1.442695, %v1944_v12  ;;  %3019 = vpow2.f32 %v2075_v20  ;;  %v2099_v42 = vmul.f32 1.442695, %v1954_v60 }
 0x2c0   : > { %v4294_v5 = vpop.eup %2989  ;;  %v2143_v58 = vadd.f32 %v4289_v14, %v2142_v44  ;;  %v1946_v16 = vsub.f32 %v4979_v22, %v4046_v28  ;;  %3021 = vpow2.f32 %v2095_v7  ;;  %v4983_v20 = vld [vmem:[#allocation20_spill] sm:$0xff]  ;;  %v2101_v43 = vmul.f32 1.442695, %v1955_v26 }
 0x2c1   : > { %4975 = vst [vmem:[#allocation17_spill] sm:$0xff] %v4294_v5  ;;  %v4299_v0 = vpop.eup %2991  ;;  %v2175_v57 = vadd.f32 %v4294_v5, %v2174_v1  ;;  %v4982_v1 = vld [vmem:[#allocation27_spill] sm:$0xff]  ;;  %v2081_v5 = vmul.f32 1.442695, %v1945_v9  ;;  %3023 = vpow2.f32 %v2077_v37  ;;  %v1957_v22 = vsub.f32 %v4983_v20, %v4046_v28  ;;  %v4986_v37 = vld [vmem:[#allocation22_spill] sm:$0xff] }
 0x2c2   : > { %v4304_v51 = vpop.eup %2993  ;;  %v2144_v13 = vadd.f32 %v4299_v0, %v2143_v58  ;;  %v1947_v4 = vsub.f32 %v4982_v1, %v4046_v28  ;;  %3025 = vpow2.f32 %v2097_v3  ;;  %v1958_v1 = vsub.f32 %v4986_v37, %v4046_v28 }
 0x2c3   : > { %4978 = vst [vmem:[#allocation11_spill] sm:$0xff] %v4304_v51  ;;  %v4309_v44 = vpop.eup %2995  ;;  %v2176_v11 = vadd.f32 %v4304_v51, %v2175_v57  ;;  %v4985_v57 = vld [vmem:[#allocation29_spill] sm:$0xff]  ;;  %v2083_v51 = vmul.f32 1.442695, %v1946_v16  ;;  %3027 = vpow2.f32 %v2079_v61  ;;  %v2103_v40 = vmul.f32 1.442695, %v1956_v41 }
 0x2c4   : > { %v4314_v25 = vpop.eup %2997  ;;  %v2145_v12 = vadd.f32 %v4309_v44, %v2144_v13  ;;  %v1948_v19 = vsub.f32 %v4985_v57, %v4046_v28  ;;  %3029 = vpow2.f32 %v2099_v42  ;;  %v4987_v16 = vld [vmem:[#allocation24_spill] sm:$0xff] }
 0x2c5   : > { %4981 = vst [vmem:[#allocation19_spill] sm:$0xff] %v4314_v25  ;;  %v4319_v58 = vpop.eup %2999  ;;  %v2177_v60 = vadd.f32 %v4314_v25, %v2176_v11  ;;  %v2085_v11 = vmul.f32 1.442695, %v1947_v4  ;;  %3031 = vpow2.f32 %v2081_v5  ;;  %v1959_v61 = vsub.f32 %v4987_v16, %v4046_v28  ;;  %v4990_v4 = vld [vmem:[#allocation26_spill] sm:$0xff] }
 0x2c6   : > { %v4324_v7 = vpop.eup %3001  ;;  %v2146_v9 = vadd.f32 %v4319_v58, %v2145_v12  ;;  %v2105_v12 = vmul.f32 1.442695, %v1957_v22  ;;  %3033 = vpow2.f32 %v2101_v43  ;;  %v2087_v42 = vmul.f32 1.442695, %v1948_v19  ;;  %v4992_v43 = vld [vmem:[#allocation28_spill] sm:$0xff] }
 0x2c7   : > { %4984 = vst [vmem:[#allocation12_spill] sm:$0xff] %v4324_v7  ;;  %v4329_v13 = vpop.eup %3003  ;;  %v2178_v3 = vadd.f32 %v4324_v7, %v2177_v60  ;;  %3035 = vpow2.f32 %v2083_v51  ;;  %v1960_v60 = vsub.f32 %v4990_v4, %v4046_v28  ;;  %v2107_v5 = vmul.f32 1.442695, %v1958_v1 }
 0x2c8   : > { %v4334_v26 = vpop.eup %3005  ;;  %v2147_v20 = vadd.f32 %v4329_v13, %v2146_v9  ;;  %3037 = vpow2.f32 %v2103_v40  ;;  %v1961_v22 = vsub.f32 %v4992_v43, %v4046_v28  ;;  %v2109_v19 = vmul.f32 1.442695, %v1959_v61  ;;  %v4995_v40 = vld [vmem:[#allocation30_spill] sm:$0xff]  ;;  %v4998_v43 = vld [vmem:[#allocation31_spill] sm:$0xff] }
 0x2c9   : > { %v4337_v57 = vpop.eup %3007  ;;  %v2179_v25 = vadd.f32 %v4334_v26, %v2178_v3  ;;  %3039 = vpow2.f32 %v2085_v11  ;;  %v2111_v4 = vmul.f32 1.442695, %v1960_v60  ;;  %v5001_v60 = vld [vmem:[#allocation32_spill] sm:$0xff] }
 0x2ca   : > { %v4342_v37 = vpop.eup %3009  ;;  %2148 = vadd.xlane.f32.xlu0 %v2147_v20  ;;  %3041 = vpow2.f32 %v2105_v12 }
 0x2cb   : > { %4988 = vst [vmem:[#allocation21_spill] sm:$0xff] %v4342_v37  ;;  %v4344_v41 = vpop.eup %3011  ;;  %v2180_v9 = vadd.f32 %v4337_v57, %v2179_v25  ;;  %v1962_v25 = vsub.f32 %v4995_v40, %v4046_v28  ;;  %3043 = vpow2.f32 %v2087_v42 }
 0x2cc   : > { %4989 = vst [vmem:[#allocation15_spill] sm:$0xff] %v4344_v41  ;;  %v4349_v7 = vpop.eup %3013  ;;  %3045 = vpow2.f32 %v2107_v5  ;;  %v1964_v5 = vsub.f32 %v5001_v60, %v4046_v28 }
 0x2cd   : > { %4991 = vst [vmem:[#allocation23_spill] sm:$0xff] %v4349_v7  ;;  %v4353_v3 = vpop.eup %3015  ;;  %v2192_v51 = vadd.f32 %v4349_v7, %v4344_v41  ;;  %v2181_v20 = vadd.f32 %v4342_v37, %v2180_v9  ;;  %v1963_v7 = vsub.f32 %v4998_v43, %v4046_v28  ;;  %v2113_v41 = vmul.f32 1.442695, %v1961_v22  ;;  %v5004_v22 = vld [vmem:[#allocation33_spill] sm:$0xff] }
 0x2ce   : > { %4993 = vst [vmem:[#allocation16_spill] sm:$0xff] %v4353_v3  ;;  %v4358_v16 = vpop.eup %3017  ;;  %3047 = vpow2.f32 %v2109_v19  ;;  %v1965_v19 = vsub.f32 %v5004_v22, %v4046_v28 }
 0x2cf   : > { %4994 = vst [vmem:[#allocation25_spill] sm:$0xff] %v4358_v16  ;;  %v4362_v1 = vpop.eup %3019  ;;  %v2193_v11 = vadd.f32 %v4358_v16, %v2192_v51  ;;  %v2182_v61 = vadd.f32 %v4353_v3, %v2181_v20  ;;  %v2115_v20 = vmul.f32 1.442695, %v1962_v25  ;;  %3049 = vpow2.f32 %v2111_v4  ;;  %v5007_v25 = vld [vmem:[#allocation34_spill] sm:$0xff] }
 0x2d0   : > { %4996 = vst [vmem:[#allocation18_spill] sm:$0xff] %v4362_v1  ;;  %v4366_v12 = vpop.eup %3021  ;;  %3051 = vpow2.f32 %v2113_v41  ;;  %v1966_v4 = vsub.f32 %v5007_v25, %v4046_v28 }
 0x2d1   : > { %4997 = vst [vmem:[#allocation27_spill] sm:$0xff] %v4366_v12  ;;  %v4370_v9 = vpop.eup %3023  ;;  %v2194_v40 = vadd.f32 %v4366_v12, %v2193_v11  ;;  %v2183_v42 = vadd.f32 %v4362_v1, %v2182_v61  ;;  %v2117_v61 = vmul.f32 1.442695, %v1963_v7  ;;  %3053 = vpow2.f32 %v2115_v20  ;;  %v5009_v7 = vld [vmem:[#allocation35_spill] sm:$0xff] }
 0x2d2   : > { %4999 = vst [vmem:[#allocation20_spill] sm:$0xff] %v4370_v9  ;;  %v4374_v37 = vpop.eup %3025  ;;  %v1967_v41 = vsub.f32 %v5009_v7, %v4046_v28 }
 0x2d3   : > { %5000 = vst [vmem:[#allocation29_spill] sm:$0xff] %v4374_v37  ;;  %v4378_v51 = vpop.eup %3027  ;;  %v2195_v16 = vadd.f32 %v4374_v37, %v2194_v40  ;;  %v2184_v43 = vadd.f32 %v4370_v9, %v2183_v42  ;;  %v2119_v42 = vmul.f32 1.442695, %v1964_v5  ;;  %3055 = vpow2.f32 %v2117_v61  ;;  %v5010_v5 = vld [vmem:[#allocation36_spill] sm:$0xff] }
 0x2d4   : > { %5002 = vst [vmem:[#allocation22_spill] sm:$0xff] %v4378_v51  ;;  %v4382_v3 = vpop.eup %3029 }
 0x2d5   : > { %5003 = vst [vmem:[#allocation24_spill] sm:$0xff] %v4382_v3  ;;  %v4386_v11 = vpop.eup %3031  ;;  %v2196_v12 = vadd.f32 %v4382_v3, %v2195_v16  ;;  %v2185_v60 = vadd.f32 %v4378_v51, %v2184_v43  ;;  %v2121_v43 = vmul.f32 1.442695, %v1965_v19  ;;  %3057 = vpow2.f32 %v2119_v42 }
 0x2d6   : > { %5005 = vst [vmem:[#allocation26_spill] sm:$0xff] %v4386_v11  ;;  %v4390_v1 = vpop.eup %3033  ;;  %v2125_v19 = vmul.f32 1.442695, %v1967_v41 }
 0x2d7   : > { %5006 = vst [vmem:[#allocation28_spill] sm:$0xff] %v4390_v1  ;;  %v4394_v40 = vpop.eup %3035  ;;  %v2197_v37 = vadd.f32 %v4390_v1, %v2196_v12  ;;  %v2186_v22 = vadd.f32 %v4386_v11, %v2185_v60  ;;  %v1968_v12 = vsub.f32 %v5010_v5, %v4046_v28  ;;  %v2123_v60 = vmul.f32 1.442695, %v1966_v4 }
 0x2d8   : > { %v4398_v9 = vpop.eup %3037  ;;  %3059 = vpow2.f32 %v2121_v43 }
 0x2d9   : > { %5008 = vst [vmem:[#allocation30_spill] sm:$0xff] %v4398_v9  ;;  %v4402_v16 = vpop.eup %3039  ;;  %v2198_v3 = vadd.f32 %v4398_v9, %v2197_v37  ;;  %v2187_v25 = vadd.f32 %v4394_v40, %v2186_v22  ;;  %v2127_v9 = vmul.f32 1.442695, %v1968_v12  ;;  %3061 = vpow2.f32 %v2123_v60 }
 0x2da   : > { %v4406_v51 = vpop.eup %3041  ;;  %3063 = vpow2.f32 %v2125_v19 }
 0x2db   : > { %v4410_v20 = vpop.eup %3043  ;;  %v2199_v1 = vadd.f32 %v4406_v51, %v2198_v3  ;;  %v2188_v7 = vadd.f32 %v4402_v16, %v2187_v25  ;;  %3065 = vpow2.f32 %v2127_v9 }
 0x2dc   : > { %v4414_v11 = vpop.eup %3045 }
 0x2dd   : > { %v2200_v37 = vadd.f32 %v4414_v11, %v2199_v1  ;;  %v2189_v61 = vadd.f32 %v4410_v20, %v2188_v7  ;;  %v4418_v22 = vpop.eup %3047 }
 0x2de   : > { %v4421_v4 = vpop.eup %3049 }
 0x2df   : > { %v2201_v28 = vadd.f32 %v4418_v22, %v2200_v37  ;;  %2190 = vadd.xlane.f32.xlu0 %v2189_v61  ;;  %v4424_v42 = vpop.eup %3051 }
 0x2e0   : > { %5011 = vst [vmem:[#allocation31_spill] sm:$0xff] %v4424_v42  ;;  %v4427_v1 = vpop.eup %3053 }
 0x2e1   : > { %v2202_v3 = vadd.f32 %v4421_v4, %v2201_v28  ;;  %5012 = vst [vmem:[#allocation32_spill] sm:$0xff] %v4427_v1  ;;  %v4430_v25 = vpop.eup %3055 }
 0x2e2   : > { %5013 = vst [vmem:[#allocation33_spill] sm:$0xff] %v4430_v25  ;;  %v4433_v12 = vpop.eup %3057 }
 0x2e3   : > { %v2203_v41 = vadd.f32 %v4424_v42, %v2202_v3  ;;  %5014 = vst [vmem:[#allocation34_spill] sm:$0xff] %v4433_v12 }
 0x2e5   : > { %v2204_v43 = vadd.f32 %v4427_v1, %v2203_v41  ;;  %v4436_v7 = vpop.eup %3059 }
 0x2e6   : > { %5015 = vst [vmem:[#allocation35_spill] sm:$0xff] %v4436_v7  ;;  %v4439_v37 = vpop.eup %3061 }
 0x2e7   : > { %v2205_v5 = vadd.f32 %v4430_v25, %v2204_v43  ;;  %v4442_v61 = vpop.eup %3063 }
 0x2e8   : > { %v4445_v3 = vpop.eup %3065 }
 0x2e9   : > { %v2206_v60 = vadd.f32 %v4433_v12, %v2205_v5 }
 0x2eb   : > { %v2207_v19 = vadd.f32 %v4436_v7, %v2206_v60 }
 0x2ed   : > { %v2208_v9 = vadd.f32 %v4439_v37, %v2207_v19 }
 0x2ef   : > { %v2209_v28 = vadd.f32 %v4442_v61, %v2208_v9 }
 0x2f1   : > { %v2210_v41 = vadd.f32 %v4445_v3, %v2209_v28 }
 0x2f3   : > { %2211 = vadd.xlane.f32.xlu1 %v2210_v41 }
 0x344   : > { %v2170_v25 = vpop.xlane.xlu1 %2169 }
 0x353   : > { %v2149_v43 = vpop.xlane.xlu0 %2148 }
 0x354   : > { %v2213_v12 = vadd.f32 %v2170_v25, %v2149_v43  ;;  %v5020_v43 = vld [vmem:[#allocation10_spill] sm:$0xff] }
 0x368   : > { %v2191_v5 = vpop.xlane.xlu0 %2190 }
 0x369   : > { %v2214_v1 = vadd.f32 %v2213_v12, %v2191_v5 }
 0x37c   : > { %v2212_v42 = vpop.xlane.xlu1 %2211 }
 0x37d   : > { %v2215_v60 = vadd.f32 %v2214_v1, %v2212_v42 }
 0x37f   : > { %3067 = vrcp.f32 %v2215_v60  ;;  %v5021_v60 = vld [vmem:[#allocation17_spill] sm:$0xff] }
 0x38c   : > { %v4448_v7 = vpop.eup %3067 }
 0x38d   : > { %v2218_v19 = vmul.f32 %v4448_v7, %v4142_v2  ;;  %v2219_v9 = vmul.f32 %v4448_v7, %v4151_v24  ;;  %v2220_v28 = vmul.f32 %v4448_v7, %v4162_v35  ;;  %v2221_v41 = vmul.f32 %v4448_v7, %v4172_v21 }
 0x38e   : > { %v2222_v25 = vmul.f32 %v4448_v7, %v4182_v45  ;;  %v2223_v42 = vmul.f32 %v4448_v7, %v4192_v63  ;;  %v2224_v1 = vmul.f32 %v4448_v7, %v4202_v53  ;;  %v2225_v2 = vmul.f32 %v4448_v7, %v4212_v39 }
 0x38f   : > { %v2226_v24 = vmul.f32 %v4448_v7, %v4222_v34  ;;  %v2227_v35 = vmul.f32 %v4448_v7, %v4232_v30  ;;  %v2228_v21 = vmul.f32 %v4448_v7, %v4240_v17  ;;  %v2229_v45 = vmul.f32 %v4448_v7, %v4244_v29  ;;  %2298 = vst [vmem:[%s4866_s3] sm:$0xff] %v2218_v19 }
 0x390   : > { %2299 = vst [vmem:[%s4866_s3 + $0x8] sm:$0xff] %v2219_v9  ;;  %2300 = vst [vmem:[%s4866_s3 + $0x10] sm:$0xff] %v2220_v28  ;;  %v2230_v63 = vmul.f32 %v4448_v7, %v4258_v38  ;;  %v2231_v53 = vmul.f32 %v4448_v7, %v4269_v23  ;;  %v2232_v39 = vmul.f32 %v4448_v7, %v4279_v54  ;;  %v5022_v9 = vld [vmem:[#allocation11_spill] sm:$0xff] }
 0x391   : > { %2301 = vst [vmem:[%s4866_s3 + $0x18] sm:$0xff] %v2221_v41  ;;  %v2233_v34 = vmul.f32 %v4448_v7, %v4289_v14  ;;  %2302 = vst [vmem:[%s4866_s3 + $0x20] sm:$0xff] %v2222_v25  ;;  %v2234_v30 = vmul.f32 %v4448_v7, %v4299_v0  ;;  %v2235_v17 = vmul.f32 %v4448_v7, %v4309_v44  ;;  %v5018_v44 = vld [vmem:[#allocation9_spill] sm:$0xff]  ;;  %v5023_v41 = vld [vmem:[#allocation19_spill] sm:$0xff] }
 0x392   : > { %2303 = vst [vmem:[%s4866_s3 + $0x28] sm:$0xff] %v2223_v42  ;;  %2304 = vst [vmem:[%s4866_s3 + $0x30] sm:$0xff] %v2224_v1  ;;  %v2236_v29 = vmul.f32 %v4448_v7, %v4319_v58  ;;  %v2237_v38 = vmul.f32 %v4448_v7, %v4329_v13  ;;  %v2238_v23 = vmul.f32 %v4448_v7, %v4072_v33  ;;  %v5019_v13 = vld [vmem:[#allocation14_spill] sm:$0xff]  ;;  %v5024_v42 = vld [vmem:[#allocation12_spill] sm:$0xff] }
 0x393   : > { %2305 = vst [vmem:[%s4866_s3 + $0x38] sm:$0xff] %v2225_v2  ;;  %2306 = vst [vmem:[%s4866_s3 + $0x40] sm:$0xff] %v2226_v24  ;;  %v2239_v54 = vmul.f32 %v4448_v7, %v4076_v6  ;;  %v2240_v14 = vmul.f32 %v4448_v7, %v4084_v47  ;;  %v2241_v0 = vmul.f32 %v4448_v7, %v4091_v49 }
 0x394   : > { %2307 = vst [vmem:[%s4866_s3 + $0x48] sm:$0xff] %v2227_v35  ;;  %2308 = vst [vmem:[%s4866_s3 + $0x50] sm:$0xff] %v2228_v21  ;;  %v2242_v33 = vmul.f32 %v4448_v7, %v4098_v27  ;;  %v2243_v6 = vmul.f32 %v4448_v7, %v4105_v46  ;;  %v2244_v47 = vmul.f32 %v4448_v7, %v4112_v48  ;;  %v5025_v35 = vld [vmem:[#allocation21_spill] sm:$0xff] }
 0x395   : > { %2309 = vst [vmem:[%s4866_s3 + $0x58] sm:$0xff] %v2229_v45  ;;  %2310 = vst [vmem:[%s4866_s3 + $0x60] sm:$0xff] %v2230_v63  ;;  %v2245_v49 = vmul.f32 %v4448_v7, %v4119_v10  ;;  %v2246_v27 = vmul.f32 %v4448_v7, %v4126_v62  ;;  %v2247_v46 = vmul.f32 %v4448_v7, %v4133_v55  ;;  %v5027_v45 = vld [vmem:[#allocation18_spill] sm:$0xff] }
 0x396   : > { %2311 = vst [vmem:[%s4866_s3 + $0x68] sm:$0xff] %v2231_v53  ;;  %2312 = vst [vmem:[%s4866_s3 + $0x70] sm:$0xff] %v2232_v39  ;;  %v2248_v48 = vmul.f32 %v4448_v7, %v4138_v15  ;;  %v2249_v10 = vmul.f32 %v4448_v7, %v4147_v32  ;;  %v2250_v62 = vmul.f32 %v4448_v7, %v4156_v18  ;;  %v5028_v53 = vld [vmem:[#allocation20_spill] sm:$0xff] }
 0x397   : > { %2313 = vst [vmem:[%s4866_s3 + $0x78] sm:$0xff] %v2233_v34  ;;  %2314 = vst [vmem:[%s4866_s3 + $0x80] sm:$0xff] %v2234_v30  ;;  %v2251_v55 = vmul.f32 %v4448_v7, %v4167_v50  ;;  %v2252_v15 = vmul.f32 %v4448_v7, %v4177_v52  ;;  %v2253_v32 = vmul.f32 %v4448_v7, %v4187_v56  ;;  %v5029_v34 = vld [vmem:[#allocation22_spill] sm:$0xff] }
 0x398   : > { %2315 = vst [vmem:[%s4866_s3 + $0x88] sm:$0xff] %v2235_v17  ;;  %2316 = vst [vmem:[%s4866_s3 + $0x90] sm:$0xff] %v2236_v29  ;;  %v2254_v18 = vmul.f32 %v4448_v7, %v4197_v59  ;;  %v2255_v50 = vmul.f32 %v4448_v7, %v4207_v8  ;;  %v2256_v52 = vmul.f32 %v4448_v7, %v4217_v36  ;;  %v5016_v59 = vld [vmem:[#allocation13_spill] sm:$0xff]  ;;  %v5017_v36 = vld [vmem:[#allocation8_spill] sm:$0xff] }
 0x399   : > { %2317 = vst [vmem:[%s4866_s3 + $0x98] sm:$0xff] %v2237_v38  ;;  %2318 = vst [vmem:[%s4866_s3 + $0xa0] sm:$0xff] %v2238_v23  ;;  %v2257_v56 = vmul.f32 %v4448_v7, %v4227_v31  ;;  %v2258_v8 = vmul.f32 %v4448_v7, %v5016_v59  ;;  %v2259_v31 = vmul.f32 %v4448_v7, %v5017_v36  ;;  %v5030_v17 = vld [vmem:[#allocation26_spill] sm:$0xff] }
 0x39a   : > { %2319 = vst [vmem:[%s4866_s3 + $0xa8] sm:$0xff] %v2239_v54  ;;  %2320 = vst [vmem:[%s4866_s3 + $0xb0] sm:$0xff] %v2240_v14  ;;  %v2260_v58 = vmul.f32 %v4448_v7, %v5018_v44  ;;  %v2261_v12 = vmul.f32 %v4448_v7, %v5019_v13  ;;  %v2262_v5 = vmul.f32 %v4448_v7, %v5020_v43 }
 0x39b   : > { %2321 = vst [vmem:[%s4866_s3 + $0xb8] sm:$0xff] %v2241_v0  ;;  %2322 = vst [vmem:[%s4866_s3 + $0xc0] sm:$0xff] %v2242_v33  ;;  %v2263_v19 = vmul.f32 %v4448_v7, %v5021_v60  ;;  %v2264_v28 = vmul.f32 %v4448_v7, %v5022_v9  ;;  %v2265_v25 = vmul.f32 %v4448_v7, %v5023_v41  ;;  %v5033_v0 = vld [vmem:[#allocation25_spill] sm:$0xff] }
 0x39c   : > { %2323 = vst [vmem:[%s4866_s3 + $0xc8] sm:$0xff] %v2243_v6  ;;  %2324 = vst [vmem:[%s4866_s3 + $0xd0] sm:$0xff] %v2244_v47  ;;  %v2266_v1 = vmul.f32 %v4448_v7, %v5024_v42  ;;  %v2267_v2 = vmul.f32 %v4448_v7, %v4334_v26  ;;  %v2268_v24 = vmul.f32 %v4448_v7, %v4337_v57  ;;  %v5026_v26 = vld [vmem:[#allocation16_spill] sm:$0xff]  ;;  %v5034_v6 = vld [vmem:[#allocation27_spill] sm:$0xff] }
 0x39d   : > { %2325 = vst [vmem:[%s4866_s3 + $0xd8] sm:$0xff] %v2245_v49  ;;  %2326 = vst [vmem:[%s4866_s3 + $0xe0] sm:$0xff] %v2246_v27  ;;  %v2269_v21 = vmul.f32 %v4448_v7, %v5025_v35  ;;  %v2270_v57 = vmul.f32 %v4448_v7, %v5026_v26  ;;  %v2271_v63 = vmul.f32 %v4448_v7, %v5027_v45  ;;  %v5035_v49 = vld [vmem:[#allocation29_spill] sm:$0xff] }
 0x39e   : > { %2327 = vst [vmem:[%s4866_s3 + $0xe8] sm:$0xff] %v2247_v46  ;;  %2328 = vst [vmem:[%s4866_s3 + $0xf0] sm:$0xff] %v2248_v48  ;;  %v2272_v39 = vmul.f32 %v4448_v7, %v5028_v53  ;;  %v2273_v30 = vmul.f32 %v4448_v7, %v5029_v34  ;;  %v2274_v29 = vmul.f32 %v4448_v7, %v5030_v17  ;;  %v5036_v46 = vld [vmem:[#allocation24_spill] sm:$0xff] }
 0x39f   : > { %2329 = vst [vmem:[%s4866_s3 + $0xf8] sm:$0xff] %v2249_v10  ;;  %2330 = vst [vmem:[%s4866_s3 + $0x100] sm:$0xff] %v2250_v62  ;;  %v2275_v38 = vmul.f32 %v4448_v7, %v4394_v40  ;;  %v2276_v23 = vmul.f32 %v4448_v7, %v4402_v16  ;;  %v2277_v54 = vmul.f32 %v4448_v7, %v4410_v20  ;;  %v5031_v40 = vld [vmem:[#allocation15_spill] sm:$0xff]  ;;  %v5037_v10 = vld [vmem:[#allocation28_spill] sm:$0xff] }
 0x3a0   : > { %2331 = vst [vmem:[%s4866_s3 + $0x108] sm:$0xff] %v2251_v55  ;;  %2332 = vst [vmem:[%s4866_s3 + $0x110] sm:$0xff] %v2252_v15  ;;  %v2278_v16 = vmul.f32 %v4448_v7, %v5031_v40  ;;  %v5032_v20 = vld [vmem:[#allocation23_spill] sm:$0xff]  ;;  %v2280_v33 = vmul.f32 %v4448_v7, %v5033_v0  ;;  %v2281_v47 = vmul.f32 %v4448_v7, %v5034_v6  ;;  %v5038_v55 = vld [vmem:[#allocation30_spill] sm:$0xff] }
 0x3a1   : > { %2333 = vst [vmem:[%s4866_s3 + $0x118] sm:$0xff] %v2253_v32  ;;  %2334 = vst [vmem:[%s4866_s3 + $0x120] sm:$0xff] %v2254_v18  ;;  %v2279_v14 = vmul.f32 %v4448_v7, %v5032_v20  ;;  %v2282_v27 = vmul.f32 %v4448_v7, %v5035_v49  ;;  %v2283_v48 = vmul.f32 %v4448_v7, %v5036_v46 }
 0x3a2   : > { %2335 = vst [vmem:[%s4866_s3 + $0x128] sm:$0xff] %v2255_v50  ;;  %2336 = vst [vmem:[%s4866_s3 + $0x130] sm:$0xff] %v2256_v52  ;;  %v2284_v62 = vmul.f32 %v4448_v7, %v5037_v10  ;;  %v2285_v15 = vmul.f32 %v4448_v7, %v5038_v55  ;;  %v2286_v32 = vmul.f32 %v4448_v7, %v4406_v51  ;;  %v5039_v51 = vld [vmem:[#allocation31_spill] sm:$0xff] }
 0x3a3   : > { %2337 = vst [vmem:[%s4866_s3 + $0x138] sm:$0xff] %v2257_v56  ;;  %2338 = vst [vmem:[%s4866_s3 + $0x140] sm:$0xff] %v2258_v8  ;;  %v2287_v18 = vmul.f32 %v4448_v7, %v4414_v11  ;;  %v2288_v50 = vmul.f32 %v4448_v7, %v4418_v22  ;;  %v2289_v52 = vmul.f32 %v4448_v7, %v4421_v4  ;;  %v5040_v22 = vld [vmem:[#allocation32_spill] sm:$0xff]  ;;  %v5041_v56 = vld [vmem:[#allocation33_spill] sm:$0xff] }
 0x3a4   : > { %2339 = vst [vmem:[%s4866_s3 + $0x148] sm:$0xff] %v2259_v31  ;;  %2340 = vst [vmem:[%s4866_s3 + $0x150] sm:$0xff] %v2260_v58  ;;  %v2290_v11 = vmul.f32 %v4448_v7, %v5039_v51  ;;  %v2291_v4 = vmul.f32 %v4448_v7, %v5040_v22  ;;  %v2292_v59 = vmul.f32 %v4448_v7, %v5041_v56  ;;  %v5042_v8 = vld [vmem:[#allocation34_spill] sm:$0xff]  ;;  %v5043_v31 = vld [vmem:[#allocation35_spill] sm:$0xff] }
 0x3a5   : > { %2341 = vst [vmem:[%s4866_s3 + $0x158] sm:$0xff] %v2261_v12  ;;  %2342 = vst [vmem:[%s4866_s3 + $0x160] sm:$0xff] %v2262_v5  ;;  %v2293_v36 = vmul.f32 %v4448_v7, %v5042_v8  ;;  %v2294_v44 = vmul.f32 %v4448_v7, %v5043_v31  ;;  %v2295_v58 = vmul.f32 %v4448_v7, %v4439_v37 }
 0x3a6   : > { %2343 = vst [vmem:[%s4866_s3 + $0x168] sm:$0xff] %v2263_v19  ;;  %2344 = vst [vmem:[%s4866_s3 + $0x170] sm:$0xff] %v2264_v28  ;;  %v2296_v13 = vmul.f32 %v4448_v7, %v4442_v61  ;;  %v2297_v12 = vmul.f32 %v4448_v7, %v4445_v3 }
 0x3a7   : > { %2345 = vst [vmem:[%s4866_s3 + $0x178] sm:$0xff] %v2265_v25  ;;  %2346 = vst [vmem:[%s4866_s3 + $0x180] sm:$0xff] %v2266_v1 }
 0x3a8   : > { %2347 = vst [vmem:[%s4866_s3 + $0x188] sm:$0xff] %v2267_v2  ;;  %2348 = vst [vmem:[%s4866_s3 + $0x190] sm:$0xff] %v2268_v24 }
 0x3a9   : > { %2349 = vst [vmem:[%s4866_s3 + $0x198] sm:$0xff] %v2269_v21  ;;  %2350 = vst [vmem:[%s4866_s3 + $0x1a0] sm:$0xff] %v2270_v57 }
 0x3aa   : > { %2351 = vst [vmem:[%s4866_s3 + $0x1a8] sm:$0xff] %v2271_v63  ;;  %2352 = vst [vmem:[%s4866_s3 + $0x1b0] sm:$0xff] %v2272_v39 }
 0x3ab   : > { %2353 = vst [vmem:[%s4866_s3 + $0x1b8] sm:$0xff] %v2273_v30  ;;  %2354 = vst [vmem:[%s4866_s3 + $0x1c0] sm:$0xff] %v2274_v29 }
 0x3ac   : > { %2355 = vst [vmem:[%s4866_s3 + $0x1c8] sm:$0xff] %v2275_v38  ;;  %2356 = vst [vmem:[%s4866_s3 + $0x1d0] sm:$0xff] %v2276_v23 }
 0x3ad   : > { %2357 = vst [vmem:[%s4866_s3 + $0x1d8] sm:$0xff] %v2277_v54  ;;  %2358 = vst [vmem:[%s4866_s3 + $0x1e0] sm:$0xff] %v2278_v16 }
 0x3ae   : > { %2359 = vst [vmem:[%s4866_s3 + $0x1e8] sm:$0xff] %v2279_v14  ;;  %2360 = vst [vmem:[%s4866_s3 + $0x1f0] sm:$0xff] %v2280_v33 }
 0x3af   : > { %2361 = vst [vmem:[%s4866_s3 + $0x1f8] sm:$0xff] %v2281_v47  ;;  %2362 = vst [vmem:[%s4866_s3 + $0x200] sm:$0xff] %v2282_v27 }
 0x3b0   : > { %2363 = vst [vmem:[%s4866_s3 + $0x208] sm:$0xff] %v2283_v48  ;;  %2364 = vst [vmem:[%s4866_s3 + $0x210] sm:$0xff] %v2284_v62 }
 0x3b1   : > { %2365 = vst [vmem:[%s4866_s3 + $0x218] sm:$0xff] %v2285_v15  ;;  %2366 = vst [vmem:[%s4866_s3 + $0x220] sm:$0xff] %v2286_v32 }
 0x3b2   : > { %2367 = vst [vmem:[%s4866_s3 + $0x228] sm:$0xff] %v2287_v18  ;;  %2368 = vst [vmem:[%s4866_s3 + $0x230] sm:$0xff] %v2288_v50 }
 0x3b3   : > { %2369 = vst [vmem:[%s4866_s3 + $0x238] sm:$0xff] %v2289_v52  ;;  %2370 = vst [vmem:[%s4866_s3 + $0x240] sm:$0xff] %v2290_v11 }
 0x3b4   : > { %2371 = vst [vmem:[%s4866_s3 + $0x248] sm:$0xff] %v2291_v4  ;;  %2372 = vst [vmem:[%s4866_s3 + $0x250] sm:$0xff] %v2292_v59 }
 0x3b5   : > { %2373 = vst [vmem:[%s4866_s3 + $0x258] sm:$0xff] %v2293_v36  ;;  %2374 = vst [vmem:[%s4866_s3 + $0x260] sm:$0xff] %v2294_v44 }
 0x3b6   : > { %2375 = vst [vmem:[%s4866_s3 + $0x268] sm:$0xff] %v2295_v58  ;;  %2376 = vst [vmem:[%s4866_s3 + $0x270] sm:$0xff] %v2296_v13 }
 0x3b7   : > { %2377 = vst [vmem:[%s4866_s3 + $0x278] sm:$0xff] %v2297_v12 }
 0x3b8 PF: > { %p16_p8 = scmp.ge.s32.totalorder %s3213_s17, 6   ;;  %s5044_s12 = smov %s3155_s13 }
 0x3b9   : > { %s5045_s13 = smov %s3159_s14  ;;  %s5046_s14 = smov %s3223_s20 }
 0x3ba   : > { %s5047_s15 = smov %s3213_s17  ;;  %18 = sbr.rel (!%p16_p8) target bundleno = 5 (0x5), region = 86 }
 0x3bf   :  { %2389 = vsyncpa [#allocation3], 1 }
 0x3c0   :  { %2391 = vsyncpa [#allocation3 + $0x1], 1 }
 0x3c1   :  { %2392 = vsyncpa [#allocation5], 1 }
 0x3c2   :  { %2394 = vsyncpa [#allocation5 + $0x1], 1 }

</bundles_post_ra>
